<compile_context>
chip_gen: v5e
topology: v5e:2x2
jax: 0.10.0
libtpu: 0.0.40
codegen_flags: <defaults>
</compile_context>

<pallas_src>
import math

import numpy as np

import jax
import jax.numpy as jnp
from jax.experimental import pallas as pl
from jax.experimental.pallas import tpu as pltpu


# ----------------------------------------------------------------------------
# Constant gather matrices for 3x3 / stride 2 / pad 1 convolution taps
# ----------------------------------------------------------------------------
def _conv_select_matrix(h, w):
    """g[t*Ho*Wo + o, iy*w + ix] = 1 selects the input pixel feeding output
    position o for kernel tap t = ky*3+kx (zero rows encode the padding)."""
    ho, wo = (h + 1) // 2, (w + 1) // 2
    g = np.zeros((9 * ho * wo, h * w), np.float32)
    for ky in range(3):
        for kx in range(3):
            t = ky * 3 + kx
            for oy in range(ho):
                iy = 2 * oy + ky - 1
                if iy < 0 or iy >= h:
                    continue
                for ox in range(wo):
                    ix = 2 * ox + kx - 1
                    if ix < 0 or ix >= w:
                        continue
                    g[t * ho * wo + oy * wo + ox, iy * w + ix] = 1.0
    return g


def _batched_gather(h, w, batch):
    """Tap-major stack of kron(I_batch, g_t); each tap block starts at a
    16-row (bf16 sublane tile) aligned offset."""
    ho, wo = (h + 1) // 2, (w + 1) // 2
    g = _conv_select_matrix(h, w)
    rows_per_tap = batch * ho * wo
    stride = -(-rows_per_tap // 16) * 16
    out = np.zeros((9 * stride, batch * h * w), np.float32)
    for t in range(9):
        gt = g[t * ho * wo:(t + 1) * ho * wo]
        for b in range(batch):
            out[t * stride + b * ho * wo: t * stride + (b + 1) * ho * wo,
                b * h * w:(b + 1) * h * w] = gt
    return out, stride, rows_per_tap


def _pack_rows(entries, dtype, row_align, min_width=128):
    """Pack named 2-D arrays row-wise into one slab; returns (slab, offsets)."""
    width = max([min_width] + [int(a.shape[1]) for _, a in entries])
    width = -(-width // 128) * 128
    offs, blocks, off = {}, [], 0
    for name, arr in entries:
        arr = jnp.asarray(arr)
        r, c = int(arr.shape[0]), int(arr.shape[1])
        pad_r = (-r) % row_align
        blocks.append(jnp.pad(arr.astype(dtype), ((0, pad_r), (0, width - c))))
        offs[name] = off
        off += r + pad_r
    return jnp.concatenate(blocks, axis=0), offs


# ----------------------------------------------------------------------------
# The fused kernel (whole forward pass), built as a closure over the layout
# ----------------------------------------------------------------------------
def _build_kernel(L):
    f32, bf16 = jnp.float32, jnp.bfloat16
    B, A, HID = L["B"], L["A"], L["hidden"]
    d_msg, d_ie = L["d_msg"], L["d_ie"]

    def elu(v):
        # TODO(synk): jnp.expm1 would be marginally more accurate for small
        # negative v; exp(v) - 1 kept to guarantee the Mosaic lowering.
        return jnp.where(v > 0.0, v, jnp.exp(v) - 1.0)

    def relu(v):
        return jnp.maximum(v, 0.0)

    def sigmoid(v):
        # EUP tanh identity; keeps the divide off the serial GRU chain.
        return 0.5 * jnp.tanh(0.5 * v) + 0.5

    def mm(a, b):
        # bf16 MXU matmul, f32 accumulation.
        return jnp.dot(a.astype(bf16), b.astype(bf16),
                       preferred_element_type=f32)

    def kernel(pat1_ref, msg_ref, wa_ref, wb_ref, bs_ref, out_ref, gru_scr):
        def wa(name, rows, cols):
            return wa_ref[pl.ds(L["wa"][name], rows), :cols]

        def bias(name, cols):
            return bs_ref[pl.ds(L["bs"][name], 1), :cols]

        # ---------------- image encoder (batched over B) ---------------------
        # layer 1: one matmul on the whole im2col block
        y = elu(mm(pat1_ref[...], wa("cw1", 9 * L["cin0"], 32))
                + bias("cb1", 32))                                 # (B*hw1, 32)

        # layers 2-4: per-tap 0/1 gather matmul covering the whole batch
        for l in range(3):
            g_off = L["wa"][f"g{l + 2}"]
            w_off = L["wa"][f"cw{l + 2}"]
            stride = L["gstride"][l]
            rows_out = L["grows"][l]
            cols_in = L["gcols"][l]
            acc = bias(f"cb{l + 2}", 32)
            for t in range(9):
                gt = wa_ref[pl.ds(g_off + t * stride, rows_out), :cols_in]
                wt = wa_ref[pl.ds(w_off + t * 32, 32), :32]
                acc = acc + mm(mm(gt, y), wt)
            y = elu(acc)                                           # (B*hw_l, 32)

        # AdaptiveAvgPool2d(1)
        if L["hw_last"] > 1:
            output_ie = mm(wa("pool", B, B * L["hw_last"]), y)     # (B, 32)
        else:
            output_ie = y                                          # (B, 32)

        # ---------------- message path (me_embedding folded into msg_e0) -----
        m = relu(mm(msg_ref[...], wa("msg0", L["n_msg_in"], 32))
                 + bias("msg0_b", 32))
        m = relu(mm(m, wa("msg1", 32, 64)) + bias("msg1_b", 64))   # (B, 64)

        # ---------------- fused [ae_encoder[0] | GRU Wih(ie)] matmul ----------
        zie = (jnp.dot(output_ie.astype(bf16),
                       wb_ref[pl.ds(L["wb"]["fie"], d_ie), :],
                       preferred_element_type=f32)
               + bias("fie_b", 4 * HID))                           # (B, 512)
        h_ae = relu(zie[:, :HID])                                  # ae_e0 output
        gi_all = (zie[:, HID:HID + 3 * HID]
                  + mm(m, wb_ref[pl.ds(L["wb"]["wmgru"], 64), :3 * HID]))

        # ---------------- autoencoder -----------------------------------------
        h = relu(mm(h_ae, wa("ae_e1", HID, 64)) + bias("ae_e1_b", 64))
        h = relu(mm(h, wa("ae_e2", 64, 32)) + bias("ae_e2_b", 32))
        new_message = relu(mm(h, wa("ae_e3", 32, d_msg)) + bias("ae_e3_b", d_msg))
        d = relu(mm(new_message, wa("ae_d0", d_msg, 32)) + bias("ae_d0_b", 32))
        d = relu(mm(d, wa("ae_d1", 32, 64)) + bias("ae_d1_b", 64))
        d = relu(mm(d, wa("ae_d2", 64, HID)) + bias("ae_d2_b", HID))
        ae_dec = mm(d, wa("ae_d3", HID, d_msg)) + bias("ae_d3_b", d_msg)

        # ---------------- GRU (seq = batch rows, batch = 1) -------------------
        # Recurrent matmul kept in f32 (tiny) per the correctness feedback.
        whh = bs_ref[pl.ds(L["bs"]["whh"], HID), :3 * HID]         # (128, 384)
        bhh = bias("bhh", 3 * HID)
        h_t = bias("h0", HID)                                      # (1, 128)
        for t in range(B):                                         # unrolled
            gi = gi_all[t:t + 1, :]                                # (1, 384)
            gh = jnp.dot(h_t, whh, preferred_element_type=f32) + bhh
            r = sigmoid(gi[:, :HID] + gh[:, :HID])
            z = sigmoid(gi[:, HID:2 * HID] + gh[:, HID:2 * HID])
            n = jnp.tanh(gi[:, 2 * HID:] + r * gh[:, 2 * HID:])
            h_t = (1.0 - z) * n + z * h_t
            gru_scr[pl.ds(t, 1), :] = h_t                          # direct row store

        # ---------------- policy head: fused [logits | value] -----------------
        hr = relu(gru_scr[...])
        lv = mm(hr, wa("pn", HID, A + 1)) + bias("pn_b", A + 1)    # (B, A+1)
        logits = lv[:, :A]
        mx = jnp.max(logits, axis=-1, keepdims=True)
        e = jnp.exp(logits - mx)
        probs = e / jnp.sum(e, axis=-1, keepdims=True)             # exact divide

        # ---------------- lane-packed output slab ------------------------------
        out_ref[:, 0:d_ie] = output_ie
        out_ref[:, d_ie:d_ie + d_msg] = new_message
        out_ref[:, d_ie + d_msg:d_ie + 2 * d_msg] = ae_dec
        p0 = d_ie + 2 * d_msg
        out_ref[:, p0:p0 + A] = probs
        out_ref[:, p0 + A:p0 + 2 * A + 1] = lv                     # logits | value
        used = p0 + 2 * A + 1
        if used < out_ref.shape[1]:
            out_ref[:, used:] = jnp.zeros((B, out_ref.shape[1] - used), f32)

    return kernel


# ----------------------------------------------------------------------------
# Parameter initialization (deterministic, PyTorch-default-style uniform)
# ----------------------------------------------------------------------------
def init_params(key, n_agents, n_actions):
    params = {}
    keys = iter(jax.random.split(key, 128))

    def u(shape, fan_in):
        s = 1.0 / math.sqrt(fan_in)
        return jax.random.uniform(next(keys), shape, jnp.float32, -s, s)

    # image encoder: 4 x Conv2d(3x3, stride 2, pad 1)
    cins = [1, 32, 32, 32]
    for i, cin in enumerate(cins):
        params[f"conv{i}_w"] = u((32, cin, 3, 3), cin * 9)
        params[f"conv{i}_b"] = u((32,), cin * 9)

    def dense(name, fi, fo):
        params[name + "_w"] = u((fi, fo), fi)   # stored pre-transposed (in, out)
        params[name + "_b"] = u((fo,), fi)

    for name, (fi, fo) in zip(["ae_e0", "ae_e1", "ae_e2", "ae_e3"],
                              [(32, 128), (128, 64), (64, 32), (32, 10)]):
        dense(name, fi, fo)
    for name, (fi, fo) in zip(["ae_d0", "ae_d1", "ae_d2", "ae_d3"],
                              [(10, 32), (32, 64), (64, 128), (128, 10)]):
        dense(name, fi, fo)

    dense("me_emb", 10, 32)
    for name, (fi, fo) in zip(["msg_e0", "msg_e1", "msg_e2"],
                              [(32 * n_agents, 32), (32, 64), (64, 128)]):
        dense(name, fi, fo)

    # GRU(input=160, hidden=128); gate order r, z, n (torch convention)
    params["gru_wih_t"] = u((160, 3 * 128), 128)
    params["gru_whh_t"] = u((128, 3 * 128), 128)
    params["gru_bih"] = u((3 * 128,), 128)
    params["gru_bhh"] = u((3 * 128,), 128)
    params["gru_h0"] = jnp.zeros((1, 128), jnp.float32)   # self.pn_hidden

    dense("pn_lin1", 128, n_actions)
    dense("pn_lin2", 128, 1)
    return params


# ----------------------------------------------------------------------------
# Full forward pass (mirrors AgentNet.forward) — one pallas_call
# ----------------------------------------------------------------------------
def agent_net_forward(params, obs_nchw, messages, sample_key, n_actions):
    B, cin0, H, W = obs_nchw.shape
    n_agents = len(messages)
    A = n_actions
    HID = params["gru_whh_t"].shape[0]         # 128
    d_ie = params["ae_e0_w"].shape[0]          # 32
    d_msg = params["ae_e3_w"].shape[1]         # 10
    msg_dim = messages[0].shape[1]             # 10
    assert d_ie + 2 * d_msg + 2 * A + 1 <= 128

    # spatial sizes through the 4 stride-2 convs
    hw = [(H, W)]
    for _ in range(4):
        h, w = hw[-1]
        hw.append(((h + 1) // 2, (w + 1) // 2))
    hw_last = hw[4][0] * hw[4][1]

    # ---- layer-1 im2col on the raw observation (fused by XLA under jit) -----
    Ho, Wo = hw[1]
    x = jnp.transpose(obs_nchw.astype(jnp.float32), (0, 2, 3, 1))   # NHWC
    xp = jnp.pad(x, ((0, 0), (1, 1), (1, 1), (0, 0)))
    patches = [xp[:, ky:ky + 2 * Ho:2, kx:kx + 2 * Wo:2, :]
               for ky in range(3) for kx in range(3)]
    pat1 = jnp.stack(patches, axis=3).reshape(B * Ho * Wo, 9 * cin0)

    # ---- conv weights in tap-major (9*cin, cout) layout -----------------------
    def conv_w(i):
        wt = params[f"conv{i}_w"]                       # (cout, cin, 3, 3)
        cin = wt.shape[1]
        return jnp.transpose(wt, (2, 3, 1, 0)).reshape(9 * cin, wt.shape[0])

    # ---- batched kron(I_B, g_t) gather matrices for conv layers 2-4 ----------
    gmats, gstride, grows, gcols = [], [], [], []
    for l in range(3):
        hin, win = hw[l + 1]
        g, stride, rpt = _batched_gather(hin, win, B)
        gmats.append(g)
        gstride.append(stride)
        grows.append(rpt)
        gcols.append(B * hin * win)

    # ---- exact trace-time weight folds ----------------------------------------
    me_w, me_b = params["me_emb_w"], params["me_emb_b"]             # (10,32),(32,)
    w0, b0 = params["msg_e0_w"], params["msg_e0_b"]                 # (32*na,32),(32,)
    wcomb = jnp.concatenate(
        [me_w @ w0[a * 32:(a + 1) * 32, :] for a in range(n_agents)], axis=0)
    bcomb = b0 + sum(me_b @ w0[a * 32:(a + 1) * 32, :] for a in range(n_agents))

    gwih = params["gru_wih_t"]                                      # (160, 384)
    gwih_ie, gwih_me = gwih[:d_ie, :], gwih[d_ie:, :]
    w2, b2 = params["msg_e2_w"], params["msg_e2_b"]                 # (64,128),(128,)
    wm_gru = w2 @ gwih_me                                           # (64, 384)
    bih_total = params["gru_bih"] + b2 @ gwih_me                    # (384,)

    fused_ie_w = jnp.concatenate([params["ae_e0_w"], gwih_ie], axis=1)   # (32, 512)
    fused_ie_b = jnp.concatenate([params["ae_e0_b"], bih_total])         # (512,)

    pn_w = jnp.concatenate([params["pn_lin1_w"], params["pn_lin2_w"]], axis=1)
    pn_b = jnp.concatenate([params["pn_lin1_b"], params["pn_lin2_b"]])

    # ---- pack everything into 3 slabs (cuts ~45 kernel-entry DMAs to 5) -------
    wa_entries = [
        ("cw1", conv_w(0)), ("cw2", conv_w(1)), ("cw3", conv_w(2)), ("cw4", conv_w(3)),
        ("g2", gmats[0]), ("g3", gmats[1]), ("g4", gmats[2]),
        ("ae_e1", params["ae_e1_w"]), ("ae_e2", params["ae_e2_w"]),
        ("ae_e3", params["ae_e3_w"]),
        ("ae_d0", params["ae_d0_w"]), ("ae_d1", params["ae_d1_w"]),
        ("ae_d2", params["ae_d2_w"]), ("ae_d3", params["ae_d3_w"]),
        ("msg0", wcomb), ("msg1", params["msg_e1_w"]),
        ("pn", pn_w),
    ]
    if hw_last > 1:
        pool = np.zeros((B, B * hw_last), np.float32)
        for b in range(B):
            pool[b, b * hw_last:(b + 1) * hw_last] = 1.0 / hw_last
        wa_entries.append(("pool", pool))
    wa_slab, wa_offs = _pack_rows(wa_entries, jnp.bfloat16, 16, 128)

    wb_entries = [("fie", fused_ie_w), ("wmgru", wm_gru)]
    wb_slab, wb_offs = _pack_rows(wb_entries, jnp.bfloat16, 16, 4 * HID)

    r1 = lambda v: v.reshape(1, -1)
    bs_entries = [
        ("whh", params["gru_whh_t"]),                 # f32 recurrent weights (aligned)
        ("cb1", r1(params["conv0_b"])), ("cb2", r1(params["conv1_b"])),
        ("cb3", r1(params["conv2_b"])), ("cb4", r1(params["conv3_b"])),
        ("fie_b", r1(fused_ie_b)),
        ("ae_e1_b", r1(params["ae_e1_b"])), ("ae_e2_b", r1(params["ae_e2_b"])),
        ("ae_e3_b", r1(params["ae_e3_b"])),
        ("ae_d0_b", r1(params["ae_d0_b"])), ("ae_d1_b", r1(params["ae_d1_b"])),
        ("ae_d2_b", r1(params["ae_d2_b"])), ("ae_d3_b", r1(params["ae_d3_b"])),
        ("msg0_b", r1(bcomb)), ("msg1_b", r1(params["msg_e1_b"])),
        ("bhh", r1(params["gru_bhh"])),
        ("h0", params["gru_h0"]),
        ("pn_b", r1(pn_b)),
    ]
    bs_slab, bs_offs = _pack_rows(bs_entries, jnp.float32, 1, 4 * HID)

    msgcat = jnp.concatenate(messages, axis=1).astype(jnp.float32)  # (B, na*10)

    layout = dict(
        B=B, A=A, hidden=HID, d_ie=d_ie, d_msg=d_msg, cin0=cin0,
        hw_last=hw_last, n_msg_in=msg_dim * n_agents,
        gstride=tuple(gstride), grows=tuple(grows), gcols=tuple(gcols),
        wa=wa_offs, wb=wb_offs, bs=bs_offs,
    )
    kernel = _build_kernel(layout)

    # NOTE: grid-less call -> single TensorCore; on v7x a batch grid axis with
    # dimension_semantics=("parallel",) would be the scaling path if B grows.
    vm = pl.BlockSpec(memory_space=pltpu.MemorySpace.VMEM)
    packed = pl.pallas_call(
        kernel,
        out_shape=jax.ShapeDtypeStruct((B, 128), jnp.float32),
        in_specs=[vm] * 5,
        out_specs=vm,
        scratch_shapes=[pltpu.VMEM((B, HID), jnp.float32)],
        cost_estimate=pl.CostEstimate(flops=4_000_000, transcendentals=8_000,
                                      bytes_accessed=1_100_000),
    )(pat1, msgcat, wa_slab, wb_slab, bs_slab)

    output_ie = packed[:, :d_ie]
    new_message = packed[:, d_ie:d_ie + d_msg]
    output_ae_decoder = packed[:, d_ie + d_msg:d_ie + 2 * d_msg]
    p0 = d_ie + 2 * d_msg
    probs = packed[:, p0:p0 + A]
    logits = packed[:, p0 + A:p0 + 2 * A]
    value = packed[:, p0 + 2 * A:p0 + 2 * A + 1]

    action_probs = probs[:, None, :]              # (B, 1, n_actions)
    output_value_func = value[:, None, :]         # (B, 1, 1)
    # TODO(synk): torch's Categorical.sample() uses the host RNG; we sample the
    # same distribution with jax.random directly from the raw logits, so the
    # sampled bits will not match torch.
    action = jax.random.categorical(sample_key, logits[:, None, :], axis=-1)  # (B, 1)

    return (action, new_message, output_ie, output_ae_decoder,
            action_probs, output_value_func)


# ----------------------------------------------------------------------------
if __name__ == "__main__":
    n_agents, n_actions = 3, 5
    B, H, W = 2, 16, 16

    root = jax.random.PRNGKey(0)
    pkey, okey, mkey, skey = jax.random.split(root, 4)

    params = init_params(pkey, n_agents, n_actions)
    obs = jax.random.normal(okey, (B, 1, H, W), jnp.float32)        # NCHW like torch
    msg_keys = jax.random.split(mkey, n_agents)
    messages = [jax.random.normal(k, (B, 10), jnp.float32) for k in msg_keys]

    fwd = jax.jit(agent_net_forward, static_argnums=(4,))
    outs = fwd(params, obs, messages, skey, n_actions)
    outs = jax.block_until_ready(outs)

    action, new_message, output_ie, output_ae_decoder, action_probs, value = outs
    assert action.shape == (B, 1)
    assert new_message.shape == (B, 10)
    assert output_ie.shape == (B, 32)
    assert output_ae_decoder.shape == (B, 10)
    assert action_probs.shape == (B, 1, n_actions)
    assert value.shape == (B, 1, 1)
    assert bool(jnp.all(jnp.isfinite(action_probs)))
    assert bool(jnp.all(jnp.isfinite(value)))

    print("KERNEL_OK")
</pallas_src>

<mosaic_0001>
module attributes {stable_mosaic.version = 11 : i64} {
  func.func @kernel(%arg0: memref<128x9xf32, #tpu.memory_space<vmem>>, %arg1: memref<2x30xf32, #tpu.memory_space<vmem>>, %arg2: memref<2112x128xbf16, #tpu.memory_space<vmem>>, %arg3: memref<96x512xbf16, #tpu.memory_space<vmem>>, %arg4: memref<145x512xf32, #tpu.memory_space<vmem>>, %arg5: memref<2x128xf32, #tpu.memory_space<vmem>>, %arg6: memref<2x128xf32, #tpu.memory_space<vmem>>) attributes {dimension_semantics = [], scalar_prefetch = 0 : i64, scratch_operands = 1 : i64, tpu.core_type = #tpu.core_type<tc>} {
    %c0 = arith.constant 0 : index
    %c0_0 = arith.constant 0 : index
    %0 = vector.load %arg0[%c0, %c0_0] : memref<128x9xf32, #tpu.memory_space<vmem>>, vector<128x9xf32>
    %c0_1 = arith.constant 0 : index
    %c0_2 = arith.constant 0 : index
    %1 = vector.load %arg2[%c0_1, %c0_2] : memref<2112x128xbf16, #tpu.memory_space<vmem>>, vector<9x32xbf16>
    %2 = arith.truncf %0 : vector<128x9xf32> to vector<128x9xbf16>
    %cst = arith.constant dense<0.000000e+00> : vector<128x32xf32>
    %3 = tpu.matmul %2, %1, %cst {dimension_numbers = #tpu.dot_dimension_numbers<[1], [0], [0], [1], [0, 0, 1, 1], [], []>} : vector<128x9xbf16>, vector<9x32xbf16>, vector<128x32xf32> -> vector<128x32xf32>
    %c128 = arith.constant 128 : index
    %c0_3 = arith.constant 0 : index
    %4 = vector.load %arg4[%c128, %c0_3] : memref<145x512xf32, #tpu.memory_space<vmem>>, vector<1x32xf32>
    %5 = vector.broadcast %4 : vector<1x32xf32> to vector<128x32xf32>
    %6 = arith.addf %3, %5 : vector<128x32xf32>
    %cst_4 = arith.constant 0.000000e+00 : f32
    %7 = vector.broadcast %cst_4 : f32 to vector<128x32xf32>
    %8 = arith.cmpf ogt, %6, %7 : vector<128x32xf32>
    %9 = math.exp %6 : vector<128x32xf32>
    %cst_5 = arith.constant 1.000000e+00 : f32
    %10 = vector.broadcast %cst_5 : f32 to vector<128x32xf32>
    %11 = arith.subf %9, %10 : vector<128x32xf32>
    %12 = arith.select %8, %6, %11 : vector<128x32xi1>, vector<128x32xf32>
    %c129 = arith.constant 129 : index
    %c0_6 = arith.constant 0 : index
    %13 = vector.load %arg4[%c129, %c0_6] : memref<145x512xf32, #tpu.memory_space<vmem>>, vector<1x32xf32>
    %c880 = arith.constant 880 : index
    %c0_7 = arith.constant 0 : index
    %14 = vector.load %arg2[%c880, %c0_7] : memref<2112x128xbf16, #tpu.memory_space<vmem>>, vector<32x128xbf16>
    %c16 = arith.constant 16 : index
    %c0_8 = arith.constant 0 : index
    %15 = vector.load %arg2[%c16, %c0_8] : memref<2112x128xbf16, #tpu.memory_space<vmem>>, vector<32x32xbf16>
    %16 = arith.truncf %12 : vector<128x32xf32> to vector<128x32xbf16>
    %cst_9 = arith.constant dense<0.000000e+00> : vector<32x32xf32>
    %17 = tpu.matmul %14, %16, %cst_9 {dimension_numbers = #tpu.dot_dimension_numbers<[1], [0], [0], [1], [0, 0, 1, 1], [], []>} : vector<32x128xbf16>, vector<128x32xbf16>, vector<32x32xf32> -> vector<32x32xf32>
    %18 = arith.truncf %17 : vector<32x32xf32> to vector<32x32xbf16>
    %cst_10 = arith.constant dense<0.000000e+00> : vector<32x32xf32>
    %19 = tpu.matmul %18, %15, %cst_10 {dimension_numbers = #tpu.dot_dimension_numbers<[1], [0], [0], [1], [0, 0, 1, 1], [], []>} : vector<32x32xbf16>, vector<32x32xbf16>, vector<32x32xf32> -> vector<32x32xf32>
    %20 = vector.broadcast %13 : vector<1x32xf32> to vector<32x32xf32>
    %21 = arith.addf %20, %19 : vector<32x32xf32>
    %c912 = arith.constant 912 : index
    %c0_11 = arith.constant 0 : index
    %22 = vector.load %arg2[%c912, %c0_11] : memref<2112x128xbf16, #tpu.memory_space<vmem>>, vector<32x128xbf16>
    %c48 = arith.constant 48 : index
    %c0_12 = arith.constant 0 : index
    %23 = vector.load %arg2[%c48, %c0_12] : memref<2112x128xbf16, #tpu.memory_space<vmem>>, vector<32x32xbf16>
    %24 = arith.truncf %12 : vector<128x32xf32> to vector<128x32xbf16>
    %cst_13 = arith.constant dense<0.000000e+00> : vector<32x32xf32>
    %25 = tpu.matmul %22, %24, %cst_13 {dimension_numbers = #tpu.dot_dimension_numbers<[1], [0], [0], [1], [0, 0, 1, 1], [], []>} : vector<32x128xbf16>, vector<128x32xbf16>, vector<32x32xf32> -> vector<32x32xf32>
    %26 = arith.truncf %25 : vector<32x32xf32> to vector<32x32xbf16>
    %cst_14 = arith.constant dense<0.000000e+00> : vector<32x32xf32>
    %27 = tpu.matmul %26, %23, %cst_14 {dimension_numbers = #tpu.dot_dimension_numbers<[1], [0], [0], [1], [0, 0, 1, 1], [], []>} : vector<32x32xbf16>, vector<32x32xbf16>, vector<32x32xf32> -> vector<32x32xf32>
    %28 = arith.addf %21, %27 : vector<32x32xf32>
    %c944 = arith.constant 944 : index
    %c0_15 = arith.constant 0 : index
    %29 = vector.load %arg2[%c944, %c0_15] : memref<2112x128xbf16, #tpu.memory_space<vmem>>, vector<32x128xbf16>
    %c80 = arith.constant 80 : index
    %c0_16 = arith.constant 0 : index
    %30 = vector.load %arg2[%c80, %c0_16] : memref<2112x128xbf16, #tpu.memory_space<vmem>>, vector<32x32xbf16>
    %31 = arith.truncf %12 : vector<128x32xf32> to vector<128x32xbf16>
    %cst_17 = arith.constant dense<0.000000e+00> : vector<32x32xf32>
    %32 = tpu.matmul %29, %31, %cst_17 {dimension_numbers = #tpu.dot_dimension_numbers<[1], [0], [0], [1], [0, 0, 1, 1], [], []>} : vector<32x128xbf16>, vector<128x32xbf16>, vector<32x32xf32> -> vector<32x32xf32>
    %33 = arith.truncf %32 : vector<32x32xf32> to vector<32x32xbf16>
    %cst_18 = arith.constant dense<0.000000e+00> : vector<32x32xf32>
    %34 = tpu.matmul %33, %30, %cst_18 {dimension_numbers = #tpu.dot_dimension_numbers<[1], [0], [0], [1], [0, 0, 1, 1], [], []>} : vector<32x32xbf16>, vector<32x32xbf16>, vector<32x32xf32> -> vector<32x32xf32>
    %35 = arith.addf %28, %34 : vector<32x32xf32>
    %c976 = arith.constant 976 : index
    %c0_19 = arith.constant 0 : index
    %36 = vector.load %arg2[%c976, %c0_19] : memref<2112x128xbf16, #tpu.memory_space<vmem>>, vector<32x128xbf16>
    %c112 = arith.constant 112 : index
    %c0_20 = arith.constant 0 : index
    %37 = vector.load %arg2[%c112, %c0_20] : memref<2112x128xbf16, #tpu.memory_space<vmem>>, vector<32x32xbf16>
    %38 = arith.truncf %12 : vector<128x32xf32> to vector<128x32xbf16>
    %cst_21 = arith.constant dense<0.000000e+00> : vector<32x32xf32>
    %39 = tpu.matmul %36, %38, %cst_21 {dimension_numbers = #tpu.dot_dimension_numbers<[1], [0], [0], [1], [0, 0, 1, 1], [], []>} : vector<32x128xbf16>, vector<128x32xbf16>, vector<32x32xf32> -> vector<32x32xf32>
    %40 = arith.truncf %39 : vector<32x32xf32> to vector<32x32xbf16>
    %cst_22 = arith.constant dense<0.000000e+00> : vector<32x32xf32>
    %41 = tpu.matmul %40, %37, %cst_22 {dimension_numbers = #tpu.dot_dimension_numbers<[1], [0], [0], [1], [0, 0, 1, 1], [], []>} : vector<32x32xbf16>, vector<32x32xbf16>, vector<32x32xf32> -> vector<32x32xf32>
    %42 = arith.addf %35, %41 : vector<32x32xf32>
    %c1008 = arith.constant 1008 : index
    %c0_23 = arith.constant 0 : index
    %43 = vector.load %arg2[%c1008, %c0_23] : memref<2112x128xbf16, #tpu.memory_space<vmem>>, vector<32x128xbf16>
    %c144 = arith.constant 144 : index
    %c0_24 = arith.constant 0 : index
    %44 = vector.load %arg2[%c144, %c0_24] : memref<2112x128xbf16, #tpu.memory_space<vmem>>, vector<32x32xbf16>
    %45 = arith.truncf %12 : vector<128x32xf32> to vector<128x32xbf16>
    %cst_25 = arith.constant dense<0.000000e+00> : vector<32x32xf32>
    %46 = tpu.matmul %43, %45, %cst_25 {dimension_numbers = #tpu.dot_dimension_numbers<[1], [0], [0], [1], [0, 0, 1, 1], [], []>} : vector<32x128xbf16>, vector<128x32xbf16>, vector<32x32xf32> -> vector<32x32xf32>
    %47 = arith.truncf %46 : vector<32x32xf32> to vector<32x32xbf16>
    %cst_26 = arith.constant dense<0.000000e+00> : vector<32x32xf32>
    %48 = tpu.matmul %47, %44, %cst_26 {dimension_numbers = #tpu.dot_dimension_numbers<[1], [0], [0], [1], [0, 0, 1, 1], [], []>} : vector<32x32xbf16>, vector<32x32xbf16>, vector<32x32xf32> -> vector<32x32xf32>
    %49 = arith.addf %42, %48 : vector<32x32xf32>
    %c1040 = arith.constant 1040 : index
    %c0_27 = arith.constant 0 : index
    %50 = vector.load %arg2[%c1040, %c0_27] : memref<2112x128xbf16, #tpu.memory_space<vmem>>, vector<32x128xbf16>
    %c176 = arith.constant 176 : index
    %c0_28 = arith.constant 0 : index
    %51 = vector.load %arg2[%c176, %c0_28] : memref<2112x128xbf16, #tpu.memory_space<vmem>>, vector<32x32xbf16>
    %52 = arith.truncf %12 : vector<128x32xf32> to vector<128x32xbf16>
    %cst_29 = arith.constant dense<0.000000e+00> : vector<32x32xf32>
    %53 = tpu.matmul %50, %52, %cst_29 {dimension_numbers = #tpu.dot_dimension_numbers<[1], [0], [0], [1], [0, 0, 1, 1], [], []>} : vector<32x128xbf16>, vector<128x32xbf16>, vector<32x32xf32> -> vector<32x32xf32>
    %54 = arith.truncf %53 : vector<32x32xf32> to vector<32x32xbf16>
    %cst_30 = arith.constant dense<0.000000e+00> : vector<32x32xf32>
    %55 = tpu.matmul %54, %51, %cst_30 {dimension_numbers = #tpu.dot_dimension_numbers<[1], [0], [0], [1], [0, 0, 1, 1], [], []>} : vector<32x32xbf16>, vector<32x32xbf16>, vector<32x32xf32> -> vector<32x32xf32>
    %56 = arith.addf %49, %55 : vector<32x32xf32>
    %c1072 = arith.constant 1072 : index
    %c0_31 = arith.constant 0 : index
    %57 = vector.load %arg2[%c1072, %c0_31] : memref<2112x128xbf16, #tpu.memory_space<vmem>>, vector<32x128xbf16>
    %c208 = arith.constant 208 : index
    %c0_32 = arith.constant 0 : index
    %58 = vector.load %arg2[%c208, %c0_32] : memref<2112x128xbf16, #tpu.memory_space<vmem>>, vector<32x32xbf16>
    %59 = arith.truncf %12 : vector<128x32xf32> to vector<128x32xbf16>
    %cst_33 = arith.constant dense<0.000000e+00> : vector<32x32xf32>
    %60 = tpu.matmul %57, %59, %cst_33 {dimension_numbers = #tpu.dot_dimension_numbers<[1], [0], [0], [1], [0, 0, 1, 1], [], []>} : vector<32x128xbf16>, vector<128x32xbf16>, vector<32x32xf32> -> vector<32x32xf32>
    %61 = arith.truncf %60 : vector<32x32xf32> to vector<32x32xbf16>
    %cst_34 = arith.constant dense<0.000000e+00> : vector<32x32xf32>
    %62 = tpu.matmul %61, %58, %cst_34 {dimension_numbers = #tpu.dot_dimension_numbers<[1], [0], [0], [1], [0, 0, 1, 1], [], []>} : vector<32x32xbf16>, vector<32x32xbf16>, vector<32x32xf32> -> vector<32x32xf32>
    %63 = arith.addf %56, %62 : vector<32x32xf32>
    %c1104 = arith.constant 1104 : index
    %c0_35 = arith.constant 0 : index
    %64 = vector.load %arg2[%c1104, %c0_35] : memref<2112x128xbf16, #tpu.memory_space<vmem>>, vector<32x128xbf16>
    %c240 = arith.constant 240 : index
    %c0_36 = arith.constant 0 : index
    %65 = vector.load %arg2[%c240, %c0_36] : memref<2112x128xbf16, #tpu.memory_space<vmem>>, vector<32x32xbf16>
    %66 = arith.truncf %12 : vector<128x32xf32> to vector<128x32xbf16>
    %cst_37 = arith.constant dense<0.000000e+00> : vector<32x32xf32>
    %67 = tpu.matmul %64, %66, %cst_37 {dimension_numbers = #tpu.dot_dimension_numbers<[1], [0], [0], [1], [0, 0, 1, 1], [], []>} : vector<32x128xbf16>, vector<128x32xbf16>, vector<32x32xf32> -> vector<32x32xf32>
    %68 = arith.truncf %67 : vector<32x32xf32> to vector<32x32xbf16>
    %cst_38 = arith.constant dense<0.000000e+00> : vector<32x32xf32>
    %69 = tpu.matmul %68, %65, %cst_38 {dimension_numbers = #tpu.dot_dimension_numbers<[1], [0], [0], [1], [0, 0, 1, 1], [], []>} : vector<32x32xbf16>, vector<32x32xbf16>, vector<32x32xf32> -> vector<32x32xf32>
    %70 = arith.addf %63, %69 : vector<32x32xf32>
    %c1136 = arith.constant 1136 : index
    %c0_39 = arith.constant 0 : index
    %71 = vector.load %arg2[%c1136, %c0_39] : memref<2112x128xbf16, #tpu.memory_space<vmem>>, vector<32x128xbf16>
    %c272 = arith.constant 272 : index
    %c0_40 = arith.constant 0 : index
    %72 = vector.load %arg2[%c272, %c0_40] : memref<2112x128xbf16, #tpu.memory_space<vmem>>, vector<32x32xbf16>
    %73 = arith.truncf %12 : vector<128x32xf32> to vector<128x32xbf16>
    %cst_41 = arith.constant dense<0.000000e+00> : vector<32x32xf32>
    %74 = tpu.matmul %71, %73, %cst_41 {dimension_numbers = #tpu.dot_dimension_numbers<[1], [0], [0], [1], [0, 0, 1, 1], [], []>} : vector<32x128xbf16>, vector<128x32xbf16>, vector<32x32xf32> -> vector<32x32xf32>
    %75 = arith.truncf %74 : vector<32x32xf32> to vector<32x32xbf16>
    %cst_42 = arith.constant dense<0.000000e+00> : vector<32x32xf32>
    %76 = tpu.matmul %75, %72, %cst_42 {dimension_numbers = #tpu.dot_dimension_numbers<[1], [0], [0], [1], [0, 0, 1, 1], [], []>} : vector<32x32xbf16>, vector<32x32xbf16>, vector<32x32xf32> -> vector<32x32xf32>
    %77 = arith.addf %70, %76 : vector<32x32xf32>
    %cst_43 = arith.constant 0.000000e+00 : f32
    %78 = vector.broadcast %cst_43 : f32 to vector<32x32xf32>
    %79 = arith.cmpf ogt, %77, %78 : vector<32x32xf32>
    %80 = math.exp %77 : vector<32x32xf32>
    %cst_44 = arith.constant 1.000000e+00 : f32
    %81 = vector.broadcast %cst_44 : f32 to vector<32x32xf32>
    %82 = arith.subf %80, %81 : vector<32x32xf32>
    %83 = arith.select %79, %77, %82 : vector<32x32xi1>, vector<32x32xf32>
    %c130 = arith.constant 130 : index
    %c0_45 = arith.constant 0 : index
    %84 = vector.load %arg4[%c130, %c0_45] : memref<145x512xf32, #tpu.memory_space<vmem>>, vector<1x32xf32>
    %c1168 = arith.constant 1168 : index
    %c0_46 = arith.constant 0 : index
    %85 = vector.load %arg2[%c1168, %c0_46] : memref<2112x128xbf16, #tpu.memory_space<vmem>>, vector<8x32xbf16>
    %c304 = arith.constant 304 : index
    %c0_47 = arith.constant 0 : index
    %86 = vector.load %arg2[%c304, %c0_47] : memref<2112x128xbf16, #tpu.memory_space<vmem>>, vector<32x32xbf16>
    %87 = arith.truncf %83 : vector<32x32xf32> to vector<32x32xbf16>
    %cst_48 = arith.constant dense<0.000000e+00> : vector<8x32xf32>
    %88 = tpu.matmul %85, %87, %cst_48 {dimension_numbers = #tpu.dot_dimension_numbers<[1], [0], [0], [1], [0, 0, 1, 1], [], []>} : vector<8x32xbf16>, vector<32x32xbf16>, vector<8x32xf32> -> vector<8x32xf32>
    %89 = arith.truncf %88 : vector<8x32xf32> to vector<8x32xbf16>
    %cst_49 = arith.constant dense<0.000000e+00> : vector<8x32xf32>
    %90 = tpu.matmul %89, %86, %cst_49 {dimension_numbers = #tpu.dot_dimension_numbers<[1], [0], [0], [1], [0, 0, 1, 1], [], []>} : vector<8x32xbf16>, vector<32x32xbf16>, vector<8x32xf32> -> vector<8x32xf32>
    %91 = vector.broadcast %84 : vector<1x32xf32> to vector<8x32xf32>
    %92 = arith.addf %91, %90 : vector<8x32xf32>
    %c1184 = arith.constant 1184 : index
    %c0_50 = arith.constant 0 : index
    %93 = vector.load %arg2[%c1184, %c0_50] : memref<2112x128xbf16, #tpu.memory_space<vmem>>, vector<8x32xbf16>
    %c336 = arith.constant 336 : index
    %c0_51 = arith.constant 0 : index
    %94 = vector.load %arg2[%c336, %c0_51] : memref<2112x128xbf16, #tpu.memory_space<vmem>>, vector<32x32xbf16>
    %95 = arith.truncf %83 : vector<32x32xf32> to vector<32x32xbf16>
    %cst_52 = arith.constant dense<0.000000e+00> : vector<8x32xf32>
    %96 = tpu.matmul %93, %95, %cst_52 {dimension_numbers = #tpu.dot_dimension_numbers<[1], [0], [0], [1], [0, 0, 1, 1], [], []>} : vector<8x32xbf16>, vector<32x32xbf16>, vector<8x32xf32> -> vector<8x32xf32>
    %97 = arith.truncf %96 : vector<8x32xf32> to vector<8x32xbf16>
    %cst_53 = arith.constant dense<0.000000e+00> : vector<8x32xf32>
    %98 = tpu.matmul %97, %94, %cst_53 {dimension_numbers = #tpu.dot_dimension_numbers<[1], [0], [0], [1], [0, 0, 1, 1], [], []>} : vector<8x32xbf16>, vector<32x32xbf16>, vector<8x32xf32> -> vector<8x32xf32>
    %99 = arith.addf %92, %98 : vector<8x32xf32>
    %c1200 = arith.constant 1200 : index
    %c0_54 = arith.constant 0 : index
    %100 = vector.load %arg2[%c1200, %c0_54] : memref<2112x128xbf16, #tpu.memory_space<vmem>>, vector<8x32xbf16>
    %c368 = arith.constant 368 : index
    %c0_55 = arith.constant 0 : index
    %101 = vector.load %arg2[%c368, %c0_55] : memref<2112x128xbf16, #tpu.memory_space<vmem>>, vector<32x32xbf16>
    %102 = arith.truncf %83 : vector<32x32xf32> to vector<32x32xbf16>
    %cst_56 = arith.constant dense<0.000000e+00> : vector<8x32xf32>
    %103 = tpu.matmul %100, %102, %cst_56 {dimension_numbers = #tpu.dot_dimension_numbers<[1], [0], [0], [1], [0, 0, 1, 1], [], []>} : vector<8x32xbf16>, vector<32x32xbf16>, vector<8x32xf32> -> vector<8x32xf32>
    %104 = arith.truncf %103 : vector<8x32xf32> to vector<8x32xbf16>
    %cst_57 = arith.constant dense<0.000000e+00> : vector<8x32xf32>
    %105 = tpu.matmul %104, %101, %cst_57 {dimension_numbers = #tpu.dot_dimension_numbers<[1], [0], [0], [1], [0, 0, 1, 1], [], []>} : vector<8x32xbf16>, vector<32x32xbf16>, vector<8x32xf32> -> vector<8x32xf32>
    %106 = arith.addf %99, %105 : vector<8x32xf32>
    %c1216 = arith.constant 1216 : index
    %c0_58 = arith.constant 0 : index
    %107 = vector.load %arg2[%c1216, %c0_58] : memref<2112x128xbf16, #tpu.memory_space<vmem>>, vector<8x32xbf16>
    %c400 = arith.constant 400 : index
    %c0_59 = arith.constant 0 : index
    %108 = vector.load %arg2[%c400, %c0_59] : memref<2112x128xbf16, #tpu.memory_space<vmem>>, vector<32x32xbf16>
    %109 = arith.truncf %83 : vector<32x32xf32> to vector<32x32xbf16>
    %cst_60 = arith.constant dense<0.000000e+00> : vector<8x32xf32>
    %110 = tpu.matmul %107, %109, %cst_60 {dimension_numbers = #tpu.dot_dimension_numbers<[1], [0], [0], [1], [0, 0, 1, 1], [], []>} : vector<8x32xbf16>, vector<32x32xbf16>, vector<8x32xf32> -> vector<8x32xf32>
    %111 = arith.truncf %110 : vector<8x32xf32> to vector<8x32xbf16>
    %cst_61 = arith.constant dense<0.000000e+00> : vector<8x32xf32>
    %112 = tpu.matmul %111, %108, %cst_61 {dimension_numbers = #tpu.dot_dimension_numbers<[1], [0], [0], [1], [0, 0, 1, 1], [], []>} : vector<8x32xbf16>, vector<32x32xbf16>, vector<8x32xf32> -> vector<8x32xf32>
    %113 = arith.addf %106, %112 : vector<8x32xf32>
    %c1232 = arith.constant 1232 : index
    %c0_62 = arith.constant 0 : index
    %114 = vector.load %arg2[%c1232, %c0_62] : memref<2112x128xbf16, #tpu.memory_space<vmem>>, vector<8x32xbf16>
    %c432 = arith.constant 432 : index
    %c0_63 = arith.constant 0 : index
    %115 = vector.load %arg2[%c432, %c0_63] : memref<2112x128xbf16, #tpu.memory_space<vmem>>, vector<32x32xbf16>
    %116 = arith.truncf %83 : vector<32x32xf32> to vector<32x32xbf16>
    %cst_64 = arith.constant dense<0.000000e+00> : vector<8x32xf32>
    %117 = tpu.matmul %114, %116, %cst_64 {dimension_numbers = #tpu.dot_dimension_numbers<[1], [0], [0], [1], [0, 0, 1, 1], [], []>} : vector<8x32xbf16>, vector<32x32xbf16>, vector<8x32xf32> -> vector<8x32xf32>
    %118 = arith.truncf %117 : vector<8x32xf32> to vector<8x32xbf16>
    %cst_65 = arith.constant dense<0.000000e+00> : vector<8x32xf32>
    %119 = tpu.matmul %118, %115, %cst_65 {dimension_numbers = #tpu.dot_dimension_numbers<[1], [0], [0], [1], [0, 0, 1, 1], [], []>} : vector<8x32xbf16>, vector<32x32xbf16>, vector<8x32xf32> -> vector<8x32xf32>
    %120 = arith.addf %113, %119 : vector<8x32xf32>
    %c1248 = arith.constant 1248 : index
    %c0_66 = arith.constant 0 : index
    %121 = vector.load %arg2[%c1248, %c0_66] : memref<2112x128xbf16, #tpu.memory_space<vmem>>, vector<8x32xbf16>
    %c464 = arith.constant 464 : index
    %c0_67 = arith.constant 0 : index
    %122 = vector.load %arg2[%c464, %c0_67] : memref<2112x128xbf16, #tpu.memory_space<vmem>>, vector<32x32xbf16>
    %123 = arith.truncf %83 : vector<32x32xf32> to vector<32x32xbf16>
    %cst_68 = arith.constant dense<0.000000e+00> : vector<8x32xf32>
    %124 = tpu.matmul %121, %123, %cst_68 {dimension_numbers = #tpu.dot_dimension_numbers<[1], [0], [0], [1], [0, 0, 1, 1], [], []>} : vector<8x32xbf16>, vector<32x32xbf16>, vector<8x32xf32> -> vector<8x32xf32>
    %125 = arith.truncf %124 : vector<8x32xf32> to vector<8x32xbf16>
    %cst_69 = arith.constant dense<0.000000e+00> : vector<8x32xf32>
    %126 = tpu.matmul %125, %122, %cst_69 {dimension_numbers = #tpu.dot_dimension_numbers<[1], [0], [0], [1], [0, 0, 1, 1], [], []>} : vector<8x32xbf16>, vector<32x32xbf16>, vector<8x32xf32> -> vector<8x32xf32>
    %127 = arith.addf %120, %126 : vector<8x32xf32>
    %c1264 = arith.constant 1264 : index
    %c0_70 = arith.constant 0 : index
    %128 = vector.load %arg2[%c1264, %c0_70] : memref<2112x128xbf16, #tpu.memory_space<vmem>>, vector<8x32xbf16>
    %c496 = arith.constant 496 : index
    %c0_71 = arith.constant 0 : index
    %129 = vector.load %arg2[%c496, %c0_71] : memref<2112x128xbf16, #tpu.memory_space<vmem>>, vector<32x32xbf16>
    %130 = arith.truncf %83 : vector<32x32xf32> to vector<32x32xbf16>
    %cst_72 = arith.constant dense<0.000000e+00> : vector<8x32xf32>
    %131 = tpu.matmul %128, %130, %cst_72 {dimension_numbers = #tpu.dot_dimension_numbers<[1], [0], [0], [1], [0, 0, 1, 1], [], []>} : vector<8x32xbf16>, vector<32x32xbf16>, vector<8x32xf32> -> vector<8x32xf32>
    %132 = arith.truncf %131 : vector<8x32xf32> to vector<8x32xbf16>
    %cst_73 = arith.constant dense<0.000000e+00> : vector<8x32xf32>
    %133 = tpu.matmul %132, %129, %cst_73 {dimension_numbers = #tpu.dot_dimension_numbers<[1], [0], [0], [1], [0, 0, 1, 1], [], []>} : vector<8x32xbf16>, vector<32x32xbf16>, vector<8x32xf32> -> vector<8x32xf32>
    %134 = arith.addf %127, %133 : vector<8x32xf32>
    %c1280 = arith.constant 1280 : index
    %c0_74 = arith.constant 0 : index
    %135 = vector.load %arg2[%c1280, %c0_74] : memref<2112x128xbf16, #tpu.memory_space<vmem>>, vector<8x32xbf16>
    %c528 = arith.constant 528 : index
    %c0_75 = arith.constant 0 : index
    %136 = vector.load %arg2[%c528, %c0_75] : memref<2112x128xbf16, #tpu.memory_space<vmem>>, vector<32x32xbf16>
    %137 = arith.truncf %83 : vector<32x32xf32> to vector<32x32xbf16>
    %cst_76 = arith.constant dense<0.000000e+00> : vector<8x32xf32>
    %138 = tpu.matmul %135, %137, %cst_76 {dimension_numbers = #tpu.dot_dimension_numbers<[1], [0], [0], [1], [0, 0, 1, 1], [], []>} : vector<8x32xbf16>, vector<32x32xbf16>, vector<8x32xf32> -> vector<8x32xf32>
    %139 = arith.truncf %138 : vector<8x32xf32> to vector<8x32xbf16>
    %cst_77 = arith.constant dense<0.000000e+00> : vector<8x32xf32>
    %140 = tpu.matmul %139, %136, %cst_77 {dimension_numbers = #tpu.dot_dimension_numbers<[1], [0], [0], [1], [0, 0, 1, 1], [], []>} : vector<8x32xbf16>, vector<32x32xbf16>, vector<8x32xf32> -> vector<8x32xf32>
    %141 = arith.addf %134, %140 : vector<8x32xf32>
    %c1296 = arith.constant 1296 : index
    %c0_78 = arith.constant 0 : index
    %142 = vector.load %arg2[%c1296, %c0_78] : memref<2112x128xbf16, #tpu.memory_space<vmem>>, vector<8x32xbf16>
    %c560 = arith.constant 560 : index
    %c0_79 = arith.constant 0 : index
    %143 = vector.load %arg2[%c560, %c0_79] : memref<2112x128xbf16, #tpu.memory_space<vmem>>, vector<32x32xbf16>
    %144 = arith.truncf %83 : vector<32x32xf32> to vector<32x32xbf16>
    %cst_80 = arith.constant dense<0.000000e+00> : vector<8x32xf32>
    %145 = tpu.matmul %142, %144, %cst_80 {dimension_numbers = #tpu.dot_dimension_numbers<[1], [0], [0], [1], [0, 0, 1, 1], [], []>} : vector<8x32xbf16>, vector<32x32xbf16>, vector<8x32xf32> -> vector<8x32xf32>
    %146 = arith.truncf %145 : vector<8x32xf32> to vector<8x32xbf16>
    %cst_81 = arith.constant dense<0.000000e+00> : vector<8x32xf32>
    %147 = tpu.matmul %146, %143, %cst_81 {dimension_numbers = #tpu.dot_dimension_numbers<[1], [0], [0], [1], [0, 0, 1, 1], [], []>} : vector<8x32xbf16>, vector<32x32xbf16>, vector<8x32xf32> -> vector<8x32xf32>
    %148 = arith.addf %141, %147 : vector<8x32xf32>
    %cst_82 = arith.constant 0.000000e+00 : f32
    %149 = vector.broadcast %cst_82 : f32 to vector<8x32xf32>
    %150 = arith.cmpf ogt, %148, %149 : vector<8x32xf32>
    %151 = math.exp %148 : vector<8x32xf32>
    %cst_83 = arith.constant 1.000000e+00 : f32
    %152 = vector.broadcast %cst_83 : f32 to vector<8x32xf32>
    %153 = arith.subf %151, %152 : vector<8x32xf32>
    %154 = arith.select %150, %148, %153 : vector<8x32xi1>, vector<8x32xf32>
    %c131 = arith.constant 131 : index
    %c0_84 = arith.constant 0 : index
    %155 = vector.load %arg4[%c131, %c0_84] : memref<145x512xf32, #tpu.memory_space<vmem>>, vector<1x32xf32>
    %c1312 = arith.constant 1312 : index
    %c0_85 = arith.constant 0 : index
    %156 = vector.load %arg2[%c1312, %c0_85] : memref<2112x128xbf16, #tpu.memory_space<vmem>>, vector<2x8xbf16>
    %c592 = arith.constant 592 : index
    %c0_86 = arith.constant 0 : index
    %157 = vector.load %arg2[%c592, %c0_86] : memref<2112x128xbf16, #tpu.memory_space<vmem>>, vector<32x32xbf16>
    %158 = arith.truncf %154 : vector<8x32xf32> to vector<8x32xbf16>
    %cst_87 = arith.constant dense<0.000000e+00> : vector<2x32xf32>
    %159 = tpu.matmul %156, %158, %cst_87 {dimension_numbers = #tpu.dot_dimension_numbers<[1], [0], [0], [1], [0, 0, 1, 1], [], []>} : vector<2x8xbf16>, vector<8x32xbf16>, vector<2x32xf32> -> vector<2x32xf32>
    %160 = arith.truncf %159 : vector<2x32xf32> to vector<2x32xbf16>
    %cst_88 = arith.constant dense<0.000000e+00> : vector<2x32xf32>
    %161 = tpu.matmul %160, %157, %cst_88 {dimension_numbers = #tpu.dot_dimension_numbers<[1], [0], [0], [1], [0, 0, 1, 1], [], []>} : vector<2x32xbf16>, vector<32x32xbf16>, vector<2x32xf32> -> vector<2x32xf32>
    %162 = vector.broadcast %155 : vector<1x32xf32> to vector<2x32xf32>
    %163 = arith.addf %162, %161 : vector<2x32xf32>
    %c1328 = arith.constant 1328 : index
    %c0_89 = arith.constant 0 : index
    %164 = vector.load %arg2[%c1328, %c0_89] : memref<2112x128xbf16, #tpu.memory_space<vmem>>, vector<2x8xbf16>
    %c624 = arith.constant 624 : index
    %c0_90 = arith.constant 0 : index
    %165 = vector.load %arg2[%c624, %c0_90] : memref<2112x128xbf16, #tpu.memory_space<vmem>>, vector<32x32xbf16>
    %166 = arith.truncf %154 : vector<8x32xf32> to vector<8x32xbf16>
    %cst_91 = arith.constant dense<0.000000e+00> : vector<2x32xf32>
    %167 = tpu.matmul %164, %166, %cst_91 {dimension_numbers = #tpu.dot_dimension_numbers<[1], [0], [0], [1], [0, 0, 1, 1], [], []>} : vector<2x8xbf16>, vector<8x32xbf16>, vector<2x32xf32> -> vector<2x32xf32>
    %168 = arith.truncf %167 : vector<2x32xf32> to vector<2x32xbf16>
    %cst_92 = arith.constant dense<0.000000e+00> : vector<2x32xf32>
    %169 = tpu.matmul %168, %165, %cst_92 {dimension_numbers = #tpu.dot_dimension_numbers<[1], [0], [0], [1], [0, 0, 1, 1], [], []>} : vector<2x32xbf16>, vector<32x32xbf16>, vector<2x32xf32> -> vector<2x32xf32>
    %170 = arith.addf %163, %169 : vector<2x32xf32>
    %c1344 = arith.constant 1344 : index
    %c0_93 = arith.constant 0 : index
    %171 = vector.load %arg2[%c1344, %c0_93] : memref<2112x128xbf16, #tpu.memory_space<vmem>>, vector<2x8xbf16>
    %c656 = arith.constant 656 : index
    %c0_94 = arith.constant 0 : index
    %172 = vector.load %arg2[%c656, %c0_94] : memref<2112x128xbf16, #tpu.memory_space<vmem>>, vector<32x32xbf16>
    %173 = arith.truncf %154 : vector<8x32xf32> to vector<8x32xbf16>
    %cst_95 = arith.constant dense<0.000000e+00> : vector<2x32xf32>
    %174 = tpu.matmul %171, %173, %cst_95 {dimension_numbers = #tpu.dot_dimension_numbers<[1], [0], [0], [1], [0, 0, 1, 1], [], []>} : vector<2x8xbf16>, vector<8x32xbf16>, vector<2x32xf32> -> vector<2x32xf32>
    %175 = arith.truncf %174 : vector<2x32xf32> to vector<2x32xbf16>
    %cst_96 = arith.constant dense<0.000000e+00> : vector<2x32xf32>
    %176 = tpu.matmul %175, %172, %cst_96 {dimension_numbers = #tpu.dot_dimension_numbers<[1], [0], [0], [1], [0, 0, 1, 1], [], []>} : vector<2x32xbf16>, vector<32x32xbf16>, vector<2x32xf32> -> vector<2x32xf32>
    %177 = arith.addf %170, %176 : vector<2x32xf32>
    %c1360 = arith.constant 1360 : index
    %c0_97 = arith.constant 0 : index
    %178 = vector.load %arg2[%c1360, %c0_97] : memref<2112x128xbf16, #tpu.memory_space<vmem>>, vector<2x8xbf16>
    %c688 = arith.constant 688 : index
    %c0_98 = arith.constant 0 : index
    %179 = vector.load %arg2[%c688, %c0_98] : memref<2112x128xbf16, #tpu.memory_space<vmem>>, vector<32x32xbf16>
    %180 = arith.truncf %154 : vector<8x32xf32> to vector<8x32xbf16>
    %cst_99 = arith.constant dense<0.000000e+00> : vector<2x32xf32>
    %181 = tpu.matmul %178, %180, %cst_99 {dimension_numbers = #tpu.dot_dimension_numbers<[1], [0], [0], [1], [0, 0, 1, 1], [], []>} : vector<2x8xbf16>, vector<8x32xbf16>, vector<2x32xf32> -> vector<2x32xf32>
    %182 = arith.truncf %181 : vector<2x32xf32> to vector<2x32xbf16>
    %cst_100 = arith.constant dense<0.000000e+00> : vector<2x32xf32>
    %183 = tpu.matmul %182, %179, %cst_100 {dimension_numbers = #tpu.dot_dimension_numbers<[1], [0], [0], [1], [0, 0, 1, 1], [], []>} : vector<2x32xbf16>, vector<32x32xbf16>, vector<2x32xf32> -> vector<2x32xf32>
    %184 = arith.addf %177, %183 : vector<2x32xf32>
    %c1376 = arith.constant 1376 : index
    %c0_101 = arith.constant 0 : index
    %185 = vector.load %arg2[%c1376, %c0_101] : memref<2112x128xbf16, #tpu.memory_space<vmem>>, vector<2x8xbf16>
    %c720 = arith.constant 720 : index
    %c0_102 = arith.constant 0 : index
    %186 = vector.load %arg2[%c720, %c0_102] : memref<2112x128xbf16, #tpu.memory_space<vmem>>, vector<32x32xbf16>
    %187 = arith.truncf %154 : vector<8x32xf32> to vector<8x32xbf16>
    %cst_103 = arith.constant dense<0.000000e+00> : vector<2x32xf32>
    %188 = tpu.matmul %185, %187, %cst_103 {dimension_numbers = #tpu.dot_dimension_numbers<[1], [0], [0], [1], [0, 0, 1, 1], [], []>} : vector<2x8xbf16>, vector<8x32xbf16>, vector<2x32xf32> -> vector<2x32xf32>
    %189 = arith.truncf %188 : vector<2x32xf32> to vector<2x32xbf16>
    %cst_104 = arith.constant dense<0.000000e+00> : vector<2x32xf32>
    %190 = tpu.matmul %189, %186, %cst_104 {dimension_numbers = #tpu.dot_dimension_numbers<[1], [0], [0], [1], [0, 0, 1, 1], [], []>} : vector<2x32xbf16>, vector<32x32xbf16>, vector<2x32xf32> -> vector<2x32xf32>
    %191 = arith.addf %184, %190 : vector<2x32xf32>
    %c1392 = arith.constant 1392 : index
    %c0_105 = arith.constant 0 : index
    %192 = vector.load %arg2[%c1392, %c0_105] : memref<2112x128xbf16, #tpu.memory_space<vmem>>, vector<2x8xbf16>
    %c752 = arith.constant 752 : index
    %c0_106 = arith.constant 0 : index
    %193 = vector.load %arg2[%c752, %c0_106] : memref<2112x128xbf16, #tpu.memory_space<vmem>>, vector<32x32xbf16>
    %194 = arith.truncf %154 : vector<8x32xf32> to vector<8x32xbf16>
    %cst_107 = arith.constant dense<0.000000e+00> : vector<2x32xf32>
    %195 = tpu.matmul %192, %194, %cst_107 {dimension_numbers = #tpu.dot_dimension_numbers<[1], [0], [0], [1], [0, 0, 1, 1], [], []>} : vector<2x8xbf16>, vector<8x32xbf16>, vector<2x32xf32> -> vector<2x32xf32>
    %196 = arith.truncf %195 : vector<2x32xf32> to vector<2x32xbf16>
    %cst_108 = arith.constant dense<0.000000e+00> : vector<2x32xf32>
    %197 = tpu.matmul %196, %193, %cst_108 {dimension_numbers = #tpu.dot_dimension_numbers<[1], [0], [0], [1], [0, 0, 1, 1], [], []>} : vector<2x32xbf16>, vector<32x32xbf16>, vector<2x32xf32> -> vector<2x32xf32>
    %198 = arith.addf %191, %197 : vector<2x32xf32>
    %c1408 = arith.constant 1408 : index
    %c0_109 = arith.constant 0 : index
    %199 = vector.load %arg2[%c1408, %c0_109] : memref<2112x128xbf16, #tpu.memory_space<vmem>>, vector<2x8xbf16>
    %c784 = arith.constant 784 : index
    %c0_110 = arith.constant 0 : index
    %200 = vector.load %arg2[%c784, %c0_110] : memref<2112x128xbf16, #tpu.memory_space<vmem>>, vector<32x32xbf16>
    %201 = arith.truncf %154 : vector<8x32xf32> to vector<8x32xbf16>
    %cst_111 = arith.constant dense<0.000000e+00> : vector<2x32xf32>
    %202 = tpu.matmul %199, %201, %cst_111 {dimension_numbers = #tpu.dot_dimension_numbers<[1], [0], [0], [1], [0, 0, 1, 1], [], []>} : vector<2x8xbf16>, vector<8x32xbf16>, vector<2x32xf32> -> vector<2x32xf32>
    %203 = arith.truncf %202 : vector<2x32xf32> to vector<2x32xbf16>
    %cst_112 = arith.constant dense<0.000000e+00> : vector<2x32xf32>
    %204 = tpu.matmul %203, %200, %cst_112 {dimension_numbers = #tpu.dot_dimension_numbers<[1], [0], [0], [1], [0, 0, 1, 1], [], []>} : vector<2x32xbf16>, vector<32x32xbf16>, vector<2x32xf32> -> vector<2x32xf32>
    %205 = arith.addf %198, %204 : vector<2x32xf32>
    %c1424 = arith.constant 1424 : index
    %c0_113 = arith.constant 0 : index
    %206 = vector.load %arg2[%c1424, %c0_113] : memref<2112x128xbf16, #tpu.memory_space<vmem>>, vector<2x8xbf16>
    %c816 = arith.constant 816 : index
    %c0_114 = arith.constant 0 : index
    %207 = vector.load %arg2[%c816, %c0_114] : memref<2112x128xbf16, #tpu.memory_space<vmem>>, vector<32x32xbf16>
    %208 = arith.truncf %154 : vector<8x32xf32> to vector<8x32xbf16>
    %cst_115 = arith.constant dense<0.000000e+00> : vector<2x32xf32>
    %209 = tpu.matmul %206, %208, %cst_115 {dimension_numbers = #tpu.dot_dimension_numbers<[1], [0], [0], [1], [0, 0, 1, 1], [], []>} : vector<2x8xbf16>, vector<8x32xbf16>, vector<2x32xf32> -> vector<2x32xf32>
    %210 = arith.truncf %209 : vector<2x32xf32> to vector<2x32xbf16>
    %cst_116 = arith.constant dense<0.000000e+00> : vector<2x32xf32>
    %211 = tpu.matmul %210, %207, %cst_116 {dimension_numbers = #tpu.dot_dimension_numbers<[1], [0], [0], [1], [0, 0, 1, 1], [], []>} : vector<2x32xbf16>, vector<32x32xbf16>, vector<2x32xf32> -> vector<2x32xf32>
    %212 = arith.addf %205, %211 : vector<2x32xf32>
    %c1440 = arith.constant 1440 : index
    %c0_117 = arith.constant 0 : index
    %213 = vector.load %arg2[%c1440, %c0_117] : memref<2112x128xbf16, #tpu.memory_space<vmem>>, vector<2x8xbf16>
    %c848 = arith.constant 848 : index
    %c0_118 = arith.constant 0 : index
    %214 = vector.load %arg2[%c848, %c0_118] : memref<2112x128xbf16, #tpu.memory_space<vmem>>, vector<32x32xbf16>
    %215 = arith.truncf %154 : vector<8x32xf32> to vector<8x32xbf16>
    %cst_119 = arith.constant dense<0.000000e+00> : vector<2x32xf32>
    %216 = tpu.matmul %213, %215, %cst_119 {dimension_numbers = #tpu.dot_dimension_numbers<[1], [0], [0], [1], [0, 0, 1, 1], [], []>} : vector<2x8xbf16>, vector<8x32xbf16>, vector<2x32xf32> -> vector<2x32xf32>
    %217 = arith.truncf %216 : vector<2x32xf32> to vector<2x32xbf16>
    %cst_120 = arith.constant dense<0.000000e+00> : vector<2x32xf32>
    %218 = tpu.matmul %217, %214, %cst_120 {dimension_numbers = #tpu.dot_dimension_numbers<[1], [0], [0], [1], [0, 0, 1, 1], [], []>} : vector<2x32xbf16>, vector<32x32xbf16>, vector<2x32xf32> -> vector<2x32xf32>
    %219 = arith.addf %212, %218 : vector<2x32xf32>
    %cst_121 = arith.constant 0.000000e+00 : f32
    %220 = vector.broadcast %cst_121 : f32 to vector<2x32xf32>
    %221 = arith.cmpf ogt, %219, %220 : vector<2x32xf32>
    %222 = math.exp %219 : vector<2x32xf32>
    %cst_122 = arith.constant 1.000000e+00 : f32
    %223 = vector.broadcast %cst_122 : f32 to vector<2x32xf32>
    %224 = arith.subf %222, %223 : vector<2x32xf32>
    %225 = arith.select %221, %219, %224 : vector<2x32xi1>, vector<2x32xf32>
    %c0_123 = arith.constant 0 : index
    %c0_124 = arith.constant 0 : index
    %226 = vector.load %arg1[%c0_123, %c0_124] : memref<2x30xf32, #tpu.memory_space<vmem>>, vector<2x30xf32>
    %c1920 = arith.constant 1920 : index
    %c0_125 = arith.constant 0 : index
    %227 = vector.load %arg2[%c1920, %c0_125] : memref<2112x128xbf16, #tpu.memory_space<vmem>>, vector<30x32xbf16>
    %228 = arith.truncf %226 : vector<2x30xf32> to vector<2x30xbf16>
    %cst_126 = arith.constant dense<0.000000e+00> : vector<2x32xf32>
    %229 = tpu.matmul %228, %227, %cst_126 {dimension_numbers = #tpu.dot_dimension_numbers<[1], [0], [0], [1], [0, 0, 1, 1], [], []>} : vector<2x30xbf16>, vector<30x32xbf16>, vector<2x32xf32> -> vector<2x32xf32>
    %c140 = arith.constant 140 : index
    %c0_127 = arith.constant 0 : index
    %230 = vector.load %arg4[%c140, %c0_127] : memref<145x512xf32, #tpu.memory_space<vmem>>, vector<1x32xf32>
    %231 = vector.broadcast %230 : vector<1x32xf32> to vector<2x32xf32>
    %232 = arith.addf %229, %231 : vector<2x32xf32>
    %cst_128 = arith.constant 0.000000e+00 : f32
    %233 = vector.broadcast %cst_128 : f32 to vector<2x32xf32>
    %234 = arith.maximumf %232, %233 : vector<2x32xf32>
    %c1952 = arith.constant 1952 : index
    %c0_129 = arith.constant 0 : index
    %235 = vector.load %arg2[%c1952, %c0_129] : memref<2112x128xbf16, #tpu.memory_space<vmem>>, vector<32x64xbf16>
    %236 = arith.truncf %234 : vector<2x32xf32> to vector<2x32xbf16>
    %cst_130 = arith.constant dense<0.000000e+00> : vector<2x64xf32>
    %237 = tpu.matmul %236, %235, %cst_130 {dimension_numbers = #tpu.dot_dimension_numbers<[1], [0], [0], [1], [0, 0, 1, 1], [], []>} : vector<2x32xbf16>, vector<32x64xbf16>, vector<2x64xf32> -> vector<2x64xf32>
    %c141 = arith.constant 141 : index
    %c0_131 = arith.constant 0 : index
    %238 = vector.load %arg4[%c141, %c0_131] : memref<145x512xf32, #tpu.memory_space<vmem>>, vector<1x64xf32>
    %239 = vector.broadcast %238 : vector<1x64xf32> to vector<2x64xf32>
    %240 = arith.addf %237, %239 : vector<2x64xf32>
    %cst_132 = arith.constant 0.000000e+00 : f32
    %241 = vector.broadcast %cst_132 : f32 to vector<2x64xf32>
    %242 = arith.maximumf %240, %241 : vector<2x64xf32>
    %243 = arith.truncf %225 : vector<2x32xf32> to vector<2x32xbf16>
    %c0_133 = arith.constant 0 : index
    %c0_134 = arith.constant 0 : index
    %244 = vector.load %arg3[%c0_133, %c0_134] : memref<96x512xbf16, #tpu.memory_space<vmem>>, vector<32x512xbf16>
    %cst_135 = arith.constant dense<0.000000e+00> : vector<2x512xf32>
    %245 = tpu.matmul %243, %244, %cst_135 {dimension_numbers = #tpu.dot_dimension_numbers<[1], [0], [0], [1], [0, 0, 1, 1], [], []>} : vector<2x32xbf16>, vector<32x512xbf16>, vector<2x512xf32> -> vector<2x512xf32>
    %c132 = arith.constant 132 : index
    %c0_136 = arith.constant 0 : index
    %246 = vector.load %arg4[%c132, %c0_136] : memref<145x512xf32, #tpu.memory_space<vmem>>, vector<1x512xf32>
    %247 = vector.broadcast %246 : vector<1x512xf32> to vector<2x512xf32>
    %248 = arith.addf %245, %247 : vector<2x512xf32>
    %249 = vector.extract_strided_slice %248 {offsets = [0, 0], sizes = [2, 128], strides = [1, 1]} : vector<2x512xf32> to vector<2x128xf32>
    %cst_137 = arith.constant 0.000000e+00 : f32
    %250 = vector.broadcast %cst_137 : f32 to vector<2x128xf32>
    %251 = arith.maximumf %249, %250 : vector<2x128xf32>
    %252 = vector.extract_strided_slice %248 {offsets = [0, 128], sizes = [2, 384], strides = [1, 1]} : vector<2x512xf32> to vector<2x384xf32>
    %c32 = arith.constant 32 : index
    %c0_138 = arith.constant 0 : index
    %253 = vector.load %arg3[%c32, %c0_138] : memref<96x512xbf16, #tpu.memory_space<vmem>>, vector<64x384xbf16>
    %254 = arith.truncf %242 : vector<2x64xf32> to vector<2x64xbf16>
    %cst_139 = arith.constant dense<0.000000e+00> : vector<2x384xf32>
    %255 = tpu.matmul %254, %253, %cst_139 {dimension_numbers = #tpu.dot_dimension_numbers<[1], [0], [0], [1], [0, 0, 1, 1], [], []>} : vector<2x64xbf16>, vector<64x384xbf16>, vector<2x384xf32> -> vector<2x384xf32>
    %256 = arith.addf %252, %255 : vector<2x384xf32>
    %c1456 = arith.constant 1456 : index
    %c0_140 = arith.constant 0 : index
    %257 = vector.load %arg2[%c1456, %c0_140] : memref<2112x128xbf16, #tpu.memory_space<vmem>>, vector<128x64xbf16>
    %258 = arith.truncf %251 : vector<2x128xf32> to vector<2x128xbf16>
    %cst_141 = arith.constant dense<0.000000e+00> : vector<2x64xf32>
    %259 = tpu.matmul %258, %257, %cst_141 {dimension_numbers = #tpu.dot_dimension_numbers<[1], [0], [0], [1], [0, 0, 1, 1], [], []>} : vector<2x128xbf16>, vector<128x64xbf16>, vector<2x64xf32> -> vector<2x64xf32>
    %c133 = arith.constant 133 : index
    %c0_142 = arith.constant 0 : index
    %260 = vector.load %arg4[%c133, %c0_142] : memref<145x512xf32, #tpu.memory_space<vmem>>, vector<1x64xf32>
    %261 = vector.broadcast %260 : vector<1x64xf32> to vector<2x64xf32>
    %262 = arith.addf %259, %261 : vector<2x64xf32>
    %cst_143 = arith.constant 0.000000e+00 : f32
    %263 = vector.broadcast %cst_143 : f32 to vector<2x64xf32>
    %264 = arith.maximumf %262, %263 : vector<2x64xf32>
    %c1584 = arith.constant 1584 : index
    %c0_144 = arith.constant 0 : index
    %265 = vector.load %arg2[%c1584, %c0_144] : memref<2112x128xbf16, #tpu.memory_space<vmem>>, vector<64x32xbf16>
    %266 = arith.truncf %264 : vector<2x64xf32> to vector<2x64xbf16>
    %cst_145 = arith.constant dense<0.000000e+00> : vector<2x32xf32>
    %267 = tpu.matmul %266, %265, %cst_145 {dimension_numbers = #tpu.dot_dimension_numbers<[1], [0], [0], [1], [0, 0, 1, 1], [], []>} : vector<2x64xbf16>, vector<64x32xbf16>, vector<2x32xf32> -> vector<2x32xf32>
    %c134 = arith.constant 134 : index
    %c0_146 = arith.constant 0 : index
    %268 = vector.load %arg4[%c134, %c0_146] : memref<145x512xf32, #tpu.memory_space<vmem>>, vector<1x32xf32>
    %269 = vector.broadcast %268 : vector<1x32xf32> to vector<2x32xf32>
    %270 = arith.addf %267, %269 : vector<2x32xf32>
    %cst_147 = arith.constant 0.000000e+00 : f32
    %271 = vector.broadcast %cst_147 : f32 to vector<2x32xf32>
    %272 = arith.maximumf %270, %271 : vector<2x32xf32>
    %c1648 = arith.constant 1648 : index
    %c0_148 = arith.constant 0 : index
    %273 = vector.load %arg2[%c1648, %c0_148] : memref<2112x128xbf16, #tpu.memory_space<vmem>>, vector<32x10xbf16>
    %274 = arith.truncf %272 : vector<2x32xf32> to vector<2x32xbf16>
    %cst_149 = arith.constant dense<0.000000e+00> : vector<2x10xf32>
    %275 = tpu.matmul %274, %273, %cst_149 {dimension_numbers = #tpu.dot_dimension_numbers<[1], [0], [0], [1], [0, 0, 1, 1], [], []>} : vector<2x32xbf16>, vector<32x10xbf16>, vector<2x10xf32> -> vector<2x10xf32>
    %c135 = arith.constant 135 : index
    %c0_150 = arith.constant 0 : index
    %276 = vector.load %arg4[%c135, %c0_150] : memref<145x512xf32, #tpu.memory_space<vmem>>, vector<1x10xf32>
    %277 = vector.broadcast %276 : vector<1x10xf32> to vector<2x10xf32>
    %278 = arith.addf %275, %277 : vector<2x10xf32>
    %cst_151 = arith.constant 0.000000e+00 : f32
    %279 = vector.broadcast %cst_151 : f32 to vector<2x10xf32>
    %280 = arith.maximumf %278, %279 : vector<2x10xf32>
    %c1680 = arith.constant 1680 : index
    %c0_152 = arith.constant 0 : index
    %281 = vector.load %arg2[%c1680, %c0_152] : memref<2112x128xbf16, #tpu.memory_space<vmem>>, vector<10x32xbf16>
    %282 = arith.truncf %280 : vector<2x10xf32> to vector<2x10xbf16>
    %cst_153 = arith.constant dense<0.000000e+00> : vector<2x32xf32>
    %283 = tpu.matmul %282, %281, %cst_153 {dimension_numbers = #tpu.dot_dimension_numbers<[1], [0], [0], [1], [0, 0, 1, 1], [], []>} : vector<2x10xbf16>, vector<10x32xbf16>, vector<2x32xf32> -> vector<2x32xf32>
    %c136 = arith.constant 136 : index
    %c0_154 = arith.constant 0 : index
    %284 = vector.load %arg4[%c136, %c0_154] : memref<145x512xf32, #tpu.memory_space<vmem>>, vector<1x32xf32>
    %285 = vector.broadcast %284 : vector<1x32xf32> to vector<2x32xf32>
    %286 = arith.addf %283, %285 : vector<2x32xf32>
    %cst_155 = arith.constant 0.000000e+00 : f32
    %287 = vector.broadcast %cst_155 : f32 to vector<2x32xf32>
    %288 = arith.maximumf %286, %287 : vector<2x32xf32>
    %c1696 = arith.constant 1696 : index
    %c0_156 = arith.constant 0 : index
    %289 = vector.load %arg2[%c1696, %c0_156] : memref<2112x128xbf16, #tpu.memory_space<vmem>>, vector<32x64xbf16>
    %290 = arith.truncf %288 : vector<2x32xf32> to vector<2x32xbf16>
    %cst_157 = arith.constant dense<0.000000e+00> : vector<2x64xf32>
    %291 = tpu.matmul %290, %289, %cst_157 {dimension_numbers = #tpu.dot_dimension_numbers<[1], [0], [0], [1], [0, 0, 1, 1], [], []>} : vector<2x32xbf16>, vector<32x64xbf16>, vector<2x64xf32> -> vector<2x64xf32>
    %c137 = arith.constant 137 : index
    %c0_158 = arith.constant 0 : index
    %292 = vector.load %arg4[%c137, %c0_158] : memref<145x512xf32, #tpu.memory_space<vmem>>, vector<1x64xf32>
    %293 = vector.broadcast %292 : vector<1x64xf32> to vector<2x64xf32>
    %294 = arith.addf %291, %293 : vector<2x64xf32>
    %cst_159 = arith.constant 0.000000e+00 : f32
    %295 = vector.broadcast %cst_159 : f32 to vector<2x64xf32>
    %296 = arith.maximumf %294, %295 : vector<2x64xf32>
    %c1728 = arith.constant 1728 : index
    %c0_160 = arith.constant 0 : index
    %297 = vector.load %arg2[%c1728, %c0_160] : memref<2112x128xbf16, #tpu.memory_space<vmem>>, vector<64x128xbf16>
    %298 = arith.truncf %296 : vector<2x64xf32> to vector<2x64xbf16>
    %cst_161 = arith.constant dense<0.000000e+00> : vector<2x128xf32>
    %299 = tpu.matmul %298, %297, %cst_161 {dimension_numbers = #tpu.dot_dimension_numbers<[1], [0], [0], [1], [0, 0, 1, 1], [], []>} : vector<2x64xbf16>, vector<64x128xbf16>, vector<2x128xf32> -> vector<2x128xf32>
    %c138 = arith.constant 138 : index
    %c0_162 = arith.constant 0 : index
    %300 = vector.load %arg4[%c138, %c0_162] : memref<145x512xf32, #tpu.memory_space<vmem>>, vector<1x128xf32>
    %301 = vector.broadcast %300 : vector<1x128xf32> to vector<2x128xf32>
    %302 = arith.addf %299, %301 : vector<2x128xf32>
    %cst_163 = arith.constant 0.000000e+00 : f32
    %303 = vector.broadcast %cst_163 : f32 to vector<2x128xf32>
    %304 = arith.maximumf %302, %303 : vector<2x128xf32>
    %c1792 = arith.constant 1792 : index
    %c0_164 = arith.constant 0 : index
    %305 = vector.load %arg2[%c1792, %c0_164] : memref<2112x128xbf16, #tpu.memory_space<vmem>>, vector<128x10xbf16>
    %306 = arith.truncf %304 : vector<2x128xf32> to vector<2x128xbf16>
    %cst_165 = arith.constant dense<0.000000e+00> : vector<2x10xf32>
    %307 = tpu.matmul %306, %305, %cst_165 {dimension_numbers = #tpu.dot_dimension_numbers<[1], [0], [0], [1], [0, 0, 1, 1], [], []>} : vector<2x128xbf16>, vector<128x10xbf16>, vector<2x10xf32> -> vector<2x10xf32>
    %c139 = arith.constant 139 : index
    %c0_166 = arith.constant 0 : index
    %308 = vector.load %arg4[%c139, %c0_166] : memref<145x512xf32, #tpu.memory_space<vmem>>, vector<1x10xf32>
    %309 = vector.broadcast %308 : vector<1x10xf32> to vector<2x10xf32>
    %310 = arith.addf %307, %309 : vector<2x10xf32>
    %c0_167 = arith.constant 0 : index
    %c0_168 = arith.constant 0 : index
    %311 = vector.load %arg4[%c0_167, %c0_168] : memref<145x512xf32, #tpu.memory_space<vmem>>, vector<128x384xf32>
    %c142 = arith.constant 142 : index
    %c0_169 = arith.constant 0 : index
    %312 = vector.load %arg4[%c142, %c0_169] : memref<145x512xf32, #tpu.memory_space<vmem>>, vector<1x384xf32>
    %c143 = arith.constant 143 : index
    %c0_170 = arith.constant 0 : index
    %313 = vector.load %arg4[%c143, %c0_170] : memref<145x512xf32, #tpu.memory_space<vmem>>, vector<1x128xf32>
    %314 = vector.extract_strided_slice %256 {offsets = [0, 0], sizes = [1, 384], strides = [1, 1]} : vector<2x384xf32> to vector<1x384xf32>
    %cst_171 = arith.constant dense<0.000000e+00> : vector<1x384xf32>
    %315 = tpu.matmul %313, %311, %cst_171 {dimension_numbers = #tpu.dot_dimension_numbers<[1], [0], [0], [1], [0, 0, 1, 1], [], []>} : vector<1x128xf32>, vector<128x384xf32>, vector<1x384xf32> -> vector<1x384xf32>
    %316 = arith.addf %315, %312 : vector<1x384xf32>
    %317 = vector.extract_strided_slice %314 {offsets = [0, 0], sizes = [1, 128], strides = [1, 1]} : vector<1x384xf32> to vector<1x128xf32>
    %318 = vector.extract_strided_slice %316 {offsets = [0, 0], sizes = [1, 128], strides = [1, 1]} : vector<1x384xf32> to vector<1x128xf32>
    %319 = arith.addf %317, %318 : vector<1x128xf32>
    %cst_172 = arith.constant 5.000000e-01 : f32
    %320 = vector.broadcast %cst_172 : f32 to vector<1x128xf32>
    %321 = arith.mulf %320, %319 : vector<1x128xf32>
    %322 = math.tanh %321 : vector<1x128xf32>
    %cst_173 = arith.constant 5.000000e-01 : f32
    %323 = vector.broadcast %cst_173 : f32 to vector<1x128xf32>
    %324 = arith.mulf %323, %322 : vector<1x128xf32>
    %cst_174 = arith.constant 5.000000e-01 : f32
    %325 = vector.broadcast %cst_174 : f32 to vector<1x128xf32>
    %326 = arith.addf %324, %325 : vector<1x128xf32>
    %327 = vector.extract_strided_slice %314 {offsets = [0, 128], sizes = [1, 128], strides = [1, 1]} : vector<1x384xf32> to vector<1x128xf32>
    %328 = vector.extract_strided_slice %316 {offsets = [0, 128], sizes = [1, 128], strides = [1, 1]} : vector<1x384xf32> to vector<1x128xf32>
    %329 = arith.addf %327, %328 : vector<1x128xf32>
    %cst_175 = arith.constant 5.000000e-01 : f32
    %330 = vector.broadcast %cst_175 : f32 to vector<1x128xf32>
    %331 = arith.mulf %330, %329 : vector<1x128xf32>
    %332 = math.tanh %331 : vector<1x128xf32>
    %cst_176 = arith.constant 5.000000e-01 : f32
    %333 = vector.broadcast %cst_176 : f32 to vector<1x128xf32>
    %334 = arith.mulf %333, %332 : vector<1x128xf32>
    %cst_177 = arith.constant 5.000000e-01 : f32
    %335 = vector.broadcast %cst_177 : f32 to vector<1x128xf32>
    %336 = arith.addf %334, %335 : vector<1x128xf32>
    %337 = vector.extract_strided_slice %314 {offsets = [0, 256], sizes = [1, 128], strides = [1, 1]} : vector<1x384xf32> to vector<1x128xf32>
    %338 = vector.extract_strided_slice %316 {offsets = [0, 256], sizes = [1, 128], strides = [1, 1]} : vector<1x384xf32> to vector<1x128xf32>
    %339 = arith.mulf %326, %338 : vector<1x128xf32>
    %340 = arith.addf %337, %339 : vector<1x128xf32>
    %341 = math.tanh %340 : vector<1x128xf32>
    %cst_178 = arith.constant 1.000000e+00 : f32
    %342 = vector.broadcast %cst_178 : f32 to vector<1x128xf32>
    %343 = arith.subf %342, %336 : vector<1x128xf32>
    %344 = arith.mulf %343, %341 : vector<1x128xf32>
    %345 = arith.mulf %336, %313 : vector<1x128xf32>
    %346 = arith.addf %344, %345 : vector<1x128xf32>
    %c0_179 = arith.constant 0 : index
    %c0_180 = arith.constant 0 : index
    %347 = vector.load %arg6[%c0_179, %c0_180] : memref<2x128xf32, #tpu.memory_space<vmem>>, vector<1x128xf32>
    tpu.vector_store %arg6[%c0_179, %c0_180], %346 {strides = array<i32>} : memref<2x128xf32, #tpu.memory_space<vmem>>, vector<1x128xf32>,
    %348 = vector.extract_strided_slice %256 {offsets = [1, 0], sizes = [1, 384], strides = [1, 1]} : vector<2x384xf32> to vector<1x384xf32>
    %cst_181 = arith.constant dense<0.000000e+00> : vector<1x384xf32>
    %349 = tpu.matmul %346, %311, %cst_181 {dimension_numbers = #tpu.dot_dimension_numbers<[1], [0], [0], [1], [0, 0, 1, 1], [], []>} : vector<1x128xf32>, vector<128x384xf32>, vector<1x384xf32> -> vector<1x384xf32>
    %350 = arith.addf %349, %312 : vector<1x384xf32>
    %351 = vector.extract_strided_slice %348 {offsets = [0, 0], sizes = [1, 128], strides = [1, 1]} : vector<1x384xf32> to vector<1x128xf32>
    %352 = vector.extract_strided_slice %350 {offsets = [0, 0], sizes = [1, 128], strides = [1, 1]} : vector<1x384xf32> to vector<1x128xf32>
    %353 = arith.addf %351, %352 : vector<1x128xf32>
    %cst_182 = arith.constant 5.000000e-01 : f32
    %354 = vector.broadcast %cst_182 : f32 to vector<1x128xf32>
    %355 = arith.mulf %354, %353 : vector<1x128xf32>
    %356 = math.tanh %355 : vector<1x128xf32>
    %cst_183 = arith.constant 5.000000e-01 : f32
    %357 = vector.broadcast %cst_183 : f32 to vector<1x128xf32>
    %358 = arith.mulf %357, %356 : vector<1x128xf32>
    %cst_184 = arith.constant 5.000000e-01 : f32
    %359 = vector.broadcast %cst_184 : f32 to vector<1x128xf32>
    %360 = arith.addf %358, %359 : vector<1x128xf32>
    %361 = vector.extract_strided_slice %348 {offsets = [0, 128], sizes = [1, 128], strides = [1, 1]} : vector<1x384xf32> to vector<1x128xf32>
    %362 = vector.extract_strided_slice %350 {offsets = [0, 128], sizes = [1, 128], strides = [1, 1]} : vector<1x384xf32> to vector<1x128xf32>
    %363 = arith.addf %361, %362 : vector<1x128xf32>
    %cst_185 = arith.constant 5.000000e-01 : f32
    %364 = vector.broadcast %cst_185 : f32 to vector<1x128xf32>
    %365 = arith.mulf %364, %363 : vector<1x128xf32>
    %366 = math.tanh %365 : vector<1x128xf32>
    %cst_186 = arith.constant 5.000000e-01 : f32
    %367 = vector.broadcast %cst_186 : f32 to vector<1x128xf32>
    %368 = arith.mulf %367, %366 : vector<1x128xf32>
    %cst_187 = arith.constant 5.000000e-01 : f32
    %369 = vector.broadcast %cst_187 : f32 to vector<1x128xf32>
    %370 = arith.addf %368, %369 : vector<1x128xf32>
    %371 = vector.extract_strided_slice %348 {offsets = [0, 256], sizes = [1, 128], strides = [1, 1]} : vector<1x384xf32> to vector<1x128xf32>
    %372 = vector.extract_strided_slice %350 {offsets = [0, 256], sizes = [1, 128], strides = [1, 1]} : vector<1x384xf32> to vector<1x128xf32>
    %373 = arith.mulf %360, %372 : vector<1x128xf32>
    %374 = arith.addf %371, %373 : vector<1x128xf32>
    %375 = math.tanh %374 : vector<1x128xf32>
    %cst_188 = arith.constant 1.000000e+00 : f32
    %376 = vector.broadcast %cst_188 : f32 to vector<1x128xf32>
    %377 = arith.subf %376, %370 : vector<1x128xf32>
    %378 = arith.mulf %377, %375 : vector<1x128xf32>
    %379 = arith.mulf %370, %346 : vector<1x128xf32>
    %380 = arith.addf %378, %379 : vector<1x128xf32>
    %c1 = arith.constant 1 : index
    %c0_189 = arith.constant 0 : index
    %381 = vector.load %arg6[%c1, %c0_189] : memref<2x128xf32, #tpu.memory_space<vmem>>, vector<1x128xf32>
    tpu.vector_store %arg6[%c1, %c0_189], %380 {strides = array<i32>} : memref<2x128xf32, #tpu.memory_space<vmem>>, vector<1x128xf32>,
    %c0_190 = arith.constant 0 : index
    %c0_191 = arith.constant 0 : index
    %382 = vector.load %arg6[%c0_190, %c0_191] : memref<2x128xf32, #tpu.memory_space<vmem>>, vector<2x128xf32>
    %cst_192 = arith.constant 0.000000e+00 : f32
    %383 = vector.broadcast %cst_192 : f32 to vector<2x128xf32>
    %384 = arith.maximumf %382, %383 : vector<2x128xf32>
    %c1984 = arith.constant 1984 : index
    %c0_193 = arith.constant 0 : index
    %385 = vector.load %arg2[%c1984, %c0_193] : memref<2112x128xbf16, #tpu.memory_space<vmem>>, vector<128x6xbf16>
    %386 = arith.truncf %384 : vector<2x128xf32> to vector<2x128xbf16>
    %cst_194 = arith.constant dense<0.000000e+00> : vector<2x6xf32>
    %387 = tpu.matmul %386, %385, %cst_194 {dimension_numbers = #tpu.dot_dimension_numbers<[1], [0], [0], [1], [0, 0, 1, 1], [], []>} : vector<2x128xbf16>, vector<128x6xbf16>, vector<2x6xf32> -> vector<2x6xf32>
    %c144_195 = arith.constant 144 : index
    %c0_196 = arith.constant 0 : index
    %388 = vector.load %arg4[%c144_195, %c0_196] : memref<145x512xf32, #tpu.memory_space<vmem>>, vector<1x6xf32>
    %389 = vector.broadcast %388 : vector<1x6xf32> to vector<2x6xf32>
    %390 = arith.addf %387, %389 : vector<2x6xf32>
    %391 = vector.extract_strided_slice %390 {offsets = [0, 0], sizes = [2, 5], strides = [1, 1]} : vector<2x6xf32> to vector<2x5xf32>
    %cst_197 = arith.constant dense<0xFF800000> : vector<2xf32>
    %392 = vector.multi_reduction <maximumf>, %391, %cst_197 [1] : vector<2x5xf32> to vector<2xf32>
    %393 = vector.shape_cast %392 : vector<2xf32> to vector<2x1xf32>
    %394 = vector.broadcast %393 : vector<2x1xf32> to vector<2x5xf32>
    %395 = arith.subf %391, %394 : vector<2x5xf32>
    %396 = math.exp %395 : vector<2x5xf32>
    %cst_198 = arith.constant dense<0.000000e+00> : vector<2xf32>
    %397 = vector.multi_reduction <add>, %396, %cst_198 [1] : vector<2x5xf32> to vector<2xf32>
    %398 = vector.shape_cast %397 : vector<2xf32> to vector<2x1xf32>
    %399 = vector.broadcast %398 : vector<2x1xf32> to vector<2x5xf32>
    %400 = arith.divf %396, %399 : vector<2x5xf32>
    %c0_199 = arith.constant 0 : index
    %c0_200 = arith.constant 0 : index
    %401 = vector.load %arg5[%c0_199, %c0_200] : memref<2x128xf32, #tpu.memory_space<vmem>>, vector<2x32xf32>
    tpu.vector_store %arg5[%c0_199, %c0_200], %225 {strides = array<i32>} : memref<2x128xf32, #tpu.memory_space<vmem>>, vector<2x32xf32>,
    %c0_201 = arith.constant 0 : index
    %c32_202 = arith.constant 32 : index
    %402 = vector.load %arg5[%c0_201, %c32_202] : memref<2x128xf32, #tpu.memory_space<vmem>>, vector<2x10xf32>
    tpu.vector_store %arg5[%c0_201, %c32_202], %280 {strides = array<i32>} : memref<2x128xf32, #tpu.memory_space<vmem>>, vector<2x10xf32>,
    %c0_203 = arith.constant 0 : index
    %c42 = arith.constant 42 : index
    %403 = vector.load %arg5[%c0_203, %c42] : memref<2x128xf32, #tpu.memory_space<vmem>>, vector<2x10xf32>
    tpu.vector_store %arg5[%c0_203, %c42], %310 {strides = array<i32>} : memref<2x128xf32, #tpu.memory_space<vmem>>, vector<2x10xf32>,
    %c0_204 = arith.constant 0 : index
    %c52 = arith.constant 52 : index
    %404 = vector.load %arg5[%c0_204, %c52] : memref<2x128xf32, #tpu.memory_space<vmem>>, vector<2x5xf32>
    tpu.vector_store %arg5[%c0_204, %c52], %400 {strides = array<i32>} : memref<2x128xf32, #tpu.memory_space<vmem>>, vector<2x5xf32>,
    %c0_205 = arith.constant 0 : index
    %c57 = arith.constant 57 : index
    %405 = vector.load %arg5[%c0_205, %c57] : memref<2x128xf32, #tpu.memory_space<vmem>>, vector<2x6xf32>
    tpu.vector_store %arg5[%c0_205, %c57], %390 {strides = array<i32>} : memref<2x128xf32, #tpu.memory_space<vmem>>, vector<2x6xf32>,
    %cst_206 = arith.constant 0.000000e+00 : f32
    %406 = vector.broadcast %cst_206 : f32 to vector<2x65xf32>
    %c0_207 = arith.constant 0 : index
    %c63 = arith.constant 63 : index
    %407 = vector.load %arg5[%c0_207, %c63] : memref<2x128xf32, #tpu.memory_space<vmem>>, vector<2x65xf32>
    tpu.vector_store %arg5[%c0_207, %c63], %406 {strides = array<i32>} : memref<2x128xf32, #tpu.memory_space<vmem>>, vector<2x65xf32>,
    return
  }
}

</mosaic_0001>

<bundles_post_ra>
// kernel: agent_net_forward.1
= control target key start
LH: loop header
LB: loop body
LE: loop exit
PB: predicated region body
PF: predicated region fallthrough
CT: control target
= control target key end

     0   :  { %vm78_vm0 = vcmask 1043456   ;;  %vm79_vm1 = vcmask 1044480   ;;  %v3798_v2 = vmov 65535   ;;  %vm53_vm2 = vcmask 72704   ;;  %s3799_s16 = smov 32   ;;  %s3800_s8 = smov 42   ;;  %s5007_s2 = inlined_call_operand.vmem [shape: bf16[2112,128], index: 2, kind: input, shape index: {}]   ;;  %s5008_s0 = inlined_call_operand.vmem [shape: f32[128,9], index: 0, kind: input, shape index: {}]   ;;  %s5009_s4 = inlined_call_operand.vmem [shape: f32[145,512], index: 4, kind: input, shape index: {}]   ;;  %s5010_s1 = inlined_call_operand.vmem [shape: f32[2,30], index: 1, kind: input, shape index: {}]   ;;  %s5011_s3 = inlined_call_operand.vmem [shape: bf16[96,512], index: 3, kind: input, shape index: {}]   ;;  %s5012_s5 = inlined_call_operand.vmem [shape: f32[2,128], index: 5, kind: output, shape index: {}]  }
   0x1   :  { %v2964_v0 = vld [vmem:[%s5007_s2] sm:$0xf]  ;;  %v3598_v1 = vld [vmem:[%s5007_s2] sm:$0x10]  ;;  %v80_v3 = vsel %vm78_vm0, 4294967295, %v3798_v2  ;;  %v22_v7 = vld [vmem:[%s5008_s0 + $0x8] sm:$0xff] }
   0x2   :  { %v2965_v4 = vor.u32 %v3598_v1, %v2964_v0  ;;  %v81_v5 = vsel %vm79_vm1, %v80_v3, 0  ;;  %v21_v6 = vld [vmem:[%s5008_s0] sm:$0xff]  ;;  %v23_v10 = vld [vmem:[%s5008_s0 + $0x10] sm:$0xff]  ;;  %v24_v11 = vld [vmem:[%s5008_s0 + $0x18] sm:$0xff]  ;;  %s3802_s26 = smov 57  }
   0x3   :  { %v39_v9 = vpack.c.bf16 %v22_v7, %v21_v6  ;;  %v40_v12 = vpack.c.bf16 %v24_v11, %v23_v10  ;;  %v25_v13 = vld [vmem:[%s5008_s0 + $0x20] sm:$0xff]  ;;  %v26_v14 = vld [vmem:[%s5008_s0 + $0x28] sm:$0xff]  ;;  %v27_v16 = vld [vmem:[%s5008_s0 + $0x30] sm:$0xff] }
   0x4   :  { %v83_v8 = vand.u32 %v2965_v4, %v81_v5  ;;  %v41_v15 = vpack.c.bf16 %v26_v14, %v25_v13  ;;  %v28_v17 = vld [vmem:[%s5008_s0 + $0x38] sm:$0xff]  ;;  %v29_v19 = vld [vmem:[%s5008_s0 + $0x40] sm:$0xff]  ;;  %v30_v20 = vld [vmem:[%s5008_s0 + $0x48] sm:$0xff] }
   0x5   :  { %v42_v18 = vpack.c.bf16 %v28_v17, %v27_v16  ;;  %v43_v21 = vpack.c.bf16 %v30_v20, %v29_v19  ;;  %v31_v22 = vld [vmem:[%s5008_s0 + $0x50] sm:$0xff]  ;;  %v32_v23 = vld [vmem:[%s5008_s0 + $0x58] sm:$0xff]  ;;  %v33_v25 = vld [vmem:[%s5008_s0 + $0x60] sm:$0xff] }
   0x6   :  { %92 = vmatpush.bf16.msra.mxu0 %v83_v8  ;;  %v44_v24 = vpack.c.bf16 %v32_v23, %v31_v22  ;;  %v34_v26 = vld [vmem:[%s5008_s0 + $0x68] sm:$0xff]  ;;  %v35_v28 = vld [vmem:[%s5008_s0 + $0x70] sm:$0xff]  ;;  %v36_v29 = vld [vmem:[%s5008_s0 + $0x78] sm:$0xff] }
   0x7   :  { %v45_v27 = vpack.c.bf16 %v34_v26, %v33_v25  ;;  %v46_v30 = vpack.c.bf16 %v36_v29, %v35_v28  ;;  %v3907_v45 = vld [vmem:[%s5009_s4 + $0x200] ss:$0 sm:$0xff] }
   0x9   :  { %2966 = vmatmul.msk.bf16.vlgmr.msra.gmra.mxu0 %vm53_vm2, %v39_v9 }
  0x19   :  { %2967 = vmatmul.msk.bf16.gmra.mxu0 %vm53_vm2, %v40_v12 }
  0x29   :  { %2968 = vmatmul.msk.bf16.gmra.mxu0 %vm53_vm2, %v41_v15 }
  0x39   :  { %2969 = vmatmul.msk.bf16.gmra.mxu0 %vm53_vm2, %v42_v18 }
  0x49   :  { %2970 = vmatmul.msk.bf16.gmra.mxu0 %vm53_vm2, %v43_v21 }
  0x59   :  { %2971 = vmatmul.msk.bf16.gmra.mxu0 %vm53_vm2, %v44_v24 }
  0x69   :  { %2972 = vmatmul.msk.bf16.gmra.mxu0 %vm53_vm2, %v45_v27 }
  0x79   :  { %2973 = vmatmul.msk.bf16.gmra.mxu0 %vm53_vm2, %v46_v30 }
  0x86   :  { %v3898_v31 = vpop.f32.mrf.mxu0 }
  0x8e   :  { %v3900_v32 = vpop.f32.mrf.mxu0 }
  0x8f   :  { %v3958_v26 = vadd.f32 %v3900_v32, %v3907_v45  ;;  %v3968_v32 = vadd.f32 %v3898_v31, %v3907_v45 }
  0x96   :  { %v3902_v33 = vpop.f32.mrf.mxu0 }
  0x97   :  { %v3951_v24 = vadd.f32 %v3902_v33, %v3907_v45 }
  0x99   :  { %vm136_vm2 = vcmp.gt.f32.partialorder %v3951_v24, 0.0 }
  0x9e   :  { %v101_v34 = vpop.f32.mrf.mxu0 }
  0x9f   :  { %v3944_v14 = vadd.f32 %v101_v34, %v3907_v45 }
  0xa1   :  { %v156_v30 = vmul.f32 1.442695, %v3944_v14  ;;  %vm137_vm15 = vcmp.gt.f32.partialorder %v3944_v14, 0.0 }
  0xa6   :  { %v104_v35 = vpop.f32.mrf.mxu0 }
  0xa7   :  { %v3940_v9 = vadd.f32 %v104_v35, %v3907_v45 }
  0xa9   :  { %v158_v25 = vmul.f32 1.442695, %v3940_v9  ;;  %vm138_vm14 = vcmp.gt.f32.partialorder %v3940_v9, 0.0 }
  0xae   :  { %v106_v36 = vpop.f32.mrf.mxu0 }
  0xaf   :  { %v3936_v7 = vadd.f32 %v106_v36, %v3907_v45 }
  0xb1   :  { %v160_v19 = vmul.f32 1.442695, %v3936_v7  ;;  %vm139_vm13 = vcmp.gt.f32.partialorder %v3936_v7, 0.0 }
  0xb6   :  { %v109_v37 = vpop.f32.mrf.mxu0 }
  0xb7   :  { %v3932_v2 = vadd.f32 %v109_v37, %v3907_v45  ;;  %v154_v37 = vmul.f32 1.442695, %v3951_v24 }
  0xb9   :  { %v162_v13 = vmul.f32 1.442695, %v3932_v2  ;;  %vm140_vm12 = vcmp.gt.f32.partialorder %v3932_v2, 0.0 }
  0xbe   :  { %v111_v38 = vpop.f32.mrf.mxu0 }
  0xbf   :  { %v3928_v63 = vadd.f32 %v111_v38, %v3907_v45 }
  0xc1   :  { %v164_v8 = vmul.f32 1.442695, %v3928_v63  ;;  %vm141_vm11 = vcmp.gt.f32.partialorder %v3928_v63, 0.0 }
  0xc6   :  { %v114_v39 = vpop.f32.mrf.mxu0 }
  0xc7   :  { %v3924_v60 = vadd.f32 %v114_v39, %v3907_v45 }
  0xc9   :  { %v166_v3 = vmul.f32 1.442695, %v3924_v60  ;;  %vm142_vm10 = vcmp.gt.f32.partialorder %v3924_v60, 0.0 }
  0xce   :  { %v116_v40 = vpop.f32.mrf.mxu0 }
  0xcf   :  { %v3920_v57 = vadd.f32 %v116_v40, %v3907_v45 }
  0xd1   :  { %v168_v0 = vmul.f32 1.442695, %v3920_v57  ;;  %vm143_vm9 = vcmp.gt.f32.partialorder %v3920_v57, 0.0 }
  0xd6   :  { %v119_v41 = vpop.f32.mrf.mxu0 }
  0xd7   :  { %v3916_v55 = vadd.f32 %v119_v41, %v3907_v45  ;;  %v152_v41 = vmul.f32 1.442695, %v3958_v26 }
  0xd9   :  { %v170_v61 = vmul.f32 1.442695, %v3916_v55  ;;  %vm144_vm8 = vcmp.gt.f32.partialorder %v3916_v55, 0.0 }
  0xde   :  { %v121_v42 = vpop.f32.mrf.mxu0 }
  0xdf   :  { %v3913_v51 = vadd.f32 %v121_v42, %v3907_v45 }
  0xe1   :  { %v172_v58 = vmul.f32 1.442695, %v3913_v51  ;;  %vm145_vm7 = vcmp.gt.f32.partialorder %v3913_v51, 0.0 }
  0xe6   :  { %v124_v43 = vpop.f32.mrf.mxu0 }
  0xe7   :  { %v125_v49 = vadd.f32 %v124_v43, %v3907_v45 }
  0xe9   :  { %v174_v53 = vmul.f32 1.442695, %v125_v49  ;;  %vm146_vm6 = vcmp.gt.f32.partialorder %v125_v49, 0.0 }
  0xee   :  { %v126_v44 = vpop.f32.mrf.mxu0 }
  0xef   :  { %v127_v48 = vadd.f32 %v126_v44, %v3907_v45 }
  0xf1   :  { %v176_v52 = vmul.f32 1.442695, %v127_v48  ;;  %vm147_vm5 = vcmp.gt.f32.partialorder %v127_v48, 0.0 }
  0xf6   :  { %v129_v46 = vpop.f32.mrf.mxu0 }
  0xf7   :  { %v130_v47 = vadd.f32 %v129_v46, %v3907_v45 }
  0xf9   :  { %v178_v50 = vmul.f32 1.442695, %v130_v47  ;;  %vm148_vm3 = vcmp.gt.f32.partialorder %v130_v47, 0.0 }
  0xfb   :  { %3738 = vpow2.f32 %v178_v50 }
  0xfc   :  { %3740 = vpow2.f32 %v176_v52 }
  0xfd   :  { %3742 = vpow2.f32 %v174_v53 }
  0xfe   :  { %v131_v54 = vpop.f32.mrf.mxu0 }
  0xff   :  { %v132_v56 = vadd.f32 %v131_v54, %v3907_v45  ;;  %v150_v45 = vmul.f32 1.442695, %v3968_v32 }
 0x101   :  { %v180_v59 = vmul.f32 1.442695, %v132_v56  ;;  %v3739_v62 = vpop.eup %3738  ;;  %vm149_vm4 = vcmp.gt.f32.partialorder %v132_v56, 0.0 }
 0x102   :  { %v3741_v1 = vpop.eup %3740  ;;  %v2988_v5 = vadd.f32 -1.0, %v3739_v62 }
 0x103   :  { %3744 = vpow2.f32 %v180_v59  ;;  %v3743_v4 = vpop.eup %3742  ;;  %v2987_v10 = vadd.f32 -1.0, %v3741_v1 }
 0x104   :  { %3746 = vpow2.f32 %v172_v58  ;;  %v2986_v15 = vadd.f32 -1.0, %v3743_v4  ;;  %v212_v16 = vsel %vm148_vm3, %v130_v47, %v2988_v5  ;;  %vm135_vm3 = vcmp.gt.f32.partialorder %v3958_v26, 0.0 }
 0x105   :  { %3748 = vpow2.f32 %v170_v61  ;;  %v211_v22 = vsel %vm147_vm5, %v127_v48, %v2987_v10  ;;  %v3603_v10 = vld [vmem:[%s5007_s2 + $0x1c8] sm:$0xff]  ;;  %vm276_vm5 = vcmask 261120  }
 0x106   :  { %3750 = vpow2.f32 %v168_v0  ;;  %v210_v28 = vsel %vm146_vm6, %v125_v49, %v2986_v15  ;;  %v3613_v15 = vld [vmem:[%s5007_s2 + $0x38] sm:$0xff] }
 0x107   :  { %3752 = vpow2.f32 %v166_v3  ;;  %v3963_v33 = vpack.c.bf16 %v211_v22, %v210_v28  ;;  %v3605_v22 = vld [vmem:[%s5007_s2 + $0x18] sm:$0xff] }
 0x108   :  { %3754 = vpow2.f32 %v164_v8  ;;  %v3610_v8 = vld [vmem:[%s5007_s2 + $0x30] sm:$0xff] }
 0x109   :  { %v3745_v6 = vpop.eup %3744  ;;  %3756 = vpow2.f32 %v162_v13  ;;  %v3604_v13 = vld [vmem:[%s5007_s2 + $0x1d0] sm:$0xff] }
 0x10a   :  { %v2989_v11 = vadd.f32 -1.0, %v3745_v6  ;;  %v3747_v12 = vpop.eup %3746  ;;  %3758 = vpow2.f32 %v160_v19  ;;  %v3601_v19 = vld [vmem:[%s5007_s2 + $0x8] sm:$0xff] }
 0x10b   :  { %v3749_v18 = vpop.eup %3748  ;;  %v2985_v21 = vadd.f32 -1.0, %v3747_v12  ;;  %3760 = vpow2.f32 %v158_v25  ;;  %v3600_v12 = vld [vmem:[%s5007_s2 + $0x1c0] sm:$0xff] }
 0x10c   :  { %v213_v17 = vsel %vm149_vm4, %v132_v56, %v2989_v11  ;;  %v3751_v23 = vpop.eup %3750  ;;  %v2984_v27 = vadd.f32 -1.0, %v3749_v18  ;;  %3762 = vpow2.f32 %v156_v30  ;;  %vm134_vm4 = vcmp.gt.f32.partialorder %v3968_v32, 0.0  ;;  %v3609_v11 = vld [vmem:[%s5007_s2 + $0x28] sm:$0xff]  ;;  %v3602_v18 = vld [vmem:[%s5007_s2 + $0x10] sm:$0xff] }
 0x10d   :  { %v3947_v20 = vpack.c.bf16 %v213_v17, %v212_v16  ;;  %v3753_v29 = vpop.eup %3752  ;;  %v2983_v34 = vadd.f32 -1.0, %v3751_v23  ;;  %v209_v35 = vsel %vm145_vm7, %v3913_v51, %v2985_v21  ;;  %3764 = vpow2.f32 %v154_v37  ;;  %v3607_v16 = vld [vmem:[%s5007_s2 + $0x1d8] sm:$0xff]  ;;  %v3608_v17 = vld [vmem:[%s5007_s2 + $0x1e0] sm:$0xff]  ;;  %289 = vmatpush.bf16.msra.mxu2 %v3602_v18 }
 0x10e   :  { %v3755_v36 = vpop.eup %3754  ;;  %v2982_v38 = vadd.f32 -1.0, %v3753_v29  ;;  %v208_v39 = vsel %vm144_vm8, %v3916_v55, %v2984_v27  ;;  %3766 = vpow2.f32 %v152_v41  ;;  %v3606_v21 = vld [vmem:[%s5007_s2 + $0x20] sm:$0xff] }
 0x10f   :  { %243 = vmatpush.bf16.msra.mxu1 %v3947_v20  ;;  %326 = vmatpush.bf16.msra.mxu3 %v3947_v20  ;;  %v3757_v40 = vpop.eup %3756  ;;  %v3978_v31 = vpack.c.bf16 %v209_v35, %v208_v39  ;;  %v2981_v42 = vadd.f32 -1.0, %v3755_v36  ;;  %v207_v43 = vsel %vm143_vm9, %v3920_v57, %v2983_v34  ;;  %3768 = vpow2.f32 %v150_v45  ;;  %v3612_v45 = vld [vmem:[%s5007_s2 + $0x1f0] sm:$0xff] }
 0x110   :  { %736 = vmatpush.bf16.msrb.mxu0 %v3947_v20  ;;  %v3759_v44 = vpop.eup %3758  ;;  %v2980_v46 = vadd.f32 -1.0, %v3757_v40  ;;  %v206_v47 = vsel %vm142_vm10, %v3924_v60, %v2982_v38 }
 0x111   :  { %v3761_v48 = vpop.eup %3760  ;;  %v3988_v49 = vpack.c.bf16 %v207_v43, %v206_v47  ;;  %v2979_v50 = vadd.f32 -1.0, %v3759_v44  ;;  %v205_v51 = vsel %vm141_vm11, %v3928_v63, %v2981_v42  ;;  %290 = vmatpush.bf16.msra.mxu2 %v3601_v19  ;;  %v3611_v43 = vld [vmem:[%s5007_s2 + $0x1e8] sm:$0xff]  ;;  %v3615_v44 = vld [vmem:[%s5007_s2 + $0x1f8] sm:$0xff]  ;;  %vm1456_vm11 = vcmask 64512  }
 0x112   :  { %v3763_v52 = vpop.eup %3762  ;;  %v2978_v53 = vadd.f32 -1.0, %v3761_v48  ;;  %v204_v54 = vsel %vm140_vm12, %v3932_v2, %v2980_v46  ;;  %v3616_v46 = vld [vmem:[%s5007_s2 + $0x200] sm:$0xff]  ;;  %vm1937_vm12 = vcmask 244736  }
 0x113   :  { %244 = vmatpush.bf16.msra.mxu1 %v3963_v33  ;;  %327 = vmatpush.bf16.msra.mxu3 %v3963_v33  ;;  %v3765_v55 = vpop.eup %3764  ;;  %v3997_v56 = vpack.c.bf16 %v205_v51, %v204_v54  ;;  %v2977_v57 = vadd.f32 -1.0, %v3763_v52  ;;  %v203_v58 = vsel %vm139_vm13, %v3936_v7, %v2979_v50  ;;  %v4135_v52 = vld [vmem:[%s5009_s4 + $0x201] ss:$0 sm:$0xff]  ;;  %vm2930_vm13 = vcmask 254976  }
 0x114   :  { %737 = vmatpush.bf16.msrb.mxu0 %v3963_v33  ;;  %v3767_v59 = vpop.eup %3766  ;;  %v2976_v60 = vadd.f32 -1.0, %v3765_v55  ;;  %v202_v61 = vsel %vm138_vm14, %v3940_v9, %v2978_v53  ;;  %v3599_v9 = vld [vmem:[%s5007_s2 + $0x1b8] sm:$0xff] }
 0x115   :  { %v3769_v62 = vpop.eup %3768  ;;  %v4006_v63 = vpack.c.bf16 %v203_v58, %v202_v61  ;;  %v2975_v0 = vadd.f32 -1.0, %v3767_v59  ;;  %v201_v1 = vsel %vm137_vm15, %v3944_v14, %v2977_v57  ;;  %v3614_v14 = vld [vmem:[%s5007_s2 + $0x40] sm:$0xff]  ;;  %371 = vmatpush.bf16.msrb.mxu2 %v3606_v21  ;;  %v3618_v57 = vld [vmem:[%s5007_s2 + $0x50] sm:$0xff]  ;;  %vm2412_vm15 = vcmask 80896  }
 0x116   :  { %v2974_v2 = vadd.f32 -1.0, %v3769_v62  ;;  %v200_v3 = vsel %vm136_vm2, %v3951_v24, %v2976_v60  ;;  %v3617_v60 = vld [vmem:[%s5007_s2 + $0x48] sm:$0xff]  ;;  %vm2936_vm2 = vcmask 337152  }
 0x117   :  { %245 = vmatpush.bf16.msra.mxu1 %v3978_v31  ;;  %328 = vmatpush.bf16.msra.mxu3 %v3978_v31  ;;  %v4015_v4 = vpack.c.bf16 %v201_v1, %v200_v3  ;;  %v199_v5 = vsel %vm135_vm3, %v3958_v26, %v2975_v0  ;;  %vm2942_vm3 = vcmask 419152  }
 0x118   :  { %738 = vmatpush.bf16.msrb.mxu0 %v3978_v31  ;;  %v198_v6 = vsel %vm134_vm4, %v3968_v32, %v2974_v2  ;;  %vm2905_vm4 = vcmask 33792  }
 0x119   :  { %v4023_v7 = vpack.c.bf16 %v199_v5, %v198_v6  ;;  %372 = vmatpush.bf16.msrb.mxu2 %v3605_v22 }
 0x11b   :  { %246 = vmatpush.bf16.msra.mxu1 %v3988_v49  ;;  %329 = vmatpush.bf16.msra.mxu3 %v3988_v49 }
 0x11c   :  { %739 = vmatpush.bf16.msrb.mxu0 %v3988_v49 }
 0x11f   :  { %247 = vmatpush.bf16.msra.mxu1 %v3997_v56  ;;  %330 = vmatpush.bf16.msra.mxu3 %v3997_v56 }
 0x120   :  { %740 = vmatpush.bf16.msrb.mxu0 %v3997_v56 }
 0x123   :  { %248 = vmatpush.bf16.msra.mxu1 %v4006_v63  ;;  %331 = vmatpush.bf16.msra.mxu3 %v4006_v63 }
 0x124   :  { %741 = vmatpush.bf16.msrb.mxu0 %v4006_v63 }
 0x127   :  { %249 = vmatpush.bf16.msra.mxu1 %v4015_v4  ;;  %332 = vmatpush.bf16.msra.mxu3 %v4015_v4 }
 0x128   :  { %742 = vmatpush.bf16.msrb.mxu0 %v4015_v4 }
 0x12b   :  { %250 = vmatpush.bf16.msra.mxu1 %v4023_v7  ;;  %333 = vmatpush.bf16.msra.mxu3 %v4023_v7 }
 0x12c   :  { %743 = vmatpush.bf16.msrb.mxu0 %v4023_v7 }
 0x12e   :  { %251 = vmatmul.bf16.vlgmr.msra.gmra.mxu1 %v3599_v9  ;;  %334 = vmatmul.bf16.vlgmr.msra.gmra.mxu3 %v3603_v10  ;;  %v3623_v9 = vld [vmem:[%s5007_s2 + $0x218] sm:$0xff] }
 0x12f   :  { %408 = vmatpush.bf16.msrb.mxu1 %v3947_v20  ;;  %453 = vmatpush.bf16.msrb.mxu3 %v3610_v8 }
 0x130   :  { %900 = vmatpush.bf16.msra.mxu0 %v3947_v20 }
 0x131   :  { %744 = vmatmul.bf16.vlgmr.msrb.gmra.mxu0 %v3623_v9 }
 0x133   :  { %409 = vmatpush.bf16.msrb.mxu1 %v3963_v33  ;;  %454 = vmatpush.bf16.msrb.mxu3 %v3609_v11 }
 0x134   :  { %901 = vmatpush.bf16.msra.mxu0 %v3963_v33 }
 0x137   :  { %572 = vmatpush.bf16.msra.mxu3 %v3947_v20  ;;  %410 = vmatpush.bf16.msrb.mxu1 %v3978_v31 }
 0x138   :  { %902 = vmatpush.bf16.msra.mxu0 %v3978_v31 }
 0x13b   :  { %573 = vmatpush.bf16.msra.mxu3 %v3963_v33  ;;  %411 = vmatpush.bf16.msrb.mxu1 %v3988_v49 }
 0x13c   :  { %903 = vmatpush.bf16.msra.mxu0 %v3988_v49 }
 0x13e   :  { %256 = vmatmul.bf16.gmra.mxu1 %v3600_v12  ;;  %339 = vmatmul.bf16.gmra.mxu3 %v3604_v13 }
 0x13f   :  { %574 = vmatpush.bf16.msra.mxu3 %v3978_v31  ;;  %412 = vmatpush.bf16.msrb.mxu1 %v3997_v56 }
 0x140   :  { %904 = vmatpush.bf16.msra.mxu0 %v3997_v56 }
 0x143   :  { %575 = vmatpush.bf16.msra.mxu3 %v3988_v49  ;;  %413 = vmatpush.bf16.msrb.mxu1 %v4006_v63 }
 0x144   :  { %905 = vmatpush.bf16.msra.mxu0 %v4006_v63 }
 0x147   :  { %576 = vmatpush.bf16.msra.mxu3 %v3997_v56  ;;  %414 = vmatpush.bf16.msrb.mxu1 %v4015_v4 }
 0x148   :  { %906 = vmatpush.bf16.msra.mxu0 %v4015_v4 }
 0x14b   :  { %577 = vmatpush.bf16.msra.mxu3 %v4006_v63  ;;  %415 = vmatpush.bf16.msrb.mxu1 %v4023_v7 }
 0x14c   :  { %907 = vmatpush.bf16.msra.mxu0 %v4023_v7 }
 0x14e   :  { %416 = vmatmul.bf16.vlgmr.msrb.gmra.mxu1 %v3607_v16  ;;  %v3624_v16 = vld [vmem:[%s5007_s2 + $0x220] sm:$0xff] }
 0x14f   :  { %535 = vmatpush.bf16.msra.mxu1 %v3614_v14  ;;  %578 = vmatpush.bf16.msra.mxu3 %v4015_v4 }
 0x150   :  { %749 = vmatmul.bf16.gmra.mxu0 %v3624_v16 }
 0x153   :  { %536 = vmatpush.bf16.msra.mxu1 %v3613_v15  ;;  %579 = vmatpush.bf16.msra.mxu3 %v4023_v7 }
 0x157   :  { %654 = vmatpush.bf16.msrb.mxu1 %v3947_v20 }
 0x15b   :  { %655 = vmatpush.bf16.msrb.mxu1 %v3963_v33 }
 0x15e   :  { %421 = vmatmul.bf16.gmra.mxu1 %v3608_v17 }
 0x15f   :  { %656 = vmatpush.bf16.msrb.mxu1 %v3978_v31 }
 0x163   :  { %657 = vmatpush.bf16.msrb.mxu1 %v3988_v49 }
 0x167   :  { %658 = vmatpush.bf16.msrb.mxu1 %v3997_v56 }
 0x16b   :  { %659 = vmatpush.bf16.msrb.mxu1 %v4006_v63 }
 0x16f   :  { %660 = vmatpush.bf16.msrb.mxu1 %v4015_v4 }
 0x173   :  { %661 = vmatpush.bf16.msrb.mxu1 %v4023_v7 }
 0x1ab   :  { %v252_v23 = vpop.f32.mrf.mxu1 }
 0x1b1   :  { %v335_v28 = vpop.f32.mrf.mxu3 }
 0x1b3   :  { %v254_v24 = vpop.f32.mrf.mxu1 }
 0x1b4   :  { %v262_v25 = vpack.c.bf16 %v254_v24, %v252_v23  ;;  %v3625_v24 = vld [vmem:[%s5007_s2 + $0x68] sm:$0xff] }
 0x1b6   :  { %3006 = vmatmul.msk.bf16.vlgmr.msra.gmra.mxu2 %vm276_vm5, %v262_v25 }
 0x1b7   :  { %490 = vmatpush.bf16.msra.mxu2 %v3947_v20 }
 0x1b9   :  { %v337_v34 = vpop.f32.mrf.mxu3 }
 0x1ba   :  { %v345_v36 = vpack.c.bf16 %v337_v34, %v335_v28  ;;  %v3622_v28 = vld [vmem:[%s5007_s2 + $0x60] sm:$0xff] }
 0x1bb   :  { %491 = vmatpush.bf16.msra.mxu2 %v3963_v33  ;;  %v257_v26 = vpop.f32.mrf.mxu1 }
 0x1bf   :  { %492 = vmatpush.bf16.msra.mxu2 %v3978_v31 }
 0x1c1   :  { %v340_v37 = vpop.f32.mrf.mxu3 }
 0x1c3   :  { %493 = vmatpush.bf16.msra.mxu2 %v3988_v49  ;;  %v259_v27 = vpop.f32.mrf.mxu1 }
 0x1c4   :  { %v263_v29 = vpack.c.bf16 %v259_v27, %v257_v26 }
 0x1c6   :  { %3007 = vmatmul.msk.bf16.gmra.mxu2 %vm276_vm5, %v263_v29 }
 0x1c7   :  { %494 = vmatpush.bf16.msra.mxu2 %v3997_v56 }
 0x1c9   :  { %v342_v39 = vpop.f32.mrf.mxu3 }
 0x1ca   :  { %v346_v41 = vpack.c.bf16 %v342_v39, %v340_v37 }
 0x1cb   :  { %495 = vmatpush.bf16.msra.mxu2 %v4006_v63  ;;  %v417_v30 = vpop.f32.mrf.mxu1 }
 0x1cf   :  { %496 = vmatpush.bf16.msra.mxu2 %v4015_v4 }
 0x1d3   :  { %497 = vmatpush.bf16.msra.mxu2 %v4023_v7  ;;  %v419_v35 = vpop.f32.mrf.mxu1 }
 0x1d4   :  { %v427_v32 = vpack.c.bf16 %v419_v35, %v417_v30 }
 0x1d6   :  { %3024 = vmatmul.msk.bf16.vlgmr.msrb.gmra.mxu2 %vm276_vm5, %v345_v36  ;;  %3042 = vmatmul.msk.bf16.vlgmr.msrb.gmra.mxu3 %vm276_vm5, %v427_v32  ;;  %v3621_v36 = vld [vmem:[%s5007_s2 + $0x58] sm:$0xff] }
 0x1d7   :  { %617 = vmatpush.bf16.msrb.mxu2 %v3618_v57  ;;  %699 = vmatpush.bf16.msrb.mxu3 %v3622_v28 }
 0x1db   :  { %v422_v38 = vpop.f32.mrf.mxu1  ;;  %618 = vmatpush.bf16.msrb.mxu2 %v3617_v60  ;;  %700 = vmatpush.bf16.msrb.mxu3 %v3621_v36 }
 0x1e3   :  { %v424_v40 = vpop.f32.mrf.mxu1 }
 0x1e4   :  { %v428_v42 = vpack.c.bf16 %v424_v40, %v422_v38 }
 0x1e6   :  { %3025 = vmatmul.msk.bf16.gmra.mxu2 %vm276_vm5, %v346_v41  ;;  %3043 = vmatmul.msk.bf16.gmra.mxu3 %vm276_vm5, %v428_v42  ;;  %v3634_v41 = vld [vmem:[%s5007_s2 + $0x90] sm:$0xff] }
 0x1f6   :  { %498 = vmatmul.bf16.vlgmr.msra.gmra.mxu2 %v3611_v43  ;;  %580 = vmatmul.bf16.vlgmr.msra.gmra.mxu3 %v3615_v44 }
 0x206   :  { %503 = vmatmul.bf16.gmra.mxu2 %v3612_v45  ;;  %585 = vmatmul.bf16.gmra.mxu3 %v3616_v46 }
 0x239   :  { %v292_v47 = vpop.f32.mrf.mxu2 }
 0x23a   :  { %v302_v53 = vadd.f32 %v292_v47, %v4135_v52  ;;  %v3633_v47 = vld [vmem:[%s5007_s2 + $0x88] sm:$0xff] }
 0x241   :  { %v4128_v48 = vpop.f32.mrf.mxu2 }
 0x249   :  { %v297_v50 = vpop.f32.mrf.mxu2 }
 0x24a   :  { %v304_v0 = vadd.f32 %v297_v50, %v4135_v52 }
 0x251   :  { %v4130_v51 = vpop.f32.mrf.mxu2 }
 0x259   :  { %v374_v54 = vpop.f32.mrf.mxu2  ;;  %v456_v55 = vpop.f32.mrf.mxu3 }
 0x25a   :  { %v384_v58 = vadd.f32 %v374_v54, %v302_v53 }
 0x25c   :  { %v466_v59 = vadd.f32 %v456_v55, %v384_v58  ;;  %v3630_v55 = vld [vmem:[%s5007_s2 + $0x80] sm:$0xff]  ;;  %v3629_v58 = vld [vmem:[%s5007_s2 + $0x78] sm:$0xff] }
 0x25d   :  { %863 = vmatpush.bf16.msra.mxu3 %v3630_v55 }
 0x261   :  { %v4144_v61 = vpop.f32.mrf.mxu2  ;;  %v4146_v62 = vpop.f32.mrf.mxu3  ;;  %864 = vmatpush.bf16.msra.mxu3 %v3629_v58 }
 0x269   :  { %v379_v1 = vpop.f32.mrf.mxu2  ;;  %v461_v2 = vpop.f32.mrf.mxu3 }
 0x26a   :  { %v386_v3 = vadd.f32 %v379_v1, %v304_v0 }
 0x26c   :  { %v4149_v5 = vadd.f32 %v461_v2, %v386_v3 }
 0x271   :  { %v4151_v6 = vpop.f32.mrf.mxu2  ;;  %v4153_v8 = vpop.f32.mrf.mxu3 }
 0x279   :  { %v499_v10 = vpop.f32.mrf.mxu2  ;;  %v581_v11 = vpop.f32.mrf.mxu3 }
 0x281   :  { %v501_v12 = vpop.f32.mrf.mxu2  ;;  %v583_v13 = vpop.f32.mrf.mxu3 }
 0x282   :  { %v509_v14 = vpack.c.bf16 %v501_v12, %v499_v10  ;;  %v591_v15 = vpack.c.bf16 %v583_v13, %v581_v11 }
 0x284   :  { %3060 = vmatmul.msk.bf16.vlgmr.msra.gmra.mxu1 %vm276_vm5, %v509_v14  ;;  %3078 = vmatmul.msk.bf16.vlgmr.msrb.gmra.mxu2 %vm276_vm5, %v591_v15 }
 0x285   :  { %818 = vmatpush.bf16.msra.mxu1 %v3947_v20  ;;  %v3631_v20 = vld [vmem:[%s5007_s2 + $0x238] sm:$0xff] }
 0x286   :  { %908 = vmatmul.bf16.vlgmr.msra.gmra.mxu0 %v3631_v20 }
 0x289   :  { %819 = vmatpush.bf16.msra.mxu1 %v3963_v33  ;;  %v504_v17 = vpop.f32.mrf.mxu2  ;;  %v586_v18 = vpop.f32.mrf.mxu3  ;;  %v3619_v33 = vld [vmem:[%s5007_s2 + $0x208] sm:$0xff] }
 0x28d   :  { %820 = vmatpush.bf16.msra.mxu1 %v3978_v31  ;;  %v3632_v31 = vld [vmem:[%s5007_s2 + $0x240] sm:$0xff] }
 0x291   :  { %821 = vmatpush.bf16.msra.mxu1 %v3988_v49  ;;  %v506_v19 = vpop.f32.mrf.mxu2  ;;  %v588_v21 = vpop.f32.mrf.mxu3  ;;  %v3620_v49 = vld [vmem:[%s5007_s2 + $0x210] sm:$0xff] }
 0x292   :  { %v510_v22 = vpack.c.bf16 %v506_v19, %v504_v17  ;;  %v592_v23 = vpack.c.bf16 %v588_v21, %v586_v18 }
 0x294   :  { %3061 = vmatmul.msk.bf16.gmra.mxu1 %vm276_vm5, %v510_v22  ;;  %3079 = vmatmul.msk.bf16.gmra.mxu2 %vm276_vm5, %v592_v23 }
 0x295   :  { %822 = vmatpush.bf16.msra.mxu1 %v3997_v56  ;;  %v3627_v56 = vld [vmem:[%s5007_s2 + $0x228] sm:$0xff] }
 0x296   :  { %913 = vmatmul.bf16.gmra.mxu0 %v3632_v31  ;;  %v303_v31 = vadd.f32 %v4128_v48, %v4135_v52 }
 0x299   :  { %823 = vmatpush.bf16.msra.mxu1 %v4006_v63  ;;  %v3628_v63 = vld [vmem:[%s5007_s2 + $0x230] sm:$0xff] }
 0x29d   :  { %824 = vmatpush.bf16.msra.mxu1 %v4015_v4  ;;  %v745_v4 = vpop.f32.mrf.mxu0 }
 0x2a1   :  { %825 = vmatpush.bf16.msra.mxu1 %v4023_v7  ;;  %v3626_v7 = vld [vmem:[%s5007_s2 + $0x70] sm:$0xff] }
 0x2a2   :  { %781 = vmatpush.bf16.msra.mxu2 %v3626_v7  ;;  %v305_v7 = vadd.f32 %v4130_v51, %v4135_v52 }
 0x2a4   :  { %662 = vmatmul.bf16.vlgmr.msrb.gmra.mxu1 %v3619_v33 }
 0x2a5   :  { %v747_v25 = vpop.f32.mrf.mxu0 }
 0x2a6   :  { %782 = vmatpush.bf16.msra.mxu2 %v3625_v24  ;;  %v755_v26 = vpack.c.bf16 %v747_v25, %v745_v4 }
 0x2a9   :  { %3114 = vmatmul.msk.bf16.vlgmr.msra.gmra.mxu2 %vm276_vm5, %v755_v26  ;;  %v387_v26 = vadd.f32 %v4151_v6, %v305_v7 }
 0x2aa   :  { %945 = vmatpush.bf16.msrb.mxu2 %v3634_v41 }
 0x2ab   :  { %v469_v48 = vadd.f32 %v4153_v8, %v387_v26 }
 0x2ad   :  { %v750_v30 = vpop.f32.mrf.mxu0 }
 0x2ae   :  { %946 = vmatpush.bf16.msrb.mxu2 %v3633_v47 }
 0x2b4   :  { %667 = vmatmul.bf16.gmra.mxu1 %v3620_v49 }
 0x2b5   :  { %v752_v37 = vpop.f32.mrf.mxu0 }
 0x2b6   :  { %v756_v38 = vpack.c.bf16 %v752_v37, %v750_v30 }
 0x2b9   :  { %3115 = vmatmul.msk.bf16.gmra.mxu2 %vm276_vm5, %v756_v38 }
 0x2c4   :  { %826 = vmatmul.bf16.vlgmr.msra.gmra.mxu1 %v3627_v56  ;;  %v385_v56 = vadd.f32 %v4144_v61, %v303_v31  ;;  %v3640_v31 = vld [vmem:[%s5007_s2 + $0xc0] sm:$0xff] }
 0x2d4   :  { %831 = vmatmul.bf16.gmra.mxu1 %v3628_v63  ;;  %v467_v63 = vadd.f32 %v4146_v62, %v385_v56  ;;  %v3639_v56 = vld [vmem:[%s5007_s2 + $0xb8] sm:$0xff] }
 0x301   :  { %v538_v27 = vpop.f32.mrf.mxu1 }
 0x302   :  { %v548_v29 = vadd.f32 %v538_v27, %v466_v59 }
 0x303   :  { %v909_v43 = vpop.f32.mrf.mxu0 }
 0x307   :  { %v620_v34 = vpop.f32.mrf.mxu2 }
 0x308   :  { %v4201_v35 = vadd.f32 %v620_v34, %v548_v29 }
 0x309   :  { %v540_v32 = vpop.f32.mrf.mxu1 }
 0x30a   :  { %v549_v24 = vadd.f32 %v540_v32, %v467_v63  ;;  %v3641_v63 = vld [vmem:[%s5007_s2 + $0xc8] sm:$0xff] }
 0x30b   :  { %v911_v50 = vpop.f32.mrf.mxu0 }
 0x30c   :  { %v919_v53 = vpack.c.bf16 %v911_v50, %v909_v43 }
 0x30e   :  { %3150 = vmatmul.msk.bf16.vlgmr.msrb.gmra.mxu2 %vm276_vm5, %v919_v53 }
 0x30f   :  { %v622_v39 = vpop.f32.mrf.mxu2 }
 0x310   :  { %v631_v27 = vadd.f32 %v622_v39, %v549_v24  ;;  %v3644_v24 = vld [vmem:[%s5007_s2 + $0xe0] sm:$0xff] }
 0x311   :  { %v543_v40 = vpop.f32.mrf.mxu1 }
 0x312   :  { %v550_v42 = vadd.f32 %v543_v40, %v4149_v5 }
 0x313   :  { %v914_v57 = vpop.f32.mrf.mxu0 }
 0x317   :  { %v625_v44 = vpop.f32.mrf.mxu2 }
 0x318   :  { %v632_v45 = vadd.f32 %v625_v44, %v550_v42 }
 0x319   :  { %v545_v46 = vpop.f32.mrf.mxu1 }
 0x31a   :  { %v551_v34 = vadd.f32 %v545_v46, %v469_v48 }
 0x31b   :  { %v916_v0 = vpop.f32.mrf.mxu0 }
 0x31c   :  { %v920_v1 = vpack.c.bf16 %v916_v0, %v914_v57 }
 0x31e   :  { %3151 = vmatmul.msk.bf16.gmra.mxu2 %vm276_vm5, %v920_v1 }
 0x31f   :  { %v627_v15 = vpop.f32.mrf.mxu2 }
 0x320   :  { %v633_v40 = vadd.f32 %v627_v15, %v551_v34  ;;  %v1138_v15 = vld [vmem:[%s5007_s2 + $0x260] sm:$0xf] }
 0x321   :  { %v663_v54 = vpop.f32.mrf.mxu1 }
 0x329   :  { %v665_v59 = vpop.f32.mrf.mxu1 }
 0x32a   :  { %v673_v60 = vpack.c.bf16 %v665_v59, %v663_v54 }
 0x32c   :  { %3096 = vmatmul.msk.bf16.vlgmr.msrb.gmra.mxu3 %vm276_vm5, %v673_v60  ;;  %v784_v16 = vpop.f32.mrf.mxu2 }
 0x331   :  { %v668_v2 = vpop.f32.mrf.mxu1 }
 0x334   :  { %v786_v17 = vpop.f32.mrf.mxu2 }
 0x339   :  { %v670_v3 = vpop.f32.mrf.mxu1 }
 0x33a   :  { %v674_v5 = vpack.c.bf16 %v670_v3, %v668_v2 }
 0x33c   :  { %3097 = vmatmul.msk.bf16.gmra.mxu3 %vm276_vm5, %v674_v5  ;;  %v789_v19 = vpop.f32.mrf.mxu2 }
 0x341   :  { %v827_v9 = vpop.f32.mrf.mxu1 }
 0x344   :  { %v791_v23 = vpop.f32.mrf.mxu2 }
 0x349   :  { %v829_v10 = vpop.f32.mrf.mxu1 }
 0x34a   :  { %v837_v11 = vpack.c.bf16 %v829_v10, %v827_v9 }
 0x34c   :  { %3132 = vmatmul.msk.bf16.vlgmr.msra.gmra.mxu3 %vm276_vm5, %v837_v11 }
 0x351   :  { %v832_v12 = vpop.f32.mrf.mxu1 }
 0x359   :  { %v834_v13 = vpop.f32.mrf.mxu1 }
 0x35a   :  { %v838_v14 = vpack.c.bf16 %v834_v13, %v832_v12  ;;  %v983_v12 = vld [vmem:[%s5007_s2 + $0x248] sm:$0xf]  ;;  %v1036_v13 = vld [vmem:[%s5007_s2 + $0x250] sm:$0xf] }
 0x35c   :  { %3133 = vmatmul.msk.bf16.gmra.mxu3 %vm276_vm5, %v838_v14  ;;  %v1087_v14 = vld [vmem:[%s5007_s2 + $0x258] sm:$0xf] }
 0x391   :  { %v948_v33 = vpop.f32.mrf.mxu2 }
 0x399   :  { %v950_v4 = vpop.f32.mrf.mxu2 }
 0x3a1   :  { %v953_v62 = vpop.f32.mrf.mxu2 }
 0x3a9   :  { %v955_v46 = vpop.f32.mrf.mxu2 }
 0x3af   :  { %v702_v18 = vpop.f32.mrf.mxu3 }
 0x3b0   :  { %v712_v30 = vadd.f32 %v702_v18, %v4201_v35  ;;  %v3636_v18 = vld [vmem:[%s5007_s2 + $0xa0] sm:$0xff] }
 0x3b1   :  { %1028 = vmatpush.bf16.msrb.mxu3 %v3636_v18 }
 0x3b2   :  { %v794_v37 = vadd.f32 %v784_v16, %v712_v30  ;;  %v1189_v16 = vld [vmem:[%s5007_s2 + $0x268] sm:$0xf] }
 0x3b7   :  { %v704_v21 = vpop.f32.mrf.mxu3 }
 0x3b8   :  { %v713_v28 = vadd.f32 %v704_v21, %v631_v27  ;;  %v1291_v21 = vld [vmem:[%s5007_s2 + $0x278] sm:$0xf] }
 0x3ba   :  { %v795_v36 = vadd.f32 %v786_v17, %v713_v28  ;;  %v1240_v17 = vld [vmem:[%s5007_s2 + $0x270] sm:$0xf]  ;;  %v3643_v28 = vld [vmem:[%s5007_s2 + $0xd8] sm:$0xff] }
 0x3bf   :  { %v707_v22 = vpop.f32.mrf.mxu3 }
 0x3c0   :  { %v714_v29 = vadd.f32 %v707_v22, %v632_v45  ;;  %v1342_v22 = vld [vmem:[%s5007_s2 + $0x280] sm:$0xf] }
 0x3c2   :  { %v796_v61 = vadd.f32 %v789_v19, %v714_v29  ;;  %v3638_v19 = vld [vmem:[%s5007_s2 + $0xb0] sm:$0xff]  ;;  %v3645_v29 = vld [vmem:[%s5007_s2 + $0xe8] sm:$0xff] }
 0x3c3   :  { %1079 = vmatpush.bf16.msra.mxu2 %v3638_v19 }
 0x3c7   :  { %v709_v20 = vpop.f32.mrf.mxu3 }
 0x3c8   :  { %v715_v32 = vadd.f32 %v709_v20, %v633_v40  ;;  %v3635_v20 = vld [vmem:[%s5007_s2 + $0x98] sm:$0xff] }
 0x3c9   :  { %1029 = vmatpush.bf16.msrb.mxu3 %v3635_v20  ;;  %v3647_v40 = vld [vmem:[%s5007_s2 + $0xf8] sm:$0xff] }
 0x3ca   :  { %v797_v44 = vadd.f32 %v791_v23, %v715_v32  ;;  %v1393_v23 = vld [vmem:[%s5007_s2 + $0x288] sm:$0xf] }
 0x3cd   :  { %1130 = vmatpush.bf16.msra.mxu3 %v3640_v31 }
 0x3cf   :  { %v866_v49 = vpop.f32.mrf.mxu3 }
 0x3d0   :  { %v876_v52 = vadd.f32 %v866_v49, %v794_v37  ;;  %v3642_v49 = vld [vmem:[%s5007_s2 + $0xd0] sm:$0xff] }
 0x3d1   :  { %1131 = vmatpush.bf16.msra.mxu3 %v3639_v56  ;;  %v3650_v37 = vld [vmem:[%s5007_s2 + $0x110] sm:$0xff] }
 0x3d2   :  { %v958_v39 = vadd.f32 %v948_v33, %v876_v52  ;;  %v3637_v33 = vld [vmem:[%s5007_s2 + $0xa8] sm:$0xff] }
 0x3d3   :  { %1080 = vmatpush.bf16.msra.mxu2 %v3637_v33 }
 0x3d4   :  { %v966_v8 = vmul.f32 1.442695, %v958_v39  ;;  %vm962_vm9 = vcmp.gt.f32.partialorder %v958_v39, 0.0 }
 0x3d7   :  { %v868_v25 = vpop.f32.mrf.mxu3  ;;  %1181 = vmatpush.bf16.msrb.mxu2 %v3642_v49 }
 0x3d8   :  { %v877_v41 = vadd.f32 %v868_v25, %v795_v36  ;;  %v3646_v25 = vld [vmem:[%s5007_s2 + $0xf0] sm:$0xff] }
 0x3da   :  { %v959_v6 = vadd.f32 %v950_v4, %v877_v41  ;;  %v3649_v41 = vld [vmem:[%s5007_s2 + $0x108] sm:$0xff] }
 0x3db   :  { %1182 = vmatpush.bf16.msrb.mxu2 %v3641_v63 }
 0x3dc   :  { %v968_v35 = vmul.f32 1.442695, %v959_v6  ;;  %vm963_vm8 = vcmp.gt.f32.partialorder %v959_v6, 0.0 }
 0x3df   :  { %v871_v38 = vpop.f32.mrf.mxu3 }
 0x3e0   :  { %v878_v51 = vadd.f32 %v871_v38, %v796_v61  ;;  %v3648_v61 = vld [vmem:[%s5007_s2 + $0x100] sm:$0xff] }
 0x3e2   :  { %v960_v42 = vadd.f32 %v953_v62, %v878_v51 }
 0x3e4   :  { %v970_v43 = vmul.f32 1.442695, %v960_v42  ;;  %vm964_vm6 = vcmp.gt.f32.partialorder %v960_v42, 0.0 }
 0x3e6   :  { %3770 = vpow2.f32 %v970_v43 }
 0x3e7   :  { %v873_v45 = vpop.f32.mrf.mxu3  ;;  %3772 = vpow2.f32 %v968_v35 }
 0x3e8   :  { %v879_v47 = vadd.f32 %v873_v45, %v797_v44  ;;  %3774 = vpow2.f32 %v966_v8  ;;  %v3651_v44 = vld [vmem:[%s5007_s2 + $0x118] sm:$0xff] }
 0x3ea   :  { %v961_v50 = vadd.f32 %v955_v46, %v879_v47 }
 0x3ec   :  { %v972_v53 = vmul.f32 1.442695, %v961_v50  ;;  %v3771_v54 = vpop.eup %3770  ;;  %vm965_vm7 = vcmp.gt.f32.partialorder %v961_v50, 0.0 }
 0x3ed   :  { %v3773_v55 = vpop.eup %3772  ;;  %v3154_v58 = vadd.f32 -1.0, %v3771_v54 }
 0x3ee   :  { %3776 = vpow2.f32 %v972_v53  ;;  %v3775_v57 = vpop.eup %3774  ;;  %v3153_v60 = vadd.f32 -1.0, %v3773_v55 }
 0x3ef   :  { %v3152_v1 = vadd.f32 -1.0, %v3775_v57  ;;  %v980_v2 = vsel %vm964_vm6, %v960_v42, %v3154_v58 }
 0x3f0   :  { %v979_v9 = vsel %vm963_vm8, %v959_v6, %v3153_v60  ;;  %v3652_v6 = vld [vmem:[%s5007_s2 + $0x120] sm:$0xff] }
 0x3f1   :  { %v978_v10 = vsel %vm962_vm9, %v958_v39, %v3152_v1  ;;  %vm2948_vm9 = vcmask 460192  }
 0x3f2   :  { %v988_v11 = vpack.c.bf16 %v979_v9, %v978_v10 }
 0x3f4   :  { %v3777_v59 = vpop.eup %3776 }
 0x3f5   :  { %v3155_v0 = vadd.f32 -1.0, %v3777_v59 }
 0x3f7   :  { %v981_v3 = vsel %vm965_vm7, %v961_v50, %v3155_v0 }
 0x3f8   :  { %v989_v5 = vpack.c.bf16 %v981_v3, %v980_v2 }
 0x3fa   :  { %999 = vmatpush.bf16.msrb.mxu1 %v989_v5  ;;  %1050 = vmatpush.bf16.msrb.mxu0 %v989_v5 }
 0x3fe   :  { %1000 = vmatpush.bf16.msrb.mxu1 %v988_v11  ;;  %1051 = vmatpush.bf16.msrb.mxu0 %v988_v11 }
 0x401   :  { %3156 = vmatmul.msk.bf16.vlgmr.msrb.gmra.mxu1 %vm276_vm5, %v983_v12  ;;  %3166 = vmatmul.msk.bf16.vlgmr.msrb.gmra.mxu0 %vm276_vm5, %v1036_v13  ;;  %v982_v12 = vld [vmem:[%s5009_s4 + $0x202] ss:$0 sm:$0xff] }
 0x402   :  { %1101 = vmatpush.bf16.msra.mxu1 %v989_v5  ;;  %1152 = vmatpush.bf16.msra.mxu0 %v989_v5 }
 0x406   :  { %1102 = vmatpush.bf16.msra.mxu1 %v988_v11  ;;  %1153 = vmatpush.bf16.msra.mxu0 %v988_v11 }
 0x40a   :  { %1203 = vmatpush.bf16.msrb.mxu1 %v989_v5  ;;  %1254 = vmatpush.bf16.msrb.mxu0 %v989_v5 }
 0x40e   :  { %1204 = vmatpush.bf16.msrb.mxu1 %v988_v11  ;;  %1255 = vmatpush.bf16.msrb.mxu0 %v988_v11 }
 0x411   :  { %3176 = vmatmul.msk.bf16.vlgmr.msra.gmra.mxu1 %vm276_vm5, %v1087_v14  ;;  %3186 = vmatmul.msk.bf16.vlgmr.msra.gmra.mxu0 %vm276_vm5, %v1138_v15 }
 0x412   :  { %1305 = vmatpush.bf16.msra.mxu1 %v989_v5  ;;  %1356 = vmatpush.bf16.msra.mxu0 %v989_v5 }
 0x416   :  { %1306 = vmatpush.bf16.msra.mxu1 %v988_v11  ;;  %1357 = vmatpush.bf16.msra.mxu0 %v988_v11 }
 0x421   :  { %3196 = vmatmul.msk.bf16.vlgmr.msrb.gmra.mxu1 %vm276_vm5, %v1189_v16  ;;  %3206 = vmatmul.msk.bf16.vlgmr.msrb.gmra.mxu0 %vm276_vm5, %v1240_v17 }
 0x422   :  { %1407 = vmatpush.bf16.msrb.mxu1 %v989_v5 }
 0x426   :  { %1408 = vmatpush.bf16.msrb.mxu1 %v988_v11 }
 0x431   :  { %3216 = vmatmul.msk.bf16.vlgmr.msra.gmra.mxu1 %vm276_vm5, %v1291_v21  ;;  %3226 = vmatmul.msk.bf16.vlgmr.msra.gmra.mxu0 %vm276_vm5, %v1342_v22 }
 0x441   :  { %3236 = vmatmul.msk.bf16.vlgmr.msrb.gmra.mxu1 %vm276_vm5, %v1393_v23 }
 0x47e   :  { %v1002_v4 = vpop.f32.mrf.mxu1  ;;  %v1053_v7 = vpop.f32.mrf.mxu0 }
 0x47f   :  { %v1006_v26 = vpack.c.bf16 %v1002_v4, %v1002_v4  ;;  %v1057_v27 = vpack.c.bf16 %v1053_v7, %v1053_v7 }
 0x481   :  { %3165 = vmatmul.msk.bf16.vlgmr.msrb.gmra.mxu3 %vm276_vm5, %v1006_v26  ;;  %3175 = vmatmul.msk.bf16.vlgmr.msra.gmra.mxu2 %vm276_vm5, %v1057_v27 }
 0x482   :  { %1232 = vmatpush.bf16.msrb.mxu3 %v3644_v24  ;;  %1283 = vmatpush.bf16.msra.mxu2 %v3646_v25 }
 0x486   :  { %v1004_v30 = vpop.f32.mrf.mxu1  ;;  %v1055_v48 = vpop.f32.mrf.mxu0  ;;  %1233 = vmatpush.bf16.msrb.mxu3 %v3643_v28  ;;  %1284 = vmatpush.bf16.msra.mxu2 %v3645_v29  ;;  %v1450_v29 = vld [vmem:[%s5007_s2 + $0x290] sm:$0x1] }
 0x487   :  { %v1506_v30 = vld [vmem:[%s5007_s2 + $0x298] sm:$0x1]  ;;  %v1557_v48 = vld [vmem:[%s5007_s2 + $0x2a0] sm:$0x1] }
 0x48e   :  { %v1104_v34 = vpop.f32.mrf.mxu1  ;;  %v1155_v36 = vpop.f32.mrf.mxu0 }
 0x48f   :  { %v1108_v62 = vpack.c.bf16 %v1104_v34, %v1104_v34  ;;  %v1159_v38 = vpack.c.bf16 %v1155_v36, %v1155_v36  ;;  %v1608_v34 = vld [vmem:[%s5007_s2 + $0x2a8] sm:$0x1]  ;;  %v1659_v36 = vld [vmem:[%s5007_s2 + $0x2b0] sm:$0x1] }
 0x491   :  { %3185 = vmatmul.msk.bf16.vlgmr.msra.gmra.mxu3 %vm276_vm5, %v1108_v62  ;;  %3195 = vmatmul.msk.bf16.vlgmr.msrb.gmra.mxu2 %vm276_vm5, %v1159_v38  ;;  %v3672_v62 = vld [vmem:[%s5007_s2 + $0x3c8] sm:$0x70] }
 0x492   :  { %1334 = vmatpush.bf16.msra.mxu3 %v3648_v61  ;;  %1385 = vmatpush.bf16.msrb.mxu2 %v3650_v37  ;;  %v1710_v61 = vld [vmem:[%s5007_s2 + $0x2b8] sm:$0x1]  ;;  %v3344_v37 = vld [vmem:[%s5007_s2 + $0x3c8] sm:$0xf] }
 0x493   :  { %v3345_v38 = vor.u32 %v3672_v62, %v3344_v37 }
 0x496   :  { %v1106_v51 = vpop.f32.mrf.mxu1  ;;  %v1157_v52 = vpop.f32.mrf.mxu0  ;;  %1335 = vmatpush.bf16.msra.mxu3 %v3647_v40  ;;  %1386 = vmatpush.bf16.msrb.mxu2 %v3649_v41  ;;  %v3654_v40 = vld [vmem:[%s5007_s2 + $0x130] sm:$0xff]  ;;  %v3656_v41 = vld [vmem:[%s5007_s2 + $0x140] sm:$0xff] }
 0x497   :  { %v3671_v52 = vld [vmem:[%s5007_s2 + $0x3c0] sm:$0xff] }
 0x49e   :  { %v1206_v32 = vpop.f32.mrf.mxu1  ;;  %v1257_v42 = vpop.f32.mrf.mxu0 }
 0x49f   :  { %v1210_v39 = vpack.c.bf16 %v1206_v32, %v1206_v32  ;;  %v1261_v43 = vpack.c.bf16 %v1257_v42, %v1257_v42  ;;  %v1761_v32 = vld [vmem:[%s5007_s2 + $0x2c0] sm:$0x1]  ;;  %v1812_v42 = vld [vmem:[%s5007_s2 + $0x2c8] sm:$0x1] }
 0x4a1   :  { %3205 = vmatmul.msk.bf16.vlgmr.msrb.gmra.mxu3 %vm276_vm5, %v1210_v39  ;;  %3215 = vmatmul.msk.bf16.vlgmr.msra.gmra.mxu2 %vm276_vm5, %v1261_v43  ;;  %v1863_v43 = vld [vmem:[%s5007_s2 + $0x2d0] sm:$0x1] }
 0x4a2   :  { %1436 = vmatpush.bf16.msrb.mxu3 %v3652_v6  ;;  %1498 = vmatpush.bf16.msra.mxu2 %v3654_v40  ;;  %v1919_v6 = vld [vmem:[%s5010_s1] sm:$0x3] }
 0x4a3   :  { %v1924_v39 = vpack.c.bf16 %v1919_v6, %v1919_v6  ;;  %v1449_v6 = vld [vmem:[%s5009_s4 + $0x203] ss:$0 sm:$0xff] }
 0x4a6   :  { %v1208_v45 = vpop.f32.mrf.mxu1  ;;  %v1259_v35 = vpop.f32.mrf.mxu0  ;;  %1437 = vmatpush.bf16.msrb.mxu3 %v3651_v44  ;;  %v3653_v44 = vld [vmem:[%s5007_s2 + $0x128] sm:$0xff] }
 0x4a7   :  { %1499 = vmatpush.bf16.msra.mxu2 %v3653_v44  ;;  %v3655_v45 = vld [vmem:[%s5007_s2 + $0x138] sm:$0xff]  ;;  %v3658_v35 = vld [vmem:[%s5007_s2 + $0x150] sm:$0xff]  ;;  %v3375_v44 = vld [vmem:[%s5011_s3 + $0x20] sm:$0xf] }
 0x4ae   :  { %v1308_v47 = vpop.f32.mrf.mxu1  ;;  %v1359_v8 = vpop.f32.mrf.mxu0 }
 0x4af   :  { %v1312_v46 = vpack.c.bf16 %v1308_v47, %v1308_v47  ;;  %v1363_v50 = vpack.c.bf16 %v1359_v8, %v1359_v8  ;;  %v3660_v47 = vld [vmem:[%s5007_s2 + $0x160] sm:$0xff]  ;;  %v3657_v8 = vld [vmem:[%s5007_s2 + $0x148] sm:$0xff] }
 0x4b1   :  { %3225 = vmatmul.msk.bf16.vlgmr.msra.gmra.mxu3 %vm276_vm5, %v1312_v46  ;;  %3235 = vmatmul.msk.bf16.vlgmr.msrb.gmra.mxu2 %vm276_vm5, %v1363_v50  ;;  %v3659_v46 = vld [vmem:[%s5007_s2 + $0x158] sm:$0xff] }
 0x4b2   :  { %1549 = vmatpush.bf16.msra.mxu3 %v3656_v41  ;;  %1600 = vmatpush.bf16.msrb.mxu2 %v3658_v35  ;;  %v3679_v35 = vld [vmem:[%s5011_s3 + $0x24] sm:$0xf] }
 0x4b6   :  { %v1310_v53 = vpop.f32.mrf.mxu1  ;;  %v1361_v54 = vpop.f32.mrf.mxu0  ;;  %1550 = vmatpush.bf16.msra.mxu3 %v3655_v45  ;;  %1601 = vmatpush.bf16.msrb.mxu2 %v3657_v8  ;;  %v3681_v45 = vld [vmem:[%s5011_s3 + $0x2c] sm:$0xf0] }
 0x4b7   :  { %v3662_v54 = vld [vmem:[%s5007_s2 + $0x170] sm:$0xff]  ;;  %v3376_v8 = vor.u32 %v3681_v45, %v3375_v44 }
 0x4b8   :  { %v3397_v45 = vld [vmem:[%s5011_s3 + $0x50] sm:$0xf0] }
 0x4be   :  { %v1410_v55 = vpop.f32.mrf.mxu1 }
 0x4bf   :  { %v1414_v57 = vpack.c.bf16 %v1410_v55, %v1410_v55  ;;  %v3664_v55 = vld [vmem:[%s5007_s2 + $0x180] sm:$0xff] }
 0x4c1   :  { %3245 = vmatmul.msk.bf16.vlgmr.msrb.gmra.mxu3 %vm276_vm5, %v1414_v57 }
 0x4c2   :  { %1651 = vmatpush.bf16.msrb.mxu3 %v3660_v47 }
 0x4c6   :  { %v1412_v58 = vpop.f32.mrf.mxu1  ;;  %1652 = vmatpush.bf16.msrb.mxu3 %v3659_v46  ;;  %v3377_v46 = vld [vmem:[%s5011_s3 + $0x30] sm:$0xf0] }
 0x504   :  { %v1031_v59 = vpop.f32.mrf.mxu3  ;;  %v1082_v60 = vpop.f32.mrf.mxu2 }
 0x505   :  { %v1035_v15 = vadd.f32 %v1031_v59, %v982_v12  ;;  %v3661_v59 = vld [vmem:[%s5007_s2 + $0x168] sm:$0xff] }
 0x506   :  { %v3665_v12 = vld [vmem:[%s5007_s2 + $0x188] sm:$0xff] }
 0x507   :  { %v1086_v16 = vadd.f32 %v1082_v60, %v1035_v15  ;;  %v3663_v60 = vld [vmem:[%s5007_s2 + $0x178] sm:$0xff] }
 0x50c   :  { %v1033_v0 = vpop.f32.mrf.mxu3  ;;  %v1084_v1 = vpop.f32.mrf.mxu2 }
 0x514   :  { %v1133_v2 = vpop.f32.mrf.mxu3  ;;  %v1184_v3 = vpop.f32.mrf.mxu2 }
 0x515   :  { %v1137_v17 = vadd.f32 %v1133_v2, %v1086_v16 }
 0x517   :  { %v1188_v21 = vadd.f32 %v1184_v3, %v1137_v17 }
 0x51c   :  { %v1135_v5 = vpop.f32.mrf.mxu3  ;;  %v1186_v9 = vpop.f32.mrf.mxu2 }
 0x51d   :  { %v3666_v5 = vld [vmem:[%s5007_s2 + $0x190] sm:$0xff]  ;;  %v3668_v9 = vld [vmem:[%s5007_s2 + $0x1a0] sm:$0xff] }
 0x524   :  { %v1235_v10 = vpop.f32.mrf.mxu3  ;;  %v1286_v11 = vpop.f32.mrf.mxu2 }
 0x525   :  { %v1239_v22 = vadd.f32 %v1235_v10, %v1188_v21 }
 0x527   :  { %v1290_v33 = vadd.f32 %v1286_v11, %v1239_v22  ;;  %v3669_v22 = vld [vmem:[%s5007_s2 + $0x1a8] sm:$0xff] }
 0x52c   :  { %v1237_v13 = vpop.f32.mrf.mxu3  ;;  %v1288_v14 = vpop.f32.mrf.mxu2 }
 0x52d   :  { %v3667_v13 = vld [vmem:[%s5007_s2 + $0x198] sm:$0xff] }
 0x534   :  { %v1337_v18 = vpop.f32.mrf.mxu3  ;;  %v1388_v19 = vpop.f32.mrf.mxu2 }
 0x535   :  { %v1341_v31 = vadd.f32 %v1337_v18, %v1290_v33  ;;  %v3670_v18 = vld [vmem:[%s5007_s2 + $0x1b0] sm:$0xff] }
 0x537   :  { %v1392_v49 = vadd.f32 %v1388_v19, %v1341_v31  ;;  %v3673_v31 = vld [vmem:[%s5007_s2 + $0x3d0] sm:$0xff] }
 0x53c   :  { %v1339_v23 = vpop.f32.mrf.mxu3  ;;  %v1390_v20 = vpop.f32.mrf.mxu2 }
 0x53d   :  { %v3674_v23 = vld [vmem:[%s5007_s2 + $0x3d8] sm:$0xff] }
 0x544   :  { %v1439_v56 = vpop.f32.mrf.mxu3 }
 0x545   :  { %v1443_v63 = vadd.f32 %v1439_v56, %v1392_v49 }
 0x547   :  { %v1445_v4 = vmul.f32 1.442695, %v1443_v63  ;;  %vm1444_vm10 = vcmp.gt.f32.partialorder %v1443_v63, 0.0 }
 0x549   :  { %3778 = vpow2.f32 %v1445_v4 }
 0x54c   :  { %v1441_v7 = vpop.f32.mrf.mxu3 }
 0x54f   :  { %v3779_v24 = vpop.eup %3778 }
 0x550   :  { %v3246_v25 = vadd.f32 -1.0, %v3779_v24 }
 0x552   :  { %v1448_v26 = vsel %vm1444_vm10, %v1443_v63, %v3246_v25  ;;  %v1925_v25 = vld [vmem:[%s5009_s4 + $0x224] ss:$0 sm:$0xff]  ;;  %vm2954_vm10 = vcmask 509384  }
 0x553   :  { %v1455_v27 = vpack.c.bf16 %v1448_v26, %v1448_v26 }
 0x555   :  { %v1461_v28 = vsel %vm78_vm0, %v1455_v27, 0  ;;  %vm1941_vm0 = vcmask 1046528  }
 0x556   :  { %1470 = vmatpush.bf16.msrb.mxu0 %v1461_v28  ;;  %1521 = vmatpush.bf16.msra.mxu1 %v1461_v28  ;;  %v1943_v51 = vsel %vm1941_vm0, %v3345_v38, 0 }
 0x559   :  { %3247 = vmatmul.msk.bf16.vlgmr.msrb.gmra.mxu0 %vm1456_vm11, %v1450_v29  ;;  %3257 = vmatmul.msk.bf16.vlgmr.msra.gmra.mxu1 %vm1456_vm11, %v1506_v30 }
 0x55a   :  { %1572 = vmatpush.bf16.msra.mxu0 %v1461_v28  ;;  %1623 = vmatpush.bf16.msrb.mxu1 %v1461_v28 }
 0x55e   :  { %1674 = vmatpush.bf16.msrb.mxu0 %v1461_v28  ;;  %1725 = vmatpush.bf16.msra.mxu1 %v1461_v28 }
 0x569   :  { %3267 = vmatmul.msk.bf16.vlgmr.msra.gmra.mxu0 %vm1456_vm11, %v1557_v48  ;;  %3277 = vmatmul.msk.bf16.vlgmr.msrb.gmra.mxu1 %vm1456_vm11, %v1608_v34 }
 0x56a   :  { %1776 = vmatpush.bf16.msra.mxu0 %v1461_v28  ;;  %1827 = vmatpush.bf16.msrb.mxu1 %v1461_v28 }
 0x579   :  { %3287 = vmatmul.msk.bf16.vlgmr.msrb.gmra.mxu0 %vm1456_vm11, %v1659_v36  ;;  %3297 = vmatmul.msk.bf16.vlgmr.msra.gmra.mxu1 %vm1456_vm11, %v1710_v61 }
 0x57a   :  { %1878 = vmatpush.bf16.msrb.mxu0 %v1461_v28  ;;  %1951 = vmatpush.bf16.msra.mxu1 %v1943_v51 }
 0x57e   :  { %1952 = vmatpush.bf16.msra.mxu1 %v3671_v52 }
 0x589   :  { %3307 = vmatmul.msk.bf16.vlgmr.msra.gmra.mxu0 %vm1456_vm11, %v1761_v32  ;;  %3317 = vmatmul.msk.bf16.vlgmr.msrb.gmra.mxu1 %vm1456_vm11, %v1812_v42 }
 0x58a   :  { %2063 = vmatpush.bf16.msra.mxu0 %v3376_v8 }
 0x599   :  { %3327 = vmatmul.msk.bf16.vlgmr.msrb.gmra.mxu0 %vm1456_vm11, %v1863_v43  ;;  %3346 = vmatmul.msk.bf16.vlgmr.msra.gmra.mxu1 %vm1937_vm12, %v1924_v39  ;;  %vm2956_vm11 = vcmask 1041912  }
 0x5d6   :  { %v1472_v50 = vpop.f32.mrf.mxu0  ;;  %v1523_v53 = vpop.f32.mrf.mxu1 }
 0x5d7   :  { %v1476_v57 = vpack.c.bf16 %v1472_v50, %v1472_v50  ;;  %v1527_v58 = vpack.c.bf16 %v1523_v53, %v1523_v53  ;;  %v3383_v50 = vld [vmem:[%s5011_s3 + $0x28] sm:$0xf]  ;;  %v3682_v53 = vld [vmem:[%s5011_s3 + $0x34] sm:$0xf0] }
 0x5d9   :  { %3256 = vmatmul.msk.bf16.vlgmr.msra.gmra.mxu2 %vm276_vm5, %v1476_v57  ;;  %3266 = vmatmul.msk.bf16.vlgmr.msra.gmra.mxu3 %vm276_vm5, %v1527_v58  ;;  %v3680_v57 = vld [vmem:[%s5011_s3 + $0x2c] sm:$0xf]  ;;  %v3385_v58 = vld [vmem:[%s5011_s3 + $0x38] sm:$0xf0] }
 0x5da   :  { %1702 = vmatpush.bf16.msra.mxu2 %v3662_v54  ;;  %1753 = vmatpush.bf16.msra.mxu3 %v3664_v55  ;;  %v3380_v54 = vor.u32 %v3679_v35, %v3377_v46  ;;  %v3384_v55 = vor.u32 %v3682_v53, %v3383_v50  ;;  %v3403_v35 = vld [vmem:[%s5011_s3 + $0x48] sm:$0xf] }
 0x5dc   :  { %2089 = vmatpush.bf16.msrb.mxu1 %v3384_v55 }
 0x5de   :  { %v1474_v0 = vpop.f32.mrf.mxu0  ;;  %v1525_v1 = vpop.f32.mrf.mxu1  ;;  %1703 = vmatpush.bf16.msra.mxu2 %v3661_v59  ;;  %1754 = vmatpush.bf16.msra.mxu3 %v3663_v60  ;;  %v3388_v59 = vor.u32 %v3680_v57, %v3385_v58  ;;  %v3359_v60 = vld [vmem:[%s5011_s3] sm:$0xf]  ;;  %v3702_v57 = vld [vmem:[%s5007_s2 + $0x310] sm:$0xff] }
 0x5df   :  { %v3677_v0 = vld [vmem:[%s5011_s3 + $0xc] sm:$0xf0]  ;;  %v3675_v1 = vld [vmem:[%s5011_s3 + $0x4] sm:$0xf] }
 0x5e6   :  { %v1574_v2 = vpop.f32.mrf.mxu0  ;;  %v1625_v3 = vpop.f32.mrf.mxu1 }
 0x5e7   :  { %v1578_v10 = vpack.c.bf16 %v1574_v2, %v1574_v2  ;;  %v1629_v11 = vpack.c.bf16 %v1625_v3, %v1625_v3  ;;  %v3360_v3 = vor.u32 %v3677_v0, %v3359_v60  ;;  %v3701_v60 = vld [vmem:[%s5007_s2 + $0x308] sm:$0xff] }
 0x5e9   :  { %3276 = vmatmul.msk.bf16.vlgmr.msrb.gmra.mxu2 %vm276_vm5, %v1578_v10  ;;  %3286 = vmatmul.msk.bf16.vlgmr.msrb.gmra.mxu3 %vm276_vm5, %v1629_v11  ;;  %v3678_v10 = vld [vmem:[%s5011_s3 + $0x14] sm:$0xf0] }
 0x5ea   :  { %1804 = vmatpush.bf16.msrb.mxu2 %v3666_v5  ;;  %1855 = vmatpush.bf16.msrb.mxu3 %v3668_v9  ;;  %v3361_v5 = vld [vmem:[%s5011_s3 + $0x10] sm:$0xf0]  ;;  %v3367_v9 = vld [vmem:[%s5011_s3 + $0x8] sm:$0xf] }
 0x5eb   :  { %v3364_v11 = vor.u32 %v3675_v1, %v3361_v5  ;;  %2064 = vmatpush.bf16.msra.mxu0 %v3360_v3  ;;  %v3700_v1 = vld [vmem:[%s5007_s2 + $0x300] sm:$0xff]  ;;  %v3709_v3 = vld [vmem:[%s5007_s2 + $0x348] sm:$0x10] }
 0x5ee   :  { %v1576_v14 = vpop.f32.mrf.mxu0  ;;  %v1627_v15 = vpop.f32.mrf.mxu1  ;;  %1805 = vmatpush.bf16.msrb.mxu2 %v3665_v12  ;;  %1856 = vmatpush.bf16.msrb.mxu3 %v3667_v13  ;;  %v3368_v12 = vor.u32 %v3678_v10, %v3367_v9  ;;  %v3676_v13 = vld [vmem:[%s5011_s3 + $0xc] sm:$0xf] }
 0x5ef   :  { %v3369_v14 = vld [vmem:[%s5011_s3 + $0x18] sm:$0xf0] }
 0x5f0   :  { %2090 = vmatpush.bf16.msrb.mxu1 %v3368_v12 }
 0x5f6   :  { %v1676_v16 = vpop.f32.mrf.mxu0  ;;  %v1727_v17 = vpop.f32.mrf.mxu1 }
 0x5f7   :  { %v1680_v19 = vpack.c.bf16 %v1676_v16, %v1676_v16  ;;  %v1731_v21 = vpack.c.bf16 %v1727_v17, %v1727_v17  ;;  %v3372_v16 = vor.u32 %v3676_v13, %v3369_v14 }
 0x5f9   :  { %3296 = vmatmul.msk.bf16.vlgmr.msra.gmra.mxu2 %vm276_vm5, %v1680_v19  ;;  %3306 = vmatmul.msk.bf16.vlgmr.msra.gmra.mxu3 %vm276_vm5, %v1731_v21  ;;  %v3431_v19 = vld [vmem:[%s5011_s3 + $0xa0] sm:$0xf]  ;;  %v3693_v21 = vld [vmem:[%s5011_s3 + $0xac] sm:$0xf0] }
 0x5fa   :  { %1906 = vmatpush.bf16.msra.mxu2 %v3670_v18  ;;  %1986 = vmatpush.bf16.msra.mxu3 %v3674_v23  ;;  %v3432_v23 = vor.u32 %v3693_v21, %v3431_v19  ;;  %v3696_v21 = vld [vmem:[%s5007_s2 + $0x2e0] sm:$0xff] }
 0x5fc   :  { %2199 = vmatpush.bf16.msrb.mxu0 %v3432_v23  ;;  %v3695_v23 = vld [vmem:[%s5007_s2 + $0x2d8] sm:$0xff] }
 0x5fe   :  { %v1678_v20 = vpop.f32.mrf.mxu0  ;;  %v1729_v33 = vpop.f32.mrf.mxu1  ;;  %1907 = vmatpush.bf16.msra.mxu2 %v3669_v22  ;;  %1987 = vmatpush.bf16.msra.mxu3 %v3673_v31  ;;  %v3692_v22 = vld [vmem:[%s5011_s3 + $0xa4] sm:$0xf]  ;;  %v3694_v31 = vld [vmem:[%s5011_s3 + $0xb4] sm:$0xf0] }
 0x5ff   :  { %v3433_v20 = vld [vmem:[%s5011_s3 + $0xb0] sm:$0xf0]  ;;  %v3439_v33 = vld [vmem:[%s5011_s3 + $0xa8] sm:$0xf] }
 0x606   :  { %v1778_v49 = vpop.f32.mrf.mxu0  ;;  %v1829_v56 = vpop.f32.mrf.mxu1 }
 0x607   :  { %v1782_v63 = vpack.c.bf16 %v1778_v49, %v1778_v49  ;;  %v1833_v4 = vpack.c.bf16 %v1829_v56, %v1829_v56  ;;  %v3436_v49 = vor.u32 %v3692_v22, %v3433_v20  ;;  %v3440_v56 = vor.u32 %v3694_v31, %v3439_v33  ;;  %v4632_v33 = vld [vmem:[%s5009_s4 + $0x1e0] sm:$0xff] }
 0x608   :  { %v4639_v31 = vld [vmem:[%s5009_s4 + $0x1c0] sm:$0xff] }
 0x609   :  { %3316 = vmatmul.msk.bf16.vlgmr.msrb.gmra.mxu2 %vm276_vm5, %v1782_v63  ;;  %3326 = vmatmul.msk.bf16.vlgmr.msrb.gmra.mxu3 %vm276_vm5, %v1833_v4  ;;  %v3419_v63 = vld [vmem:[%s5011_s3 + $0x80] sm:$0xf]  ;;  %v3690_v4 = vld [vmem:[%s5011_s3 + $0x8c] sm:$0xf0] }
 0x60a   :  { %2076 = vmatpush.bf16.msrb.mxu2 %v3380_v54  ;;  %2102 = vmatpush.bf16.msrb.mxu3 %v3388_v59 }
 0x60b   :  { %2225 = vmatpush.bf16.msra.mxu1 %v3440_v56  ;;  %v4652_v56 = vld [vmem:[%s5009_s4 + $0x180] sm:$0xff] }
 0x60e   :  { %v1780_v7 = vpop.f32.mrf.mxu0  ;;  %v1831_v24 = vpop.f32.mrf.mxu1  ;;  %2077 = vmatpush.bf16.msrb.mxu2 %v3364_v11  ;;  %2103 = vmatpush.bf16.msrb.mxu3 %v3372_v16  ;;  %v3699_v11 = vld [vmem:[%s5007_s2 + $0x2f8] sm:$0xff]  ;;  %v3698_v16 = vld [vmem:[%s5007_s2 + $0x2f0] sm:$0xff] }
 0x60f   :  { %v3689_v7 = vld [vmem:[%s5011_s3 + $0x84] sm:$0xf] }
 0x616   :  { %v1880_v26 = vpop.f32.mrf.mxu0  ;;  %v1954_v27 = vpop.f32.mrf.mxu1 }
 0x617   :  { %v1884_v28 = vpack.c.bf16 %v1880_v26, %v1880_v26  ;;  %v1955_v29 = vadd.f32 %v1954_v27, %v1925_v25  ;;  %v3420_v25 = vor.u32 %v3690_v4, %v3419_v63  ;;  %v3421_v26 = vld [vmem:[%s5011_s3 + $0x90] sm:$0xf0]  ;;  %v3427_v27 = vld [vmem:[%s5011_s3 + $0x88] sm:$0xf]  ;;  %v4659_v63 = vld [vmem:[%s5009_s4 + $0x160] sm:$0xff] }
 0x618   :  { %v4665_v4 = vld [vmem:[%s5009_s4 + $0x140] sm:$0xff] }
 0x619   :  { %3336 = vmatmul.msk.bf16.vlgmr.msra.gmra.mxu2 %vm276_vm5, %v1884_v28  ;;  %v1958_v30 = vmax.f32 %v1955_v29, 0.0  ;;  %v3691_v28 = vld [vmem:[%s5011_s3 + $0x94] sm:$0xf0]  ;;  %v3424_v29 = vor.u32 %v3689_v7, %v3421_v26  ;;  %2200 = vmatpush.bf16.msrb.mxu0 %v3420_v25  ;;  %v4671_v7 = vld [vmem:[%s5009_s4 + $0x120] sm:$0xff] }
 0x61a   :  { %2212 = vmatpush.bf16.msra.mxu2 %v3436_v49  ;;  %v4646_v49 = vld [vmem:[%s5009_s4 + $0x1a0] sm:$0xff] }
 0x61b   :  { %v1963_v48 = vpack.c.bf16 %v1958_v30, %v1958_v30  ;;  %v3428_v30 = vor.u32 %v3691_v28, %v3427_v27  ;;  %v4683_v25 = vld [vmem:[%s5009_s4 + $0xe0] sm:$0xff] }
 0x61c   :  { %v4689_v26 = vld [vmem:[%s5009_s4 + $0xc0] sm:$0xff] }
 0x61d   :  { %3355 = vmatmul.msk.bf16.vlgmr.msra.gmra.mxu3 %vm276_vm5, %v1963_v48  ;;  %v3407_v48 = vld [vmem:[%s5011_s3 + $0x60] sm:$0xf]  ;;  %2226 = vmatpush.bf16.msra.mxu1 %v3428_v30 }
 0x61e   :  { %v1882_v34 = vpop.f32.mrf.mxu0  ;;  %v1956_v36 = vpop.f32.mrf.mxu1  ;;  %2213 = vmatpush.bf16.msra.mxu2 %v3424_v29  ;;  %2303 = vmatpush.bf16.msra.mxu3 %v3702_v57  ;;  %v4694_v27 = vld [vmem:[%s5009_s4 + $0xa0] sm:$0xff] }
 0x61f   :  { %v3687_v34 = vld [vmem:[%s5011_s3 + $0x6c] sm:$0xf0]  ;;  %v4701_v28 = vld [vmem:[%s5009_s4 + $0x80] sm:$0xff] }
 0x620   :  { %v4707_v29 = vld [vmem:[%s5009_s4 + $0x60] sm:$0xff] }
 0x621   :  { %v4713_v30 = vld [vmem:[%s5009_s4 + $0x40] sm:$0xff] }
 0x622   :  { %2304 = vmatpush.bf16.msra.mxu3 %v3701_v60  ;;  %v4744_v57 = vld [vmem:[%s5009_s4 + $0x227] ss:$0 sm:$0xff] }
 0x626   :  { %2305 = vmatpush.bf16.msra.mxu3 %v3700_v1 }
 0x62a   :  { %2306 = vmatpush.bf16.msra.mxu3 %v3699_v11 }
 0x62e   :  { %2307 = vmatpush.bf16.msra.mxu3 %v3698_v16  ;;  %v3707_v16 = vld [vmem:[%s5007_s2 + $0x338] sm:$0xff] }
 0x65c   :  { %v1501_v61 = vpop.f32.mrf.mxu2  ;;  %v1552_v37 = vpop.f32.mrf.mxu3 }
 0x65d   :  { %v1505_v47 = vadd.f32 %v1501_v61, %v1449_v6  ;;  %v3686_v61 = vld [vmem:[%s5011_s3 + $0x64] sm:$0xf]  ;;  %v3395_v6 = vld [vmem:[%s5011_s3 + $0x40] sm:$0xf] }
 0x65f   :  { %v1556_v2 = vadd.f32 %v1552_v37, %v1505_v47  ;;  %v3409_v37 = vld [vmem:[%s5011_s3 + $0x70] sm:$0xf0]  ;;  %v3685_v47 = vld [vmem:[%s5011_s3 + $0x54] sm:$0xf0] }
 0x660   :  { %v3404_v53 = vor.u32 %v3685_v47, %v3403_v35 }
 0x664   :  { %v1503_v62 = vpop.f32.mrf.mxu2  ;;  %v1554_v38 = vpop.f32.mrf.mxu3 }
 0x665   :  { %v3415_v62 = vld [vmem:[%s5011_s3 + $0x68] sm:$0xf]  ;;  %v3688_v38 = vld [vmem:[%s5011_s3 + $0x74] sm:$0xf0] }
 0x66c   :  { %v1603_v40 = vpop.f32.mrf.mxu2  ;;  %v1654_v41 = vpop.f32.mrf.mxu3 }
 0x66d   :  { %v1607_v15 = vadd.f32 %v1603_v40, %v1556_v2  ;;  %v3408_v40 = vor.u32 %v3687_v34, %v3407_v48  ;;  %v3504_v2 = vld [vmem:[%s5007_s2 + $0x348] sm:$0xf]  ;;  %v4718_v48 = vld [vmem:[%s5009_s4 + $0x20] sm:$0xff] }
 0x66e   :  { %v3505_v9 = vor.u32 %v3709_v3, %v3504_v2  ;;  %v4725_v34 = vld [vmem:[%s5009_s4] sm:$0xff] }
 0x66f   :  { %v1658_v24 = vadd.f32 %v1654_v41, %v1607_v15  ;;  %2201 = vmatpush.bf16.msrb.mxu0 %v3408_v40  ;;  %v3704_v3 = vld [vmem:[%s5007_s2 + $0x320] sm:$0xff] }
 0x670   :  { %v2417_v15 = vsel %vm79_vm1, %v3505_v9, 0  ;;  %vm2191_vm1 = vcmask 523264   ;;  %v2254_v9 = vld [vmem:[%s5009_s4 + $0x205] ss:$0 sm:$0xff] }
 0x674   :  { %v1605_v51 = vpop.f32.mrf.mxu2  ;;  %v1656_v52 = vpop.f32.mrf.mxu3 }
 0x675   :  { %v3412_v52 = vor.u32 %v3686_v61, %v3409_v37  ;;  %v3705_v61 = vld [vmem:[%s5007_s2 + $0x328] sm:$0xff] }
 0x676   :  { %v3356_v37 = vld [vmem:[%s5009_s4 + $0x204] ss:$8 sm:$0xf] }
 0x677   :  { %2214 = vmatpush.bf16.msra.mxu2 %v3412_v52 }
 0x67c   :  { %v4459_v32 = vpop.f32.mrf.mxu2  ;;  %v4461_v42 = vpop.f32.mrf.mxu3 }
 0x67d   :  { %v1709_v36 = vadd.f32 %v4459_v32, %v1658_v24  ;;  %v3416_v32 = vor.u32 %v3688_v38, %v3415_v62  ;;  %v4677_v24 = vld [vmem:[%s5009_s4 + $0x100] sm:$0xff]  ;;  %v2006_v62 = vperm.slane %v3356_v37, 0 }
 0x67f   :  { %v1760_v44 = vadd.f32 %v4461_v42, %v1709_v36  ;;  %2227 = vmatpush.bf16.msra.mxu1 %v3416_v32  ;;  %v3706_v36 = vld [vmem:[%s5007_s2 + $0x330] sm:$0xff] }
 0x683   :  { %2228 = vmatpush.bf16.msra.mxu1 %v3404_v53  ;;  %v2008_v53 = vperm.slane %v3356_v37, 2 }
 0x684   :  { %v1707_v39 = vpop.f32.mrf.mxu2  ;;  %v1758_v43 = vpop.f32.mrf.mxu3 }
 0x685   :  { %v3684_v39 = vld [vmem:[%s5011_s3 + $0x4c] sm:$0xf0]  ;;  %v3683_v43 = vld [vmem:[%s5011_s3 + $0x44] sm:$0xf] }
 0x686   :  { %v3396_v46 = vor.u32 %v3684_v39, %v3395_v6  ;;  %v3400_v50 = vor.u32 %v3683_v43, %v3397_v45  ;;  %v2009_v45 = vperm.slane %v3356_v37, 3 }
 0x688   :  { %2202 = vmatpush.bf16.msrb.mxu0 %v3396_v46  ;;  %2215 = vmatpush.bf16.msra.mxu2 %v3400_v50 }
 0x68c   :  { %v1807_v17 = vpop.f32.mrf.mxu2  ;;  %v1858_v18 = vpop.f32.mrf.mxu3 }
 0x68d   :  { %v1811_v8 = vadd.f32 %v1807_v17, %v1760_v44  ;;  %v1964_v17 = vld [vmem:[%s5009_s4 + $0x225] ss:$0 sm:$0xff]  ;;  %v2007_v44 = vperm.slane %v3356_v37, 1 }
 0x68f   :  { %v1862_v42 = vadd.f32 %v1858_v18, %v1811_v8  ;;  %v3697_v18 = vld [vmem:[%s5007_s2 + $0x2e8] sm:$0xff] }
 0x690   :  { %2308 = vmatpush.bf16.msra.mxu3 %v3697_v18 }
 0x694   :  { %v1809_v41 = vpop.f32.mrf.mxu2  ;;  %v1860_v51 = vpop.f32.mrf.mxu3  ;;  %2309 = vmatpush.bf16.msra.mxu3 %v3696_v21 }
 0x698   :  { %2310 = vmatpush.bf16.msra.mxu3 %v3695_v23 }
 0x69c   :  { %v1909_v54 = vpop.f32.mrf.mxu2 }
 0x69d   :  { %v1913_v55 = vadd.f32 %v1909_v54, %v1862_v42 }
 0x69f   :  { %v1915_v58 = vmul.f32 1.442695, %v1913_v55  ;;  %vm1914_vm14 = vcmp.gt.f32.partialorder %v1913_v55, 0.0 }
 0x6a0   :  { %v1989_v59 = vpop.f32.mrf.mxu3 }
 0x6a1   :  { %3780 = vpow2.f32 %v1915_v58  ;;  %v1990_v19 = vadd.f32 %v1989_v59, %v1964_v17  ;;  %v2326_v17 = vld [vmem:[%s5009_s4 + $0x206] ss:$0 sm:$0xff] }
 0x6a3   :  { %v1993_v22 = vmax.f32 %v1990_v19, 0.0 }
 0x6a4   :  { %v1911_v0 = vpop.f32.mrf.mxu2 }
 0x6a5   :  { %v2126_v20 = vpack.c.bf16 %v1993_v22, %v1993_v22 }
 0x6a7   :  { %v3781_v5 = vpop.eup %3780 }
 0x6a8   :  { %v3337_v10 = vadd.f32 -1.0, %v3781_v5  ;;  %v1991_v12 = vpop.f32.mrf.mxu3  ;;  %v3703_v5 = vld [vmem:[%s5007_s2 + $0x318] sm:$0xff] }
 0x6aa   :  { %v1918_v13 = vsel %vm1914_vm14, %v1913_v55, %v3337_v10 }
 0x6ab   :  { %v1994_v14 = vpack.c.bf16 %v1918_v13, %v1918_v13  ;;  %2931 = vst.msk [vmem:[%s5012_s5] sm:$0x3] %vm2930_vm13, %v1918_v13 }
 0x6ad   :  { %3389 = vmatmul.msk.bf16.vlgmr.msra.gmra.mxu0 %vm276_vm5, %v1994_v14  ;;  %3390 = vmatmul.msk.bf16.vlgmr.msrb.gmra.mxu2 %vm276_vm5, %v1994_v14 }
 0x6ae   :  { %3391 = vmatmul.msk.bf16.vlgmr.msrb.gmra.mxu1 %vm276_vm5, %v1994_v14  ;;  %3392 = vmatmul.msk.bf16.vlgmr.msrb.gmra.mxu3 %vm276_vm5, %v1994_v14 }
 0x6af   :  { %2426 = vmatpush.bf16.msrb.mxu1 %v2417_v15  ;;  %2656 = vmatpush.msrb.mxu3 %v4632_v33  ;;  %v3708_v15 = vld [vmem:[%s5007_s2 + $0x340] sm:$0xff] }
 0x6b0   :  { %2358 = vmatpush.bf16.msra.mxu0 %v3706_v36  ;;  %2395 = vmatpush.bf16.msrb.mxu2 %v3708_v15  ;;  %v2373_v36 = vld [vmem:[%s5009_s4 + $0x207] ss:$0 sm:$0xff]  ;;  %v2639_v15 = vld [vmem:[%s5009_s4 + $0x1b0] sm:$0xff] }
 0x6b1   :  { %2657 = vmatpush.msrb.mxu3 %v4639_v31 }
 0x6b3   :  { %2658 = vmatpush.msrb.mxu3 %v4646_v49 }
 0x6b4   :  { %2359 = vmatpush.bf16.msra.mxu0 %v3705_v61  ;;  %2396 = vmatpush.bf16.msrb.mxu2 %v3707_v16 }
 0x6b5   :  { %2659 = vmatpush.msrb.mxu3 %v4652_v56 }
 0x6b7   :  { %2660 = vmatpush.msrb.mxu3 %v4659_v63 }
 0x6b8   :  { %2360 = vmatpush.bf16.msra.mxu0 %v3704_v3  ;;  %v2406_v3 = vld [vmem:[%s5009_s4 + $0x220] ss:$0 sm:$0xff] }
 0x6b9   :  { %2661 = vmatpush.msrb.mxu3 %v4665_v4 }
 0x6bb   :  { %2662 = vmatpush.msrb.mxu3 %v4671_v7 }
 0x6bc   :  { %2361 = vmatpush.bf16.msra.mxu0 %v3703_v5 }
 0x6bd   :  { %3441 = vmatmul.msk.bf16.vlgmr.msrb.gmra.mxu0 %vm2191_vm1, %v2126_v20  ;;  %3442 = vmatmul.msk.bf16.vlgmr.msra.gmra.mxu2 %vm2191_vm1, %v2126_v20 }
 0x6be   :  { %3443 = vmatmul.msk.bf16.vlgmr.msra.gmra.mxu1 %vm2191_vm1, %v2126_v20  ;;  %2663 = vmatpush.msrb.mxu3 %v4677_v24  ;;  %v3711_v20 = vld [vmem:[%s5007_s2 + $0x358] sm:$0xff] }
 0x6c0   :  { %2664 = vmatpush.msrb.mxu3 %v4683_v25  ;;  %2460 = vmatpush.bf16.msrb.mxu0 %v3711_v20  ;;  %v2618_v20 = vld [vmem:[%s5009_s4 + $0xd0] sm:$0xff] }
 0x6c2   :  { %2665 = vmatpush.msrb.mxu3 %v4689_v26 }
 0x6c4   :  { %2666 = vmatpush.msrb.mxu3 %v4694_v27 }
 0x6c6   :  { %2667 = vmatpush.msrb.mxu3 %v4701_v28 }
 0x6c8   :  { %2668 = vmatpush.msrb.mxu3 %v4707_v29 }
 0x6ca   :  { %2669 = vmatpush.msrb.mxu3 %v4713_v30 }
 0x6cc   :  { %2670 = vmatpush.msrb.mxu3 %v4718_v48 }
 0x6ce   :  { %2671 = vmatpush.msrb.mxu3 %v4725_v34 }
 0x72a   :  { %v2066_v38 = vpop.f32.mrf.mxu0 }
 0x72b   :  { %v2067_v40 = vadd.f32 %v2066_v38, %v2006_v62  ;;  %v2092_v41 = vpop.f32.mrf.mxu1 }
 0x72c   :  { %v2093_v58 = vadd.f32 %v2092_v41, %v2008_v53  ;;  %v3710_v41 = vld [vmem:[%s5007_s2 + $0x350] sm:$0xff]  ;;  %v2605_v53 = vld [vmem:[%s5009_s4 + $0x48] sm:$0xff] }
 0x72d   :  { %v2109_v51 = vmax.f32 %v2067_v40, 0.0  ;;  %2461 = vmatpush.bf16.msrb.mxu0 %v3710_v41  ;;  %v2438_v41 = vld [vmem:[%s5009_s4 + $0x221] ss:$0 sm:$0xff] }
 0x72f   :  { %v2253_v52 = vpack.c.bf16 %v2109_v51, %v2109_v51  ;;  %v2644_v51 = vld [vmem:[%s5009_s4 + $0x1e8] sm:$0xff] }
 0x730   :  { %v2079_v32 = vpop.f32.mrf.mxu2 }
 0x731   :  { %v2105_v6 = vpop.f32.mrf.mxu3  ;;  %2311 = vmatmul.bf16.vlgmr.msra.gmra.mxu3 %v2253_v52  ;;  %v2080_v47 = vadd.f32 %v2079_v32, %v2007_v44  ;;  %v2641_v52 = vld [vmem:[%s5009_s4 + $0x1c8] sm:$0xff] }
 0x732   :  { %v2068_v39 = vpop.f32.mrf.mxu0  ;;  %v2106_v46 = vadd.f32 %v2105_v6, %v2009_v45  ;;  %2754 = vmatpush.msra.mxu3 %v2644_v51  ;;  %v2638_v32 = vld [vmem:[%s5009_s4 + $0x1a8] sm:$0xff] }
 0x733   :  { %v2094_v43 = vpop.f32.mrf.mxu1  ;;  %v2635_v6 = vld [vmem:[%s5009_s4 + $0x188] sm:$0xff] }
 0x734   :  { %2755 = vmatpush.msra.mxu3 %v2641_v52  ;;  %v2632_v39 = vld [vmem:[%s5009_s4 + $0x168] sm:$0xff] }
 0x735   :  { %v2629_v43 = vld [vmem:[%s5009_s4 + $0x148] sm:$0xff] }
 0x736   :  { %2756 = vmatpush.msra.mxu3 %v2638_v32  ;;  %v2626_v44 = vld [vmem:[%s5009_s4 + $0x128] sm:$0xff] }
 0x737   :  { %v2623_v45 = vld [vmem:[%s5009_s4 + $0x108] sm:$0xff] }
 0x738   :  { %v2081_v35 = vpop.f32.mrf.mxu2  ;;  %2757 = vmatpush.msra.mxu3 %v2635_v6 }
 0x739   :  { %v2107_v8 = vpop.f32.mrf.mxu3  ;;  %v2620_v35 = vld [vmem:[%s5009_s4 + $0xe8] sm:$0xff] }
 0x73a   :  { %v2204_v50 = vpop.f32.mrf.mxu0  ;;  %2758 = vmatpush.msra.mxu3 %v2632_v39  ;;  %v2614_v8 = vld [vmem:[%s5009_s4 + $0xa8] sm:$0xff] }
 0x73b   :  { %v4737_v42 = vadd.f32 %v2204_v50, %v2080_v47  ;;  %v2230_v54 = vpop.f32.mrf.mxu1  ;;  %v2617_v47 = vld [vmem:[%s5009_s4 + $0xc8] sm:$0xff] }
 0x73c   :  { %v4739_v55 = vadd.f32 %v2230_v54, %v2106_v46  ;;  %2759 = vmatpush.msra.mxu3 %v2629_v43  ;;  %v2611_v46 = vld [vmem:[%s5009_s4 + $0x88] sm:$0xff] }
 0x73d   :  { %v2608_v50 = vld [vmem:[%s5009_s4 + $0x68] sm:$0xff] }
 0x73e   :  { %2760 = vmatpush.msra.mxu3 %v2626_v44  ;;  %v2602_v54 = vld [vmem:[%s5009_s4 + $0x28] sm:$0xff] }
 0x740   :  { %v2217_v59 = vpop.f32.mrf.mxu2  ;;  %2761 = vmatpush.msra.mxu3 %v2623_v45 }
 0x741   :  { %v4746_v60 = vadd.f32 %v2217_v59, %v2093_v58  ;;  %2672 = vmatmul.f32.vlgmr.msrb.gmra.mxu3 %v4744_v57  ;;  %v2599_v59 = vld [vmem:[%s5009_s4 + $0x8] sm:$0xff] }
 0x742   :  { %v2206_v0 = vpop.f32.mrf.mxu0  ;;  %2762 = vmatpush.msra.mxu3 %v2620_v35 }
 0x743   :  { %v2232_v1 = vpop.f32.mrf.mxu1  ;;  %v3715_v0 = vld [vmem:[%s5007_s2 + $0x378] sm:$0xff] }
 0x744   :  { %2763 = vmatpush.msra.mxu3 %v2617_v47  ;;  %2509 = vmatpush.bf16.msra.mxu2 %v3715_v0  ;;  %v3714_v1 = vld [vmem:[%s5007_s2 + $0x370] sm:$0xff] }
 0x746   :  { %2764 = vmatpush.msra.mxu3 %v2614_v8 }
 0x748   :  { %v2219_v2 = vpop.f32.mrf.mxu2  ;;  %2765 = vmatpush.msra.mxu3 %v2611_v46  ;;  %2510 = vmatpush.bf16.msra.mxu2 %v3714_v1 }
 0x749   :  { %v3713_v2 = vld [vmem:[%s5007_s2 + $0x368] sm:$0xff] }
 0x74a   :  { %2766 = vmatpush.msra.mxu3 %v2608_v50 }
 0x74c   :  { %2767 = vmatpush.msra.mxu3 %v2605_v53  ;;  %2511 = vmatpush.bf16.msra.mxu2 %v3713_v2 }
 0x74e   :  { %2768 = vmatpush.msra.mxu3 %v2602_v54 }
 0x750   :  { %2769 = vmatpush.msra.mxu3 %v2599_v59 }
 0x7b4   :  { %v2312_v10 = vpop.f32.mrf.mxu3 }
 0x7b5   :  { %v2313_v11 = vadd.f32 %v2312_v10, %v2254_v9  ;;  %v3712_v10 = vld [vmem:[%s5007_s2 + $0x360] sm:$0xff] }
 0x7b6   :  { %2512 = vmatpush.bf16.msra.mxu2 %v3712_v10 }
 0x7b7   :  { %v2316_v12 = vmax.f32 %v2313_v11, 0.0 }
 0x7b9   :  { %v2325_v13 = vpack.c.bf16 %v2316_v12, %v2316_v12  ;;  %v2645_v12 = vld [vmem:[%s5009_s4 + $0x1f0] sm:$0xff] }
 0x7bb   :  { %3492 = vmatmul.msk.bf16.vlgmr.msra.gmra.mxu0 %vm2191_vm1, %v2325_v13 }
 0x7bc   :  { %v2314_v14 = vpop.f32.mrf.mxu3  ;;  %2676 = vmatpush.msra.mxu0 %v2644_v51 }
 0x7bd   :  { %v2642_v14 = vld [vmem:[%s5009_s4 + $0x1d0] sm:$0xff] }
 0x7be   :  { %2677 = vmatpush.msra.mxu0 %v2641_v52 }
 0x7c0   :  { %2678 = vmatpush.msra.mxu0 %v2638_v32  ;;  %v3723_v32 = vld [vmem:[%s5007_s2 + $0x3b8] sm:$0xff] }
 0x7c1   :  { %2585 = vmatpush.bf16.msra.mxu1 %v3723_v32 }
 0x7c2   :  { %2679 = vmatpush.msra.mxu0 %v2635_v6 }
 0x7c4   :  { %2680 = vmatpush.msra.mxu0 %v2632_v39  ;;  %v3722_v39 = vld [vmem:[%s5007_s2 + $0x3b0] sm:$0xff] }
 0x7c5   :  { %2586 = vmatpush.bf16.msra.mxu1 %v3722_v39  ;;  %v3724_v39 = vld [vmem:[%s5007_s2 + $0x3e0] sm:$0xff] }
 0x7c6   :  { %2681 = vmatpush.msra.mxu0 %v2629_v43 }
 0x7c8   :  { %2682 = vmatpush.msra.mxu0 %v2626_v44 }
 0x7ca   :  { %2683 = vmatpush.msra.mxu0 %v2623_v45  ;;  %v3721_v45 = vld [vmem:[%s5007_s2 + $0x3a8] sm:$0xff] }
 0x7cb   :  { %2587 = vmatpush.bf16.msra.mxu1 %v3721_v45 }
 0x7cc   :  { %2684 = vmatpush.msra.mxu0 %v2620_v35  ;;  %v3720_v35 = vld [vmem:[%s5007_s2 + $0x3a0] sm:$0xff] }
 0x7ce   :  { %2685 = vmatpush.msra.mxu0 %v2617_v47  ;;  %v3719_v47 = vld [vmem:[%s5007_s2 + $0x398] sm:$0xff] }
 0x7cf   :  { %2588 = vmatpush.bf16.msra.mxu1 %v3720_v35 }
 0x7d0   :  { %2686 = vmatpush.msra.mxu0 %v2614_v8  ;;  %v3718_v8 = vld [vmem:[%s5007_s2 + $0x390] sm:$0xff] }
 0x7d2   :  { %2687 = vmatpush.msra.mxu0 %v2611_v46  ;;  %v3717_v46 = vld [vmem:[%s5007_s2 + $0x388] sm:$0xff] }
 0x7d3   :  { %2589 = vmatpush.bf16.msra.mxu1 %v3719_v47 }
 0x7d4   :  { %2688 = vmatpush.msra.mxu0 %v2608_v50  ;;  %v3716_v50 = vld [vmem:[%s5007_s2 + $0x380] sm:$0xff] }
 0x7d6   :  { %2689 = vmatpush.msra.mxu0 %v2605_v53  ;;  %v4933_v53 = vld [vmem:[%s5009_s4 + $0x226] ss:$8 sm:$0x7] }
 0x7d7   :  { %2590 = vmatpush.bf16.msra.mxu1 %v3718_v8 }
 0x7d8   :  { %2690 = vmatpush.msra.mxu0 %v2602_v54 }
 0x7da   :  { %2691 = vmatpush.msra.mxu0 %v2599_v59 }
 0x7db   :  { %2591 = vmatpush.bf16.msra.mxu1 %v3717_v46 }
 0x7df   :  { %2592 = vmatpush.bf16.msra.mxu1 %v3716_v50 }
 0x838   :  { %v2363_v18 = vpop.f32.mrf.mxu0 }
 0x839   :  { %v2364_v19 = vadd.f32 %v2363_v18, %v2326_v17  ;;  %v2636_v17 = vld [vmem:[%s5009_s4 + $0x190] sm:$0xff] }
 0x83a   :  { %v2633_v18 = vld [vmem:[%s5009_s4 + $0x170] sm:$0xff] }
 0x83b   :  { %v2367_v21 = vmax.f32 %v2364_v19, 0.0  ;;  %v2630_v19 = vld [vmem:[%s5009_s4 + $0x150] sm:$0xff] }
 0x83d   :  { %v2372_v22 = vpack.c.bf16 %v2367_v21, %v2367_v21  ;;  %v2627_v21 = vld [vmem:[%s5009_s4 + $0x130] sm:$0xff] }
 0x83f   :  { %3501 = vmatmul.msk.bf16.vlgmr.msrb.gmra.mxu2 %vm276_vm5, %v2372_v22  ;;  %v2624_v22 = vld [vmem:[%s5009_s4 + $0x110] sm:$0xff] }
 0x840   :  { %v2365_v23 = vpop.f32.mrf.mxu0  ;;  %2696 = vmatpush.msrb.mxu2 %v2645_v12 }
 0x841   :  { %v2621_v23 = vld [vmem:[%s5009_s4 + $0xf0] sm:$0xff] }
 0x842   :  { %2697 = vmatpush.msrb.mxu2 %v2642_v14 }
 0x844   :  { %2698 = vmatpush.msrb.mxu2 %v2639_v15 }
 0x846   :  { %2699 = vmatpush.msrb.mxu2 %v2636_v17 }
 0x848   :  { %2700 = vmatpush.msrb.mxu2 %v2633_v18 }
 0x84a   :  { %2701 = vmatpush.msrb.mxu2 %v2630_v19 }
 0x84c   :  { %2702 = vmatpush.msrb.mxu2 %v2627_v21 }
 0x84e   :  { %2703 = vmatpush.msrb.mxu2 %v2624_v22 }
 0x850   :  { %2704 = vmatpush.msrb.mxu2 %v2621_v23 }
 0x852   :  { %2705 = vmatpush.msrb.mxu2 %v2618_v20 }
 0x8c2   :  { %v2398_v61 = vpop.f32.mrf.mxu2 }
 0x8c3   :  { %v2399_v37 = vadd.f32 %v2398_v61, %v2373_v36  ;;  %v2615_v36 = vld [vmem:[%s5009_s4 + $0xb0] sm:$0xff] }
 0x8c4   :  { %v2612_v61 = vld [vmem:[%s5009_s4 + $0x90] sm:$0xff]  ;;  %2706 = vmatpush.msrb.mxu2 %v2615_v36 }
 0x8c5   :  { %v2402_v62 = vmax.f32 %v2399_v37, 0.0  ;;  %v2609_v37 = vld [vmem:[%s5009_s4 + $0x70] sm:$0xff] }
 0x8c6   :  { %2707 = vmatpush.msrb.mxu2 %v2612_v61 }
 0x8c7   :  { %v2405_v38 = vpack.c.bf16 %v2402_v62, %v2402_v62  ;;  %2933 = vrot.lane.b32.xlu1 %v2402_v62, %s3799_s16  ;;  %v2606_v62 = vld [vmem:[%s5009_s4 + $0x50] sm:$0xff] }
 0x8c8   :  { %2708 = vmatpush.msrb.mxu2 %v2609_v37 }
 0x8c9   :  { %3506 = vmatmul.msk.bf16.vlgmr.msrb.gmra.mxu1 %vm2412_vm15, %v2405_v38  ;;  %v2603_v38 = vld [vmem:[%s5009_s4 + $0x30] sm:$0xff] }
 0x8ca   :  { %v2400_v40 = vpop.f32.mrf.mxu2  ;;  %2709 = vmatpush.msrb.mxu2 %v2606_v62  ;;  %2734 = vmatpush.msrb.mxu1 %v4632_v33  ;;  %v2650_v33 = vperm.slane %v4933_v53, 0 }
 0x8cb   :  { %v2600_v40 = vld [vmem:[%s5009_s4 + $0x10] sm:$0xff] }
 0x8cc   :  { %2710 = vmatpush.msrb.mxu2 %v2603_v38  ;;  %2735 = vmatpush.msrb.mxu1 %v4639_v31  ;;  %v2673_v31 = vpop.f32.mrf.mxu3 }
 0x8ce   :  { %2711 = vmatpush.msrb.mxu2 %v2600_v40  ;;  %2736 = vmatpush.msrb.mxu1 %v4646_v49  ;;  %v2674_v49 = vadd.f32 %v2673_v31, %v2650_v33 }
 0x8d0   :  { %2737 = vmatpush.msrb.mxu1 %v4652_v56  ;;  %v2651_v56 = vperm.slane %v4933_v53, 1 }
 0x8d2   :  { %2738 = vmatpush.msrb.mxu1 %v4659_v63  ;;  %v2716_v63 = vadd.f32 %v2674_v49, %v4737_v42 }
 0x8d4   :  { %2739 = vmatpush.msrb.mxu1 %v4665_v4 }
 0x8d6   :  { %2740 = vmatpush.msrb.mxu1 %v4671_v7  ;;  %v2477_v7 = vld [vmem:[%s5009_s4 + $0x222] ss:$0 sm:$0xff] }
 0x8d8   :  { %2741 = vmatpush.msrb.mxu1 %v4677_v24 }
 0x8da   :  { %2742 = vmatpush.msrb.mxu1 %v4683_v25  ;;  %v2717_v25 = vmul.f32 0.5, %v2716_v63 }
 0x8dc   :  { %2743 = vmatpush.msrb.mxu1 %v4689_v26  ;;  %3782 = vtanh.f32 %v2717_v25 }
 0x8de   :  { %2744 = vmatpush.msrb.mxu1 %v4694_v27 }
 0x8e0   :  { %2745 = vmatpush.msrb.mxu1 %v4701_v28 }
 0x8e2   :  { %2746 = vmatpush.msrb.mxu1 %v4707_v29  ;;  %v3783_v0 = vpop.eup %3782 }
 0x8e3   :  { %v2719_v1 = vmul.f32 0.5, %v3783_v0 }
 0x8e4   :  { %2747 = vmatpush.msrb.mxu1 %v4713_v30  ;;  %v2652_v30 = vperm.slane %v4933_v53, 2 }
 0x8e6   :  { %2748 = vmatpush.msrb.mxu1 %v4718_v48  ;;  %v2720_v48 = vadd.f32 0.5, %v2719_v1 }
 0x8e8   :  { %2749 = vmatpush.msrb.mxu1 %v4725_v34 }
 0x939   :  { %v2934_v58 = vpop.permute.xlu1 %2933 }
 0x93a   :  { %2937 = vst.msk [vmem:[%s5012_s5] sm:$0x3] %vm2936_vm2, %v2934_v58 }
 0x946   :  { %v2428_v5 = vpop.f32.mrf.mxu1 }
 0x947   :  { %v2429_v9 = vadd.f32 %v2428_v5, %v2406_v3 }
 0x949   :  { %v2432_v11 = vmax.f32 %v2429_v9, 0.0 }
 0x94b   :  { %v2437_v13 = vpack.c.bf16 %v2432_v11, %v2432_v11 }
 0x94d   :  { %3515 = vmatmul.msk.bf16.vlgmr.msrb.gmra.mxu0 %vm276_vm5, %v2437_v13 }
 0x94e   :  { %v2430_v16 = vpop.f32.mrf.mxu1  ;;  %2774 = vmatpush.msrb.mxu0 %v2645_v12 }
 0x950   :  { %2775 = vmatpush.msrb.mxu0 %v2642_v14 }
 0x952   :  { %2776 = vmatpush.msrb.mxu0 %v2639_v15 }
 0x954   :  { %2777 = vmatpush.msrb.mxu0 %v2636_v17  ;;  %v2536_v17 = vld [vmem:[%s5009_s4 + $0x223] ss:$0 sm:$0xff] }
 0x956   :  { %2778 = vmatpush.msrb.mxu0 %v2633_v18 }
 0x958   :  { %2779 = vmatpush.msrb.mxu0 %v2630_v19 }
 0x95a   :  { %2780 = vmatpush.msrb.mxu0 %v2627_v21 }
 0x95c   :  { %2781 = vmatpush.msrb.mxu0 %v2624_v22  ;;  %v3731_v22 = vld [vmem:[%s5007_s2 + $0x418] sm:$0xff] }
 0x95d   :  { %2692 = vmatmul.f32.vlgmr.msra.gmra.mxu0 %v4744_v57 }
 0x95e   :  { %2782 = vmatpush.msrb.mxu0 %v2621_v23  ;;  %v3729_v23 = vld [vmem:[%s5007_s2 + $0x408] sm:$0xff] }
 0x960   :  { %2783 = vmatpush.msrb.mxu0 %v2618_v20  ;;  %v3728_v20 = vld [vmem:[%s5007_s2 + $0x400] sm:$0xff] }
 0x962   :  { %2784 = vmatpush.msrb.mxu0 %v2615_v36  ;;  %v3727_v36 = vld [vmem:[%s5007_s2 + $0x3f8] sm:$0xff] }
 0x964   :  { %2785 = vmatpush.msrb.mxu0 %v2612_v61 }
 0x966   :  { %2786 = vmatpush.msrb.mxu0 %v2609_v37 }
 0x968   :  { %2787 = vmatpush.msrb.mxu0 %v2606_v62 }
 0x96a   :  { %2788 = vmatpush.msrb.mxu0 %v2603_v38  ;;  %v3726_v38 = vld [vmem:[%s5007_s2 + $0x3f0] sm:$0xff] }
 0x96c   :  { %2789 = vmatpush.msrb.mxu0 %v2600_v40 }
 0x9ca   :  { %v2463_v51 = vpop.f32.mrf.mxu0 }
 0x9cb   :  { %v2464_v52 = vadd.f32 %v2463_v51, %v2438_v41  ;;  %v3725_v41 = vld [vmem:[%s5007_s2 + $0x3e8] sm:$0xff] }
 0x9cd   :  { %v2467_v6 = vmax.f32 %v2464_v52, 0.0 }
 0x9cf   :  { %v2476_v43 = vpack.c.bf16 %v2467_v6, %v2467_v6 }
 0x9d1   :  { %3532 = vmatmul.msk.bf16.vlgmr.msra.gmra.mxu2 %vm2191_vm1, %v2476_v43 }
 0x9d2   :  { %v2465_v44 = vpop.f32.mrf.mxu0  ;;  %2892 = vmatpush.bf16.msra.mxu2 %v3731_v22 }
 0x9da   :  { %v2693_v4 = vpop.f32.mrf.mxu0 }
 0x9db   :  { %v2694_v24 = vadd.f32 %v2693_v4, %v2651_v56 }
 0x9dd   :  { %v2721_v28 = vadd.f32 %v2694_v24, %v4746_v60 }
 0x9df   :  { %v2722_v58 = vmul.f32 0.5, %v2721_v28 }
 0x9e1   :  { %2712 = vmatmul.f32.vlgmr.msrb.gmra.mxu2 %v4744_v57  ;;  %3784 = vtanh.f32 %v2722_v58 }
 0x9e7   :  { %v3785_v3 = vpop.eup %3784 }
 0x9e8   :  { %v2724_v10 = vmul.f32 0.5, %v3785_v3 }
 0x9ea   :  { %v2725_v11 = vadd.f32 0.5, %v2724_v10 }
 0x9ec   :  { %v2729_v12 = vsub.f32 1.0, %v2725_v11  ;;  %v2731_v14 = vmul.f32 %v2725_v11, %v4744_v57  ;;  %v3730_v57 = vld [vmem:[%s5007_s2 + $0x410] sm:$0xff] }
 0x9ed   :  { %2893 = vmatpush.bf16.msra.mxu2 %v3730_v57 }
 0x9f1   :  { %2894 = vmatpush.bf16.msra.mxu2 %v3729_v23 }
 0x9f5   :  { %2895 = vmatpush.bf16.msra.mxu2 %v3728_v20 }
 0x9f9   :  { %2896 = vmatpush.bf16.msra.mxu2 %v3727_v36 }
 0x9fd   :  { %2897 = vmatpush.bf16.msra.mxu2 %v3726_v38 }
 0xa01   :  { %2898 = vmatpush.bf16.msra.mxu2 %v3725_v41 }
 0xa05   :  { %2899 = vmatpush.bf16.msra.mxu2 %v3724_v39 }
 0xa54   :  { %v2514_v26 = vpop.f32.mrf.mxu2 }
 0xa55   :  { %v2515_v27 = vadd.f32 %v2514_v26, %v2477_v7 }
 0xa57   :  { %v2518_v54 = vmax.f32 %v2515_v27, 0.0 }
 0xa59   :  { %v2535_v29 = vpack.c.bf16 %v2518_v54, %v2518_v54 }
 0xa5b   :  { %2593 = vmatmul.bf16.vlgmr.msra.gmra.mxu1 %v2535_v29 }
 0xa5c   :  { %v2516_v59 = vpop.f32.mrf.mxu2 }
 0xa64   :  { %v2713_v2 = vpop.f32.mrf.mxu2 }
 0xa65   :  { %v2714_v5 = vadd.f32 %v2713_v2, %v2652_v30 }
 0xa67   :  { %v2726_v9 = vmul.f32 %v2720_v48, %v2714_v5 }
 0xa69   :  { %v2727_v34 = vadd.f32 %v2726_v9, %v4739_v55 }
 0xa6b   :  { %3786 = vtanh.f32 %v2727_v34 }
 0xa71   :  { %v3787_v13 = vpop.eup %3786 }
 0xa72   :  { %v2730_v15 = vmul.f32 %v3787_v13, %v2729_v12 }
 0xa74   :  { %v2732_v16 = vadd.f32 %v2731_v14, %v2730_v15 }
 0xa76   :  { %2733 = vst [vmem:[#allocation2] sm:$0x1] %v2732_v16  ;;  %2750 = vmatmul.f32.vlgmr.msrb.gmra.mxu1 %v2732_v16  ;;  %2770 = vmatmul.f32.vlgmr.msra.gmra.mxu3 %v2732_v16  ;;  %v2819_v63 = vrot.slane %v2732_v16, 7 }
 0xa77   :  { %2790 = vmatmul.f32.vlgmr.msrb.gmra.mxu0 %v2732_v16 }
 0xad8   :  { %v2594_v18 = vpop.f32.mrf.mxu1 }
 0xad9   :  { %v2595_v19 = vadd.f32 %v2594_v18, %v2536_v17 }
 0xadb   :  { %2939 = vrot.lane.b32.xlu1 %v2595_v19, %s3800_s8 }
 0xae0   :  { %v2596_v21 = vpop.f32.mrf.mxu1 }
 0xae1   :  { %v3803_v21 = vmov 0.0  }
 0xaf3   :  { %v2751_v61 = vpop.f32.mrf.mxu1 }
 0xaf4   :  { %v2752_v37 = vadd.f32 %v2751_v61, %v2650_v33  ;;  %v2791_v43 = vpop.f32.mrf.mxu0 }
 0xaf5   :  { %v2792_v45 = vadd.f32 %v2791_v43, %v2652_v30 }
 0xaf6   :  { %v2795_v62 = vrot.slane %v2752_v37, 7 }
 0xaf7   :  { %v2811_v46 = vrot.slane %v2792_v45, 7 }
 0xaf8   :  { %v2797_v40 = vadd.f32 %v2795_v62, %v4737_v42 }
 0xaf9   :  { %v2771_v51 = vpop.f32.mrf.mxu3 }
 0xafa   :  { %v2798_v52 = vmul.f32 0.5, %v2797_v40  ;;  %v2772_v32 = vadd.f32 %v2771_v51, %v2651_v56 }
 0xafc   :  { %3788 = vtanh.f32 %v2798_v52  ;;  %v2803_v6 = vrot.slane %v2772_v32, 7 }
 0xafe   :  { %v2805_v42 = vadd.f32 %v2803_v6, %v4746_v60 }
 0xb00   :  { %v2806_v44 = vmul.f32 0.5, %v2805_v42 }
 0xb02   :  { %v3789_v35 = vpop.eup %3788  ;;  %3790 = vtanh.f32 %v2806_v44 }
 0xb03   :  { %v2800_v47 = vmul.f32 0.5, %v3789_v35 }
 0xb05   :  { %v2801_v8 = vadd.f32 0.5, %v2800_v47 }
 0xb07   :  { %v2813_v50 = vmul.f32 %v2811_v46, %v2801_v8 }
 0xb08   :  { %v3791_v53 = vpop.eup %3790 }
 0xb09   :  { %v2814_v33 = vadd.f32 %v2813_v50, %v4739_v55  ;;  %v2808_v31 = vmul.f32 0.5, %v3791_v53  ;;  %v2843_v55 = vld [vmem:[%s5009_s4 + $0x240] ss:$0 sm:$0xff]  ;;  %s3801_s4 = smov 52  }
 0xb0b   :  { %3792 = vtanh.f32 %v2814_v33  ;;  %v2809_v49 = vadd.f32 0.5, %v2808_v31 }
 0xb0d   :  { %v2816_v56 = vsub.f32 1.0, %v2809_v49  ;;  %v2821_v60 = vmul.f32 %v2819_v63, %v2809_v49 }
 0xb11   :  { %v3793_v4 = vpop.eup %3792 }
 0xb12   :  { %v2817_v7 = vmul.f32 %v3793_v4, %v2816_v56 }
 0xb14   :  { %v2822_v24 = vadd.f32 %v2821_v60, %v2817_v7 }
 0xb16   :  { %2823 = vst [vmem:[#allocation2] sm:$0x2] %v2822_v24 }
 0xb1d   :  { %v2824_v25 = vld [vmem:[#allocation2] sm:$0x3] }
 0xb1e   :  { %v2825_v26 = vmax.f32 %v2824_v25, 0.0 }
 0xb20   :  { %v2842_v27 = vpack.c.bf16 %v2825_v26, %v2825_v26 }
 0xb22   :  { %2900 = vmatmul.bf16.vlgmr.msra.gmra.mxu2 %v2842_v27 }
 0xb4d   :  { %v2940_v28 = vpop.permute.xlu1 %2939 }
 0xb4e   :  { %2943 = vst.msk [vmem:[%s5012_s5] sm:$0x3] %vm2942_vm3, %v2940_v28 }
 0xba5   :  { %v2901_v54 = vpop.f32.mrf.mxu2 }
 0xba6   :  { %v2902_v29 = vadd.f32 %v2901_v54, %v2843_v55 }
 0xba8   :  { %v2906_v58 = vsel %vm2905_vm4, %v2902_v29, -inf }
 0xba9   :  { %2907 = vmax.xlane.f32.xlu0 %v2906_v58 }
 0xbad   :  { %v2903_v59 = vpop.f32.mrf.mxu2 }
 0xc1c   :  { %v2908_v0 = vpop.xlane.xlu0 %2907 }
 0xc1d   :  { %v2909_v30 = vsub.f32 %v2902_v29, %v2908_v0 }
 0xc1f   :  { %v2910_v1 = vmul.f32 1.442695, %v2909_v30 }
 0xc21   :  { %3794 = vpow2.f32 %v2910_v1 }
 0xc27   :  { %v3795_v2 = vpop.eup %3794 }
 0xc28   :  { %v2912_v3 = vsel %vm2905_vm4, %v3795_v2, 0.0 }
 0xc29   :  { %2913 = vadd.xlane.f32.xlu0 %v2912_v3 }
 0xc9c   :  { %v2914_v5 = vpop.xlane.xlu0 %2913 }
 0xc9d   :  { %3796 = vrcp.f32 %v2914_v5  ;;  %v2926_v34 = vand.u32 2147483648, %v2914_v5  ;;  %v2924_v12 = vand.u32 2147483647, %v2914_v5  ;;  %vm2920_vm6 = vweird.f32 %v2914_v5 }
 0xc9f   :  { %v2927_v14 = vor.u32 1.1754944e-38, %v2926_v34  ;;  %vm2925_vm8 = vcmp.eq.f32.partialorder %v2924_v12, 8.507059e+37 }
 0xca3   :  { %v3797_v48 = vpop.eup %3796 }
 0xca4   :  { %v2916_v9 = vmul.f32 %v3797_v48, %v2914_v5  ;;  %vm2921_vm5 = vweird.f32 %v3797_v48 }
 0xca5   :  { %vm2922_vm7 = vmor %vm2920_vm6, %vm2921_vm5 }
 0xca6   :  { %v2917_v10 = vsub.f32 1.0, %v2916_v9 }
 0xca8   :  { %v2918_v11 = vmul.f32 %v3797_v48, %v2917_v10 }
 0xcaa   :  { %v2919_v13 = vadd.f32 %v3797_v48, %v2918_v11 }
 0xcac   :  { %v2923_v15 = vsel %vm2922_vm7, %v3797_v48, %v2919_v13 }
 0xcad   :  { %v2928_v16 = vsel %vm2925_vm8, %v2927_v14, %v2923_v15 }
 0xcae   :  { %v2929_v17 = vmul.f32 %v3795_v2, %v2928_v16 }
 0xcb0   :  { %2945 = vrot.lane.b32.xlu2 %v2929_v17, %s3801_s4 }
 0xcb8   :  { %2951 = vrot.lane.b32.xlu2 %v2902_v29, %s3802_s26 }
 0xd0a   :  { %v2946_v18 = vpop.permute.xlu2 %2945 }
 0xd0b   :  { %2949 = vst.msk [vmem:[%s5012_s5] sm:$0x3] %vm2948_vm9, %v2946_v18 }
 0xd12   :  { %v2952_v19 = vpop.permute.xlu2 %2951 }
 0xd13   :  { %2955 = vst.msk [vmem:[%s5012_s5] sm:$0x3] %vm2954_vm10, %v2952_v19 }
 0xd14   :  { %2957 = vst.msk [vmem:[%s5012_s5] sm:$0x3] %vm2956_vm11, %v3803_v21 }

</bundles_post_ra>
